<compile_context>
chip_gen: v7x
topology: tpu7x:2x2x1
jax: 0.10.0
libtpu: 0.0.40
codegen_flags: <defaults>
</compile_context>

<pallas_src>
import jax
import jax.numpy as jnp
import numpy as np
from jax.experimental import pallas as pl
from jax.experimental.pallas import tpu as pltpu

# --- problem sizes -----------------------------------------------------------
N = 1024       # batch rows (batched so per-call overhead is amortized)
D_IN = 32      # encoder input features
D_H = 64       # encoder hidden width
HIDDEN = 10    # DEC `hidden` (embedding dim)
K = 10         # n_clusters
ALPHA = 1.0    # Student-t degrees of freedom


def _row_tile(n_rows):
    """One grid step per TensorCore: v7x has 2 TCs/chip, v5e/v6e have 1."""
    kind = ""
    try:
        kind = jax.devices()[0].device_kind.lower()
    except Exception:
        pass
    if ("v7" in kind or "7x" in kind) and n_rows % 16 == 0:
        return n_rows // 2          # grid=2: one row tile per TensorCore
    return n_rows                   # grid=1: single-TC chips, fewest steps


def dec_kernel(x_ref, w1_ref, b1_ref, w2_ref, b2_ref, c_ref, out_ref):
    # --- autoencoder.encode(x): 2-layer MLP (D_IN -> D_H -> HIDDEN) ---------
    x = x_ref[...]                                                    # (TM, D_IN)
    h = jnp.dot(x, w1_ref[...], preferred_element_type=jnp.float32) + b1_ref[...]
    h = jnp.maximum(h, 0.0)                                           # ReLU
    z = jnp.dot(h, w2_ref[...], preferred_element_type=jnp.float32) + b2_ref[...]
    # z: (TM, HIDDEN)

    # --- ClusteringLayer: Student-t soft assignment --------------------------
    c = c_ref[...]                                                    # (K, HIDDEN)
    contract_last = (((1,), (1,)), ((), ()))                          # a[i,:].b[j,:]
    cross = jax.lax.dot_general(z, c, contract_last,
                                preferred_element_type=jnp.float32)   # (TM, K)
    # ||c_k||^2 as a 1-row matmul -> lane-aligned (1, K), no relayout needed.
    c2 = jax.lax.dot_general(jnp.ones((1, HIDDEN), jnp.float32), c * c,
                             contract_last,
                             preferred_element_type=jnp.float32)      # (1, K)
    z2 = jnp.sum(z * z, axis=1, keepdims=True)                        # (TM, 1)
    norm_squared = jnp.maximum(z2 + c2 - 2.0 * cross, 0.0)            # (TM, K)

    # numerator = 1 / (1 + ||z-c||^2 / alpha); exact reciprocal (rtol=1e-5 check).
    numerator = pl.reciprocal(1.0 + norm_squared * (1.0 / ALPHA), approx=False)
    power = float(ALPHA + 1.0) / 2.0
    if power != 1.0:                                                  # alpha=1 -> power=1 (trace-time)
        numerator = numerator ** power

    denom = jnp.sum(numerator, axis=1, keepdims=True)                 # (TM, 1)
    out_ref[...] = numerator * pl.reciprocal(denom, approx=False)


@jax.jit
def dec_forward(x, w1, b1, w2, b2, centers):
    """x: (N, D_IN) f32; centers: (K, HIDDEN) f32. Returns q: (N, K) f32."""
    n_rows = x.shape[0]
    tm = _row_tile(n_rows)
    assert n_rows % tm == 0 and tm % 8 == 0

    resident = lambda shape: pl.BlockSpec(shape, lambda i: (0,) * len(shape))

    return pl.pallas_call(
        dec_kernel,
        out_shape=jax.ShapeDtypeStruct((n_rows, K), jnp.float32),
        grid=(n_rows // tm,),
        in_specs=[
            pl.BlockSpec((tm, D_IN), lambda i: (i, 0)),   # x tile streams over rows
            resident((D_IN, D_H)),                        # weights stay VMEM-resident
            resident((1, D_H)),
            resident((D_H, HIDDEN)),
            resident((1, HIDDEN)),
            resident((K, HIDDEN)),                        # raw cluster centers
        ],
        out_specs=pl.BlockSpec((tm, K), lambda i: (i, 0)),
        compiler_params=pltpu.CompilerParams(dimension_semantics=("parallel",)),
    )(x, w1, b1, w2, b2, centers)


def reference_forward(x, w1, b1, w2, b2, centers):
    """Plain-JAX mirror of the PyTorch DEC.forward semantics."""
    h = jnp.maximum(x @ w1 + b1, 0.0)
    z = h @ w2 + b2
    norm_squared = jnp.sum((z[:, None, :] - centers[None, :, :]) ** 2, axis=2)
    numerator = 1.0 / (1.0 + norm_squared / ALPHA)
    power = float(ALPHA + 1.0) / 2.0
    numerator = numerator ** power
    return numerator / jnp.sum(numerator, axis=1, keepdims=True)


if __name__ == "__main__":
    key = jax.random.PRNGKey(0)
    kx, k1, k2, kc = jax.random.split(key, 4)

    # deterministic parameter init
    # TODO(synk): the original module leaves `autoencoder` abstract; a 2-layer
    # MLP encoder stands in for autoencoder.encode().
    x = jax.random.normal(kx, (N, D_IN), dtype=jnp.float32)
    w1 = jax.random.normal(k1, (D_IN, D_H), dtype=jnp.float32) * (1.0 / np.sqrt(D_IN))
    b1 = jnp.zeros((1, D_H), dtype=jnp.float32)
    w2 = jax.random.normal(k2, (D_H, HIDDEN), dtype=jnp.float32) * (1.0 / np.sqrt(D_H))
    b2 = jnp.zeros((1, HIDDEN), dtype=jnp.float32)
    # xavier_uniform_ for cluster_centers (fan_in=HIDDEN, fan_out=K)
    bound = float(np.sqrt(6.0 / (HIDDEN + K)))
    centers = jax.random.uniform(kc, (K, HIDDEN), dtype=jnp.float32,
                                 minval=-bound, maxval=bound)

    q = dec_forward(x, w1, b1, w2, b2, centers)
    jax.block_until_ready(q)

    q_ref = reference_forward(x, w1, b1, w2, b2, centers)
    np.testing.assert_allclose(np.asarray(q), np.asarray(q_ref), rtol=1e-5, atol=1e-5)
    assert q.shape == (N, K)
    np.testing.assert_allclose(np.asarray(q).sum(axis=1), np.ones(N), rtol=1e-5, atol=1e-5)

    print("KERNEL_OK")
</pallas_src>

<mosaic_0001>
module attributes {stable_mosaic.version = 11 : i64} {
  func.func @dec_kernel(%arg0: i32, %arg1: memref<1024x32xf32, #tpu.memory_space<vmem>>, %arg2: memref<32x64xf32, #tpu.memory_space<vmem>>, %arg3: memref<1x64xf32, #tpu.memory_space<vmem>>, %arg4: memref<64x10xf32, #tpu.memory_space<vmem>>, %arg5: memref<1x10xf32, #tpu.memory_space<vmem>>, %arg6: memref<10x10xf32, #tpu.memory_space<vmem>>, %arg7: memref<1024x10xf32, #tpu.memory_space<vmem>>) attributes {dimension_semantics = [#tpu.dimension_semantics<parallel>], iteration_bounds = array<i64: 1>, scalar_prefetch = 0 : i64, scratch_operands = 0 : i64, tpu.core_type = #tpu.core_type<tc>, window_params = [{transform_indices = @transform_0, window_bounds = array<i64: 1024, 32>}, {pipeline_mode = #tpu.pipeline_mode<synchronous>, transform_indices = @transform_1, window_bounds = array<i64: 32, 64>}, {pipeline_mode = #tpu.pipeline_mode<synchronous>, transform_indices = @transform_2, window_bounds = array<i64: 1, 64>}, {pipeline_mode = #tpu.pipeline_mode<synchronous>, transform_indices = @transform_3, window_bounds = array<i64: 64, 10>}, {pipeline_mode = #tpu.pipeline_mode<synchronous>, transform_indices = @transform_4, window_bounds = array<i64: 1, 10>}, {pipeline_mode = #tpu.pipeline_mode<synchronous>, transform_indices = @transform_5, window_bounds = array<i64: 10, 10>}, {transform_indices = @transform_6, window_bounds = array<i64: 1024, 10>}]} {
    %c0 = arith.constant 0 : index
    %c0_0 = arith.constant 0 : index
    %0 = vector.load %arg1[%c0, %c0_0] : memref<1024x32xf32, #tpu.memory_space<vmem>>, vector<1024x32xf32>
    %c0_1 = arith.constant 0 : index
    %c0_2 = arith.constant 0 : index
    %1 = vector.load %arg2[%c0_1, %c0_2] : memref<32x64xf32, #tpu.memory_space<vmem>>, vector<32x64xf32>
    %cst = arith.constant dense<0.000000e+00> : vector<1024x64xf32>
    %2 = tpu.matmul %0, %1, %cst {dimension_numbers = #tpu.dot_dimension_numbers<[1], [0], [0], [1], [0, 0, 1, 1], [], []>} : vector<1024x32xf32>, vector<32x64xf32>, vector<1024x64xf32> -> vector<1024x64xf32>
    %c0_3 = arith.constant 0 : index
    %c0_4 = arith.constant 0 : index
    %3 = vector.load %arg3[%c0_3, %c0_4] : memref<1x64xf32, #tpu.memory_space<vmem>>, vector<1x64xf32>
    %4 = vector.broadcast %3 : vector<1x64xf32> to vector<1024x64xf32>
    %5 = arith.addf %2, %4 : vector<1024x64xf32>
    %cst_5 = arith.constant 0.000000e+00 : f32
    %6 = vector.broadcast %cst_5 : f32 to vector<1024x64xf32>
    %7 = arith.maximumf %5, %6 : vector<1024x64xf32>
    %c0_6 = arith.constant 0 : index
    %c0_7 = arith.constant 0 : index
    %8 = vector.load %arg4[%c0_6, %c0_7] : memref<64x10xf32, #tpu.memory_space<vmem>>, vector<64x10xf32>
    %cst_8 = arith.constant dense<0.000000e+00> : vector<1024x10xf32>
    %9 = tpu.matmul %7, %8, %cst_8 {dimension_numbers = #tpu.dot_dimension_numbers<[1], [0], [0], [1], [0, 0, 1, 1], [], []>} : vector<1024x64xf32>, vector<64x10xf32>, vector<1024x10xf32> -> vector<1024x10xf32>
    %c0_9 = arith.constant 0 : index
    %c0_10 = arith.constant 0 : index
    %10 = vector.load %arg5[%c0_9, %c0_10] : memref<1x10xf32, #tpu.memory_space<vmem>>, vector<1x10xf32>
    %11 = vector.broadcast %10 : vector<1x10xf32> to vector<1024x10xf32>
    %12 = arith.addf %9, %11 : vector<1024x10xf32>
    %c0_11 = arith.constant 0 : index
    %c0_12 = arith.constant 0 : index
    %13 = vector.load %arg6[%c0_11, %c0_12] : memref<10x10xf32, #tpu.memory_space<vmem>>, vector<10x10xf32>
    %cst_13 = arith.constant dense<0.000000e+00> : vector<1024x10xf32>
    %14 = tpu.matmul %12, %13, %cst_13 {dimension_numbers = #tpu.dot_dimension_numbers<[1], [1], [0], [0], [0, 0, 1, 0], [], []>} : vector<1024x10xf32>, vector<10x10xf32>, vector<1024x10xf32> -> vector<1024x10xf32>
    %cst_14 = arith.constant 1.000000e+00 : f32
    %15 = vector.broadcast %cst_14 : f32 to vector<1x10xf32>
    %16 = arith.mulf %13, %13 : vector<10x10xf32>
    %cst_15 = arith.constant dense<0.000000e+00> : vector<1x10xf32>
    %17 = tpu.matmul %15, %16, %cst_15 {dimension_numbers = #tpu.dot_dimension_numbers<[1], [1], [0], [0], [0, 0, 1, 0], [], []>} : vector<1x10xf32>, vector<10x10xf32>, vector<1x10xf32> -> vector<1x10xf32>
    %18 = arith.mulf %12, %12 : vector<1024x10xf32>
    %cst_16 = arith.constant dense<0.000000e+00> : vector<1024xf32>
    %19 = vector.multi_reduction <add>, %18, %cst_16 [1] : vector<1024x10xf32> to vector<1024xf32>
    %20 = vector.shape_cast %19 : vector<1024xf32> to vector<1024x1xf32>
    %21 = vector.broadcast %20 : vector<1024x1xf32> to vector<1024x10xf32>
    %22 = vector.broadcast %17 : vector<1x10xf32> to vector<1024x10xf32>
    %23 = arith.addf %21, %22 : vector<1024x10xf32>
    %cst_17 = arith.constant 2.000000e+00 : f32
    %24 = vector.broadcast %cst_17 : f32 to vector<1024x10xf32>
    %25 = arith.mulf %24, %14 : vector<1024x10xf32>
    %26 = arith.subf %23, %25 : vector<1024x10xf32>
    %cst_18 = arith.constant 0.000000e+00 : f32
    %27 = vector.broadcast %cst_18 : f32 to vector<1024x10xf32>
    %28 = arith.maximumf %26, %27 : vector<1024x10xf32>
    %cst_19 = arith.constant 1.000000e+00 : f32
    %29 = vector.broadcast %cst_19 : f32 to vector<1024x10xf32>
    %30 = arith.mulf %28, %29 : vector<1024x10xf32>
    %cst_20 = arith.constant 1.000000e+00 : f32
    %31 = vector.broadcast %cst_20 : f32 to vector<1024x10xf32>
    %32 = arith.addf %31, %30 : vector<1024x10xf32>
    %33 = tpu.reciprocal %32 : vector<1024x10xf32> -> vector<1024x10xf32>
    %cst_21 = arith.constant dense<0.000000e+00> : vector<1024xf32>
    %34 = vector.multi_reduction <add>, %33, %cst_21 [1] : vector<1024x10xf32> to vector<1024xf32>
    %35 = vector.shape_cast %34 : vector<1024xf32> to vector<1024x1xf32>
    %36 = tpu.reciprocal %35 : vector<1024x1xf32> -> vector<1024x1xf32>
    %37 = vector.broadcast %36 : vector<1024x1xf32> to vector<1024x10xf32>
    %38 = arith.mulf %33, %37 : vector<1024x10xf32>
    %c0_22 = arith.constant 0 : index
    %c0_23 = arith.constant 0 : index
    %39 = vector.load %arg7[%c0_22, %c0_23] : memref<1024x10xf32, #tpu.memory_space<vmem>>, vector<1024x10xf32>
    tpu.vector_store %arg7[%c0_22, %c0_23], %38 {strides = array<i32>} : memref<1024x10xf32, #tpu.memory_space<vmem>>, vector<1024x10xf32>,
    return
  }
  func.func @transform_0(%arg0: i32) -> (i32, i32) {
    %c0_i32 = arith.constant 0 : i32
    %c0_i32_0 = arith.constant 0 : i32
    return %arg0, %c0_i32 : i32, i32
  }
  func.func @transform_1(%arg0: i32) -> (i32, i32) {
    %c0_i32 = arith.constant 0 : i32
    %c0_i32_0 = arith.constant 0 : i32
    %c0_i32_1 = arith.constant 0 : i32
    return %c0_i32, %c0_i32_0 : i32, i32
  }
  func.func @transform_2(%arg0: i32) -> (i32, i32) {
    %c0_i32 = arith.constant 0 : i32
    %c0_i32_0 = arith.constant 0 : i32
    %c0_i32_1 = arith.constant 0 : i32
    return %c0_i32, %c0_i32_0 : i32, i32
  }
  func.func @transform_3(%arg0: i32) -> (i32, i32) {
    %c0_i32 = arith.constant 0 : i32
    %c0_i32_0 = arith.constant 0 : i32
    %c0_i32_1 = arith.constant 0 : i32
    return %c0_i32, %c0_i32_0 : i32, i32
  }
  func.func @transform_4(%arg0: i32) -> (i32, i32) {
    %c0_i32 = arith.constant 0 : i32
    %c0_i32_0 = arith.constant 0 : i32
    %c0_i32_1 = arith.constant 0 : i32
    return %c0_i32, %c0_i32_0 : i32, i32
  }
  func.func @transform_5(%arg0: i32) -> (i32, i32) {
    %c0_i32 = arith.constant 0 : i32
    %c0_i32_0 = arith.constant 0 : i32
    %c0_i32_1 = arith.constant 0 : i32
    return %c0_i32, %c0_i32_0 : i32, i32
  }
  func.func @transform_6(%arg0: i32) -> (i32, i32) {
    %c0_i32 = arith.constant 0 : i32
    %c0_i32_0 = arith.constant 0 : i32
    return %arg0, %c0_i32 : i32, i32
  }
}

</mosaic_0001>

<bundles_post_ra>
// kernel: dec_forward.1
= control target key start
LH: loop header
LB: loop body
LE: loop exit
PB: predicated region body
PF: predicated region fallthrough
CT: control target
= control target key end

     0   :  { %vm162_vm0 = vcmask 261120   ;;  %vm2487_vm1 = vcmask 80896   ;;  %vm1395_vm2 = vcmask 523264   ;;  %vm7680_vm4 = vmmov 0   ;;  %s11480_s1 = inlined_call_operand.vmem [shape: f32[32,64], index: 1, kind: input, shape index: {}]   ;;  %s11481_s0 = inlined_call_operand.vmem [shape: f32[1024,32], index: 0, kind: input, shape index: {}]   ;;  %s11482_s3 = inlined_call_operand.vmem [shape: f32[64,10], index: 3, kind: input, shape index: {}]   ;;  %s11483_s2 = inlined_call_operand.vmem [shape: f32[1,64], index: 2, kind: input, shape index: {}]   ;;  %s11484_s5 = inlined_call_operand.vmem [shape: f32[10,10], index: 5, kind: input, shape index: {}]   ;;  %s11485_s4 = inlined_call_operand.vmem [shape: f32[1,10], index: 4, kind: input, shape index: {}]   ;;  %s11486_s6 = inlined_call_operand.vmem [shape: f32[1024,10], index: 6, kind: output, shape index: {}]  }
   0x1   :  { %v151_v0 = vld [vmem:[%s11480_s1] sm:$0xff]  ;;  %v152_v1 = vld [vmem:[%s11480_s1 + $0x8] sm:$0xff]  ;;  %v153_v2 = vld [vmem:[%s11480_s1 + $0x10] sm:$0xff] }
   0x2   :  { %v7123_v3 = vpack.c.bf16 %v152_v1, %v151_v0  ;;  %v154_v4 = vld [vmem:[%s11480_s1 + $0x18] sm:$0xff]  ;;  %v23_v5 = vld [vmem:[%s11481_s0] sm:$0xff]  ;;  %v24_v7 = vld [vmem:[%s11481_s0 + $0x8] sm:$0xff] }
   0x3   :  { %v7127_v6 = vpack.c.bf16 %v154_v4, %v153_v2  ;;  %6520 = vmatprep.mubr.msk.f32.mxu0 %vm162_vm0, %v23_v5  ;;  %v25_v8 = vld [vmem:[%s11481_s0 + $0x10] sm:$0xff]  ;;  %v26_v9 = vld [vmem:[%s11481_s0 + $0x18] sm:$0xff]  ;;  %v27_v10 = vld [vmem:[%s11481_s0 + $0x20] sm:$0xff] }
   0x4   :  { %7124 = vmatprep.subr.bf16.mxu0 %v7123_v3  ;;  %7157 = vmatprep.subr.bf16.mxu1 %v7123_v3  ;;  %v28_v11 = vld [vmem:[%s11481_s0 + $0x28] sm:$0xff]  ;;  %v29_v12 = vld [vmem:[%s11481_s0 + $0x30] sm:$0xff]  ;;  %v90_v14 = vld [vmem:[%s11481_s0 + $0x218] sm:$0xff] }
   0x5   :  { %7126 = vmatpush3.bf16.msra.mxu0 %v7123_v3  ;;  %7159 = vmatpush3.bf16.msra.mxu1 %v7123_v3  ;;  %v89_v13 = vld [vmem:[%s11481_s0 + $0x210] sm:$0xff]  ;;  %v1380_v15 = vld [vmem:[%s11482_s3] sm:$0xff]  ;;  %v1381_v16 = vld [vmem:[%s11482_s3 + $0x8] sm:$0xff] }
   0x6   :  { %7128 = vmatprep.subr.bf16.mxu0 %v7127_v6  ;;  %7158 = vmatprep.subr.bf16.mxu1 %v7127_v6  ;;  %v7131_v17 = vpack.c.bf16 %v1381_v16, %v1380_v15  ;;  %v91_v18 = vld [vmem:[%s11481_s0 + $0x220] sm:$0xff]  ;;  %v30_v19 = vld [vmem:[%s11481_s0 + $0x38] sm:$0xff]  ;;  %v92_v20 = vld [vmem:[%s11481_s0 + $0x228] sm:$0xff] }
   0x7   :  { %6619 = vmatprep.mubr.msk.f32.mxu1 %vm162_vm0, %v89_v13  ;;  %v31_v21 = vld [vmem:[%s11481_s0 + $0x40] sm:$0xff]  ;;  %v93_v22 = vld [vmem:[%s11481_s0 + $0x230] sm:$0xff]  ;;  %v32_v23 = vld [vmem:[%s11481_s0 + $0x48] sm:$0xff] }
   0x8   :  { %v94_v24 = vld [vmem:[%s11481_s0 + $0x238] sm:$0xff]  ;;  %v33_v25 = vld [vmem:[%s11481_s0 + $0x50] sm:$0xff]  ;;  %v95_v26 = vld [vmem:[%s11481_s0 + $0x240] sm:$0xff] }
   0x9   :  { %7130 = vmatpush3.bf16.msra.mxu0 %v7127_v6  ;;  %7160 = vmatpush3.bf16.msra.mxu1 %v7127_v6  ;;  %v34_v27 = vld [vmem:[%s11481_s0 + $0x58] sm:$0xff]  ;;  %v35_v28 = vld [vmem:[%s11481_s0 + $0x60] sm:$0xff]  ;;  %v96_v29 = vld [vmem:[%s11481_s0 + $0x248] sm:$0xff] }
   0xa   :  { %7132 = vmatprep.subr.bf16.mxu1 %v7131_v17  ;;  %v97_v30 = vld [vmem:[%s11481_s0 + $0x250] sm:$0xff]  ;;  %v1383_v32 = vld [vmem:[%s11482_s3 + $0x18] sm:$0xff]  ;;  %v36_v34 = vld [vmem:[%s11481_s0 + $0x68] sm:$0xff] }
   0xb   :  { %v1382_v31 = vld [vmem:[%s11482_s3 + $0x10] sm:$0xff]  ;;  %v98_v35 = vld [vmem:[%s11481_s0 + $0x258] sm:$0xff]  ;;  %v99_v37 = vld [vmem:[%s11481_s0 + $0x260] sm:$0xff] }
   0xc   :  { %6521 = vmatmul.mubr.msk.f32.vlgmr.msra.gmra.mrb[0].mxu0 %vm162_vm0, %v24_v7  ;;  %6620 = vmatmul.mubr.msk.f32.vlgmr.msra.gmra.mrb[0].mxu1 %vm162_vm0, %v90_v14  ;;  %v7135_v33 = vpack.c.bf16 %v1383_v32, %v1382_v31  ;;  %v37_v36 = vld [vmem:[%s11481_s0 + $0x70] sm:$0xff]  ;;  %v1384_v38 = vld [vmem:[%s11482_s3 + $0x20] sm:$0xff]  ;;  %v1385_v39 = vld [vmem:[%s11482_s3 + $0x28] sm:$0xff] }
   0xd   :  { %6523 = vmatprep.mubr.msk.f32.mxu0 %vm162_vm0, %v25_v8  ;;  %6622 = vmatprep.mubr.msk.f32.mxu1 %vm162_vm0, %v91_v18  ;;  %v38_v40 = vld [vmem:[%s11481_s0 + $0x78] sm:$0xff]  ;;  %v100_v41 = vld [vmem:[%s11481_s0 + $0x268] sm:$0xff]  ;;  %v7139_v42 = vpack.c.bf16 %v1385_v39, %v1384_v38  ;;  %v39_v43 = vld [vmem:[%s11481_s0 + $0x80] sm:$0xff] }
   0xe   :  { %7134 = vmatpush3.bf16.msra.mxu1 %v7131_v17  ;;  %v101_v44 = vld [vmem:[%s11481_s0 + $0x270] sm:$0xff]  ;;  %v40_v45 = vld [vmem:[%s11481_s0 + $0x88] sm:$0xff]  ;;  %v102_v47 = vld [vmem:[%s11481_s0 + $0x278] sm:$0xff] }
   0xf   :  { %7136 = vmatprep.subr.bf16.mxu1 %v7135_v33  ;;  %v41_v46 = vld [vmem:[%s11481_s0 + $0x90] sm:$0xff]  ;;  %v103_v48 = vld [vmem:[%s11481_s0 + $0x280] sm:$0xff]  ;;  %v1387_v50 = vld [vmem:[%s11482_s3 + $0x38] sm:$0xff] }
  0x10   :  { %6524 = vmatmul.mubr.msk.f32.gmra.mrb[2].mxu0 %vm162_vm0, %v26_v9  ;;  %6623 = vmatmul.mubr.msk.f32.gmra.mrb[2].mxu1 %vm162_vm0, %v92_v20  ;;  %v1386_v49 = vld [vmem:[%s11482_s3 + $0x30] sm:$0xff]  ;;  %v42_v52 = vld [vmem:[%s11481_s0 + $0x98] sm:$0xff]  ;;  %v104_v53 = vld [vmem:[%s11481_s0 + $0x288] sm:$0xff] }
  0x11   :  { %6526 = vmatprep.mubr.msk.f32.mxu0 %vm162_vm0, %v27_v10  ;;  %6625 = vmatprep.mubr.msk.f32.mxu1 %vm162_vm0, %v93_v22  ;;  %v7143_v51 = vpack.c.bf16 %v1387_v50, %v1386_v49  ;;  %v43_v54 = vld [vmem:[%s11481_s0 + $0xa0] sm:$0xff]  ;;  %v105_v55 = vld [vmem:[%s11481_s0 + $0x290] sm:$0xff]  ;;  %v44_v56 = vld [vmem:[%s11481_s0 + $0xa8] sm:$0xff] }
  0x12   :  { %7138 = vmatpush3.bf16.msra.mxu1 %v7135_v33  ;;  %v106_v57 = vld [vmem:[%s11481_s0 + $0x298] sm:$0xff]  ;;  %v45_v58 = vld [vmem:[%s11481_s0 + $0xb0] sm:$0xff]  ;;  %v107_v59 = vld [vmem:[%s11481_s0 + $0x2a0] sm:$0xff] }
  0x13   :  { %7140 = vmatprep.subr.bf16.mxu1 %v7139_v42  ;;  %v46_v60 = vld [vmem:[%s11481_s0 + $0xb8] sm:$0xff]  ;;  %v108_v61 = vld [vmem:[%s11481_s0 + $0x2a8] sm:$0xff]  ;;  %v47_v62 = vld [vmem:[%s11481_s0 + $0xc0] sm:$0xff] }
  0x14   :  { %6527 = vmatmul.mubr.msk.f32.gmra.mrb[4].mxu0 %vm162_vm0, %v28_v11  ;;  %6626 = vmatmul.mubr.msk.f32.gmra.mrb[4].mxu1 %vm162_vm0, %v94_v24  ;;  %v109_v63 = vld [vmem:[%s11481_s0 + $0x2b0] sm:$0xff]  ;;  %v48_v0 = vld [vmem:[%s11481_s0 + $0xc8] sm:$0xff]  ;;  %v110_v1 = vld [vmem:[%s11481_s0 + $0x2b8] sm:$0xff] }
  0x15   :  { %6529 = vmatprep.mubr.msk.f32.mxu0 %vm162_vm0, %v29_v12  ;;  %6628 = vmatprep.mubr.msk.f32.mxu1 %vm162_vm0, %v95_v26  ;;  %v49_v2 = vld [vmem:[%s11481_s0 + $0xd0] sm:$0xff]  ;;  %v111_v3 = vld [vmem:[%s11481_s0 + $0x2c0] sm:$0xff]  ;;  %v50_v4 = vld [vmem:[%s11481_s0 + $0xd8] sm:$0xff] }
  0x16   :  { %7142 = vmatpush3.bf16.msra.mxu1 %v7139_v42  ;;  %v112_v5 = vld [vmem:[%s11481_s0 + $0x2c8] sm:$0xff]  ;;  %v51_v6 = vld [vmem:[%s11481_s0 + $0xe0] sm:$0xff]  ;;  %v113_v7 = vld [vmem:[%s11481_s0 + $0x2d0] sm:$0xff] }
  0x17   :  { %7144 = vmatprep.subr.bf16.mxu1 %v7143_v51  ;;  %v52_v8 = vld [vmem:[%s11481_s0 + $0xe8] sm:$0xff]  ;;  %v114_v9 = vld [vmem:[%s11481_s0 + $0x2d8] sm:$0xff]  ;;  %v53_v10 = vld [vmem:[%s11481_s0 + $0xf0] sm:$0xff] }
  0x18   :  { %6530 = vmatmul.mubr.msk.f32.gmra.mrb[6].mxu0 %vm162_vm0, %v30_v19  ;;  %6629 = vmatmul.mubr.msk.f32.gmra.mrb[6].mxu1 %vm162_vm0, %v96_v29  ;;  %v115_v11 = vld [vmem:[%s11481_s0 + $0x2e0] sm:$0xff]  ;;  %v54_v12 = vld [vmem:[%s11481_s0 + $0xf8] sm:$0xff]  ;;  %v116_v13 = vld [vmem:[%s11481_s0 + $0x2e8] sm:$0xff] }
  0x19   :  { %6532 = vmatprep.mubr.msk.f32.mxu0 %vm162_vm0, %v31_v21  ;;  %6631 = vmatprep.mubr.msk.f32.mxu1 %vm162_vm0, %v97_v30  ;;  %v55_v14 = vld [vmem:[%s11481_s0 + $0x100] sm:$0xff]  ;;  %v117_v15 = vld [vmem:[%s11481_s0 + $0x2f0] sm:$0xff]  ;;  %v56_v16 = vld [vmem:[%s11481_s0 + $0x108] sm:$0xff] }
  0x1a   :  { %7146 = vmatpush3.bf16.msra.mxu1 %v7143_v51  ;;  %v118_v17 = vld [vmem:[%s11481_s0 + $0x2f8] sm:$0xff]  ;;  %v57_v18 = vld [vmem:[%s11481_s0 + $0x110] sm:$0xff]  ;;  %v119_v19 = vld [vmem:[%s11481_s0 + $0x300] sm:$0xff] }
  0x1b   :  { %v58_v20 = vld [vmem:[%s11481_s0 + $0x118] sm:$0xff]  ;;  %v120_v21 = vld [vmem:[%s11481_s0 + $0x308] sm:$0xff]  ;;  %v59_v22 = vld [vmem:[%s11481_s0 + $0x120] sm:$0xff] }
  0x1c   :  { %6533 = vmatmul.mubr.msk.f32.gmra.mrb[8].mxu0 %vm162_vm0, %v32_v23  ;;  %6632 = vmatmul.mubr.msk.f32.gmra.mrb[8].mxu1 %vm162_vm0, %v98_v35  ;;  %v121_v23 = vld [vmem:[%s11481_s0 + $0x310] sm:$0xff]  ;;  %v60_v24 = vld [vmem:[%s11481_s0 + $0x128] sm:$0xff]  ;;  %v63_v30 = vld [vmem:[%s11481_s0 + $0x140] sm:$0xff] }
  0x1d   :  { %6535 = vmatprep.mubr.msk.f32.mxu0 %vm162_vm0, %v33_v25  ;;  %6634 = vmatprep.mubr.msk.f32.mxu1 %vm162_vm0, %v99_v37  ;;  %v122_v25 = vld [vmem:[%s11481_s0 + $0x318] sm:$0xff]  ;;  %v61_v26 = vld [vmem:[%s11481_s0 + $0x130] sm:$0xff]  ;;  %v124_v29 = vld [vmem:[%s11481_s0 + $0x328] sm:$0xff] }
  0x1e   :  { %v125_v31 = vld [vmem:[%s11481_s0 + $0x330] sm:$0xff]  ;;  %v64_v32 = vld [vmem:[%s11481_s0 + $0x148] sm:$0xff]  ;;  %v126_v33 = vld [vmem:[%s11481_s0 + $0x338] sm:$0xff] }
  0x1f   :  { %v127_v35 = vld [vmem:[%s11481_s0 + $0x340] sm:$0xff]  ;;  %v128_v37 = vld [vmem:[%s11481_s0 + $0x348] sm:$0xff]  ;;  %v129_v39 = vld [vmem:[%s11481_s0 + $0x350] sm:$0xff] }
  0x20   :  { %6536 = vmatmul.mubr.msk.f32.gmra.mrb[10].mxu0 %vm162_vm0, %v34_v27  ;;  %6635 = vmatmul.mubr.msk.f32.gmra.mrb[10].mxu1 %vm162_vm0, %v100_v41  ;;  %v123_v27 = vld [vmem:[%s11481_s0 + $0x320] sm:$0xff]  ;;  %v130_v41 = vld [vmem:[%s11481_s0 + $0x358] sm:$0xff]  ;;  %v69_v42 = vld [vmem:[%s11481_s0 + $0x170] sm:$0xff] }
  0x21   :  { %6538 = vmatprep.mubr.msk.f32.mxu0 %vm162_vm0, %v35_v28  ;;  %6637 = vmatprep.mubr.msk.f32.mxu1 %vm162_vm0, %v101_v44  ;;  %v62_v28 = vld [vmem:[%s11481_s0 + $0x138] sm:$0xff]  ;;  %v67_v38 = vld [vmem:[%s11481_s0 + $0x160] sm:$0xff]  ;;  %v73_v50 = vld [vmem:[%s11481_s0 + $0x190] sm:$0xff] }
  0x22   :  { %v70_v44 = vld [vmem:[%s11481_s0 + $0x178] sm:$0xff]  ;;  %v135_v51 = vld [vmem:[%s11481_s0 + $0x380] sm:$0xff]  ;;  %vm7148_vm3 = vmpackc.low %vm2487_vm1, %vm2487_vm1 }
  0x23   :  { %v134_v49 = vld [vmem:[%s11481_s0 + $0x378] sm:$0xff] }
  0x24   :  { %6539 = vmatmul.mubr.msk.f32.gmra.mrb[12].mxu0 %vm162_vm0, %v36_v34  ;;  %6638 = vmatmul.mubr.msk.f32.gmra.mrb[12].mxu1 %vm162_vm0, %v102_v47  ;;  %v65_v34 = vld [vmem:[%s11481_s0 + $0x150] sm:$0xff] }
  0x25   :  { %6541 = vmatprep.mubr.msk.f32.mxu0 %vm162_vm0, %v37_v36  ;;  %6640 = vmatprep.mubr.msk.f32.mxu1 %vm162_vm0, %v103_v48  ;;  %v66_v36 = vld [vmem:[%s11481_s0 + $0x158] sm:$0xff]  ;;  %v133_v47 = vld [vmem:[%s11481_s0 + $0x370] sm:$0xff]  ;;  %v72_v48 = vld [vmem:[%s11481_s0 + $0x188] sm:$0xff] }
  0x28   :  { %6542 = vmatmul.mubr.msk.f32.gmra.mrb[14].mxu0 %vm162_vm0, %v38_v40  ;;  %6641 = vmatmul.mubr.msk.f32.gmra.mrb[14].mxu1 %vm162_vm0, %v104_v53  ;;  %v68_v40 = vld [vmem:[%s11481_s0 + $0x168] sm:$0xff]  ;;  %v74_v53 = vld [vmem:[%s11481_s0 + $0x198] sm:$0xff] }
  0x29   :  { %6544 = vmatprep.mubr.msk.f32.mxu0 %vm162_vm0, %v39_v43  ;;  %6643 = vmatprep.mubr.msk.f32.mxu1 %vm162_vm0, %v105_v55  ;;  %v131_v43 = vld [vmem:[%s11481_s0 + $0x360] sm:$0xff] }
  0x2a   :  { %v75_v55 = vld [vmem:[%s11481_s0 + $0x1a0] sm:$0xff] }
  0x2c   :  { %6545 = vmatmul.mubr.msk.f32.gmra.mrb[16].mxu0 %vm162_vm0, %v40_v45  ;;  %6644 = vmatmul.mubr.msk.f32.gmra.mrb[16].mxu1 %vm162_vm0, %v106_v57  ;;  %v132_v45 = vld [vmem:[%s11481_s0 + $0x368] sm:$0xff] }
  0x2d   :  { %6547 = vmatprep.mubr.msk.f32.mxu0 %vm162_vm0, %v41_v46  ;;  %6646 = vmatprep.mubr.msk.f32.mxu1 %vm162_vm0, %v107_v59  ;;  %v71_v46 = vld [vmem:[%s11481_s0 + $0x180] sm:$0xff]  ;;  %v76_v57 = vld [vmem:[%s11481_s0 + $0x1a8] sm:$0xff]  ;;  %v77_v59 = vld [vmem:[%s11481_s0 + $0x1b0] sm:$0xff] }
  0x30   :  { %6548 = vmatmul.mubr.msk.f32.gmra.mrb[18].mxu0 %vm162_vm0, %v42_v52  ;;  %6647 = vmatmul.mubr.msk.f32.gmra.mrb[18].mxu1 %vm162_vm0, %v108_v61  ;;  %v7679_v52 = vmov 0.0|0.0   ;;  %v78_v61 = vld [vmem:[%s11481_s0 + $0x1b8] sm:$0xff] }
  0x31   :  { %6550 = vmatprep.mubr.msk.f32.mxu0 %vm162_vm0, %v43_v54  ;;  %6649 = vmatprep.mubr.msk.f32.mxu1 %vm162_vm0, %v109_v63  ;;  %v136_v54 = vld [vmem:[%s11481_s0 + $0x388] sm:$0xff]  ;;  %v79_v63 = vld [vmem:[%s11481_s0 + $0x1c0] sm:$0xff] }
  0x32   :  { %7153 = vmatprep.subr.bf16.mxu1 %v7679_v52 }
  0x34   :  { %6551 = vmatmul.mubr.msk.f32.gmra.mrb[20].mxu0 %vm162_vm0, %v44_v56  ;;  %6650 = vmatmul.mubr.msk.f32.gmra.mrb[20].mxu1 %vm162_vm0, %v110_v1  ;;  %v137_v56 = vld [vmem:[%s11481_s0 + $0x390] sm:$0xff]  ;;  %v80_v1 = vld [vmem:[%s11481_s0 + $0x1c8] sm:$0xff] }
  0x35   :  { %6553 = vmatprep.mubr.msk.f32.mxu0 %vm162_vm0, %v45_v58  ;;  %6652 = vmatprep.mubr.msk.f32.mxu1 %vm162_vm0, %v111_v3  ;;  %v138_v58 = vld [vmem:[%s11481_s0 + $0x398] sm:$0xff]  ;;  %v81_v3 = vld [vmem:[%s11481_s0 + $0x1d0] sm:$0xff] }
  0x38   :  { %6554 = vmatmul.mubr.msk.f32.gmra.mrb[22].mxu0 %vm162_vm0, %v46_v60  ;;  %6653 = vmatmul.mubr.msk.f32.gmra.mrb[22].mxu1 %vm162_vm0, %v112_v5  ;;  %v139_v60 = vld [vmem:[%s11481_s0 + $0x3a0] sm:$0xff]  ;;  %v82_v5 = vld [vmem:[%s11481_s0 + $0x1d8] sm:$0xff] }
  0x39   :  { %6556 = vmatprep.mubr.msk.f32.mxu0 %vm162_vm0, %v47_v62  ;;  %6655 = vmatprep.mubr.msk.f32.mxu1 %vm162_vm0, %v113_v7  ;;  %v140_v62 = vld [vmem:[%s11481_s0 + $0x3a8] sm:$0xff]  ;;  %v83_v7 = vld [vmem:[%s11481_s0 + $0x1e0] sm:$0xff] }
  0x3c   :  { %6557 = vmatmul.mubr.msk.f32.gmra.mrb[24].mxu0 %vm162_vm0, %v48_v0  ;;  %6656 = vmatmul.mubr.msk.f32.gmra.mrb[24].mxu1 %vm162_vm0, %v114_v9  ;;  %v141_v0 = vld [vmem:[%s11481_s0 + $0x3b0] sm:$0xff]  ;;  %v84_v9 = vld [vmem:[%s11481_s0 + $0x1e8] sm:$0xff] }
  0x3d   :  { %6559 = vmatprep.mubr.msk.f32.mxu0 %vm162_vm0, %v49_v2  ;;  %6658 = vmatprep.mubr.msk.f32.mxu1 %vm162_vm0, %v115_v11  ;;  %v142_v2 = vld [vmem:[%s11481_s0 + $0x3b8] sm:$0xff]  ;;  %v85_v11 = vld [vmem:[%s11481_s0 + $0x1f0] sm:$0xff] }
  0x40   :  { %6560 = vmatmul.mubr.msk.f32.gmra.mrb[26].mxu0 %vm162_vm0, %v50_v4  ;;  %6659 = vmatmul.mubr.msk.f32.gmra.mrb[26].mxu1 %vm162_vm0, %v116_v13  ;;  %v143_v4 = vld [vmem:[%s11481_s0 + $0x3c0] sm:$0xff]  ;;  %v86_v13 = vld [vmem:[%s11481_s0 + $0x1f8] sm:$0xff] }
  0x41   :  { %6562 = vmatprep.mubr.msk.f32.mxu0 %vm162_vm0, %v51_v6  ;;  %6661 = vmatprep.mubr.msk.f32.mxu1 %vm162_vm0, %v117_v15  ;;  %v144_v6 = vld [vmem:[%s11481_s0 + $0x3c8] sm:$0xff]  ;;  %v87_v15 = vld [vmem:[%s11481_s0 + $0x200] sm:$0xff] }
  0x44   :  { %6563 = vmatmul.mubr.msk.f32.gmra.mrb[28].mxu0 %vm162_vm0, %v52_v8  ;;  %6662 = vmatmul.mubr.msk.f32.gmra.mrb[28].mxu1 %vm162_vm0, %v118_v17  ;;  %v145_v8 = vld [vmem:[%s11481_s0 + $0x3d0] sm:$0xff]  ;;  %v88_v17 = vld [vmem:[%s11481_s0 + $0x208] sm:$0xff] }
  0x45   :  { %6565 = vmatprep.mubr.msk.f32.mxu0 %vm162_vm0, %v53_v10  ;;  %6664 = vmatprep.mubr.msk.f32.mxu1 %vm162_vm0, %v119_v19  ;;  %v146_v10 = vld [vmem:[%s11481_s0 + $0x3d8] sm:$0xff]  ;;  %v8269_v19 = vld [vmem:[%s11483_s2] ss:$0 sm:$0xff] }
  0x48   :  { %6566 = vmatmul.mubr.msk.f32.gmra.mrb[30].mxu0 %vm162_vm0, %v54_v12  ;;  %6665 = vmatmul.mubr.msk.f32.gmra.mrb[30].mxu1 %vm162_vm0, %v120_v21  ;;  %v147_v12 = vld [vmem:[%s11481_s0 + $0x3e0] sm:$0xff]  ;;  %v2486_v21 = vld [vmem:[%s11484_s5 + $0x8] sm:$0x3] }
  0x49   :  { %6568 = vmatprep.mubr.msk.f32.mxu0 %vm162_vm0, %v55_v14  ;;  %6667 = vmatprep.mubr.msk.f32.mxu1 %vm162_vm0, %v121_v23  ;;  %v148_v14 = vld [vmem:[%s11481_s0 + $0x3e8] sm:$0xff] }
  0x4c   :  { %6569 = vmatmul.mubr.msk.f32.gmra.mrb[32].mxu0 %vm162_vm0, %v56_v16  ;;  %6668 = vmatmul.mubr.msk.f32.gmra.mrb[32].mxu1 %vm162_vm0, %v122_v25  ;;  %v149_v16 = vld [vmem:[%s11481_s0 + $0x3f0] sm:$0xff] }
  0x4d   :  { %6571 = vmatprep.mubr.msk.f32.mxu0 %vm162_vm0, %v57_v18  ;;  %6670 = vmatprep.mubr.msk.f32.mxu1 %vm162_vm0, %v123_v27  ;;  %v150_v18 = vld [vmem:[%s11481_s0 + $0x3f8] sm:$0xff] }
  0x50   :  { %6572 = vmatmul.mubr.msk.f32.gmra.mrb[34].mxu0 %vm162_vm0, %v58_v20  ;;  %6671 = vmatmul.mubr.msk.f32.gmra.mrb[34].mxu1 %vm162_vm0, %v124_v29  ;;  %v2485_v20 = vld [vmem:[%s11484_s5] sm:$0xff] }
  0x51   :  { %6574 = vmatprep.mubr.msk.f32.mxu0 %vm162_vm0, %v59_v22  ;;  %6673 = vmatprep.mubr.msk.f32.mxu1 %vm162_vm0, %v125_v31  ;;  %v3583_v23 = vmul.f32 %v2485_v20, %v2485_v20  ;;  %v7147_v31 = vpack.c.bf16 %v2486_v21, %v2485_v20 }
  0x53   :  { %7149 = vmatprep.subr.msk.bf16.mxu0 %vm7148_vm3, %v7147_v31 }
  0x54   :  { %6575 = vmatmul.mubr.msk.f32.gmra.mrb[36].mxu0 %vm162_vm0, %v60_v24  ;;  %6674 = vmatmul.mubr.msk.f32.gmra.mrb[36].mxu1 %vm162_vm0, %v126_v33  ;;  %v3584_v24 = vmul.f32 %v2486_v21, %v2486_v21 }
  0x55   :  { %6577 = vmatprep.mubr.msk.f32.mxu0 %vm162_vm0, %v61_v26  ;;  %6676 = vmatprep.mubr.msk.f32.mxu1 %vm162_vm0, %v127_v35 }
  0x56   :  { %7152 = vmatpush3.bf16.xpose.msk.msra.mxu0 %vm7148_vm3, %v7147_v31 }
  0x58   :  { %6578 = vmatmul.mubr.msk.f32.gmra.mrb[38].mxu0 %vm162_vm0, %v62_v28  ;;  %6677 = vmatmul.mubr.msk.f32.gmra.mrb[38].mxu1 %vm162_vm0, %v128_v37 }
  0x59   :  { %6580 = vmatprep.mubr.msk.f32.mxu0 %vm162_vm0, %v63_v30  ;;  %6679 = vmatprep.mubr.msk.f32.mxu1 %vm162_vm0, %v129_v39  ;;  %v7154_v30 = vpack.c.bf16 %v3584_v24, %v3583_v23 }
  0x5c   :  { %6581 = vmatmul.mubr.msk.f32.gmra.mrb[40].mxu0 %vm162_vm0, %v64_v32  ;;  %6680 = vmatmul.mubr.msk.f32.gmra.mrb[40].mxu1 %vm162_vm0, %v130_v41 }
  0x5d   :  { %6583 = vmatprep.mubr.msk.f32.mxu0 %vm162_vm0, %v65_v34  ;;  %6682 = vmatprep.mubr.msk.f32.mxu1 %vm162_vm0, %v131_v43 }
  0x60   :  { %6584 = vmatmul.mubr.msk.f32.gmra.mrb[42].mxu0 %vm162_vm0, %v66_v36  ;;  %6683 = vmatmul.mubr.msk.f32.gmra.mrb[42].mxu1 %vm162_vm0, %v132_v45 }
  0x61   :  { %6586 = vmatprep.mubr.msk.f32.mxu0 %vm162_vm0, %v67_v38  ;;  %6685 = vmatprep.mubr.msk.f32.mxu1 %vm162_vm0, %v133_v47 }
  0x64   :  { %6587 = vmatmul.mubr.msk.f32.gmra.mrb[44].mxu0 %vm162_vm0, %v68_v40  ;;  %6686 = vmatmul.mubr.msk.f32.gmra.mrb[44].mxu1 %vm162_vm0, %v134_v49 }
  0x65   :  { %6589 = vmatprep.mubr.msk.f32.mxu0 %vm162_vm0, %v69_v42  ;;  %6688 = vmatprep.mubr.msk.f32.mxu1 %vm162_vm0, %v135_v51 }
  0x68   :  { %6590 = vmatmul.mubr.msk.f32.gmra.mrb[46].mxu0 %vm162_vm0, %v70_v44  ;;  %6689 = vmatmul.mubr.msk.f32.gmra.mrb[46].mxu1 %vm162_vm0, %v136_v54 }
  0x69   :  { %6592 = vmatprep.mubr.msk.f32.mxu0 %vm162_vm0, %v71_v46  ;;  %6691 = vmatprep.mubr.msk.f32.mxu1 %vm162_vm0, %v137_v56 }
  0x6c   :  { %6593 = vmatmul.mubr.msk.f32.gmra.mrb[48].mxu0 %vm162_vm0, %v72_v48  ;;  %6692 = vmatmul.mubr.msk.f32.gmra.mrb[48].mxu1 %vm162_vm0, %v138_v58 }
  0x6d   :  { %6595 = vmatprep.mubr.msk.f32.mxu0 %vm162_vm0, %v73_v50  ;;  %6694 = vmatprep.mubr.msk.f32.mxu1 %vm162_vm0, %v139_v60 }
  0x70   :  { %6596 = vmatmul.mubr.msk.f32.gmra.mrb[50].mxu0 %vm162_vm0, %v74_v53  ;;  %6695 = vmatmul.mubr.msk.f32.gmra.mrb[50].mxu1 %vm162_vm0, %v140_v62 }
  0x71   :  { %6598 = vmatprep.mubr.msk.f32.mxu0 %vm162_vm0, %v75_v55  ;;  %6697 = vmatprep.mubr.msk.f32.mxu1 %vm162_vm0, %v141_v0 }
  0x74   :  { %6599 = vmatmul.mubr.msk.f32.gmra.mrb[52].mxu0 %vm162_vm0, %v76_v57  ;;  %6698 = vmatmul.mubr.msk.f32.gmra.mrb[52].mxu1 %vm162_vm0, %v142_v2 }
  0x75   :  { %6601 = vmatprep.mubr.msk.f32.mxu0 %vm162_vm0, %v77_v59  ;;  %6700 = vmatprep.mubr.msk.f32.mxu1 %vm162_vm0, %v143_v4 }
  0x78   :  { %6602 = vmatmul.mubr.msk.f32.gmra.mrb[54].mxu0 %vm162_vm0, %v78_v61  ;;  %6701 = vmatmul.mubr.msk.f32.gmra.mrb[54].mxu1 %vm162_vm0, %v144_v6 }
  0x79   :  { %6604 = vmatprep.mubr.msk.f32.mxu0 %vm162_vm0, %v79_v63  ;;  %6703 = vmatprep.mubr.msk.f32.mxu1 %vm162_vm0, %v145_v8 }
  0x7c   :  { %6605 = vmatmul.mubr.msk.f32.gmra.mrb[56].mxu0 %vm162_vm0, %v80_v1  ;;  %6704 = vmatmul.mubr.msk.f32.gmra.mrb[56].mxu1 %vm162_vm0, %v146_v10 }
  0x7d   :  { %6607 = vmatprep.mubr.msk.f32.mxu0 %vm162_vm0, %v81_v3  ;;  %6706 = vmatprep.mubr.msk.f32.mxu1 %vm162_vm0, %v147_v12 }
  0x80   :  { %6608 = vmatmul.mubr.msk.f32.gmra.mrb[58].mxu0 %vm162_vm0, %v82_v5  ;;  %6707 = vmatmul.mubr.msk.f32.gmra.mrb[58].mxu1 %vm162_vm0, %v148_v14 }
  0x81   :  { %6610 = vmatprep.mubr.msk.f32.mxu0 %vm162_vm0, %v83_v7  ;;  %6709 = vmatprep.mubr.msk.f32.mxu1 %vm162_vm0, %v149_v16 }
  0x84   :  { %6611 = vmatmul.mubr.msk.f32.gmra.mrb[60].mxu0 %vm162_vm0, %v84_v9  ;;  %6710 = vmatmul.mubr.msk.f32.gmra.mrb[60].mxu1 %vm162_vm0, %v150_v18 }
  0x85   :  { %6613 = vmatprep.mubr.msk.f32.mxu0 %vm162_vm0, %v85_v11 }
  0x88   :  { %6614 = vmatmul.mubr.msk.f32.gmra.mrb[62].mxu0 %vm162_vm0, %v86_v13 }
  0x89   :  { %6616 = vmatprep.mubr.msk.f32.mxu0 %vm162_vm0, %v87_v15 }
  0x8c   :  { %6617 = vmatmul.mubr.msk.f32.gmra.mrb[64].mxu0 %vm162_vm0, %v88_v17 }
  0xdf   :  { %v6522_v22 = vpop.f32.mrb[0].mxu0  ;;  %v8285_v38 = vpop.f32.mrb[0].mxu1 }
  0xe0   :  { %v619_v25 = vadd.f32 %v6522_v22, %v8269_v19  ;;  %v613_v26 = vpop.f32.mrb[1].mxu0  ;;  %v8288_v42 = vpop.f32.mrb[1].mxu1 }
  0xe1   :  { %v614_v27 = vadd.f32 %v8269_v19, %v613_v26 }
  0xe2   :  { %v1253_v32 = vmax.f32 %v619_v25, 0.0 }
  0xe3   :  { %v1252_v28 = vmax.f32 %v614_v27, 0.0  ;;  %v6525_v29 = vpop.f32.mrb[2].mxu0  ;;  %v8293_v46 = vpop.f32.mrb[2].mxu1 }
  0xe4   :  { %v629_v33 = vadd.f32 %v6525_v29, %v8269_v19  ;;  %v623_v34 = vpop.f32.mrb[3].mxu0  ;;  %v8296_v50 = vpop.f32.mrb[3].mxu1 }
  0xe5   :  { %v624_v35 = vadd.f32 %v8269_v19, %v623_v34  ;;  %6728 = vmatprep.mubr.msk.f32.mxu1 %vm1395_vm2, %v1252_v28 }
  0xe6   :  { %6729 = vmatmul.mubr.msk.f32.vlgmr.msra.gmra.mrb[62].mxu1 %vm1395_vm2, %v1253_v32  ;;  %v1255_v39 = vmax.f32 %v629_v33, 0.0 }
  0xe7   :  { %v1254_v36 = vmax.f32 %v624_v35, 0.0  ;;  %7156 = vmatpush3.bf16.xpose.msk.msra.mxu1 %vm7148_vm3, %v7154_v30  ;;  %v6528_v37 = vpop.f32.mrb[4].mxu0  ;;  %v8301_v54 = vpop.f32.mrb[4].mxu1 }
  0xe8   :  { %v639_v40 = vadd.f32 %v6528_v37, %v8269_v19  ;;  %v633_v41 = vpop.f32.mrb[5].mxu0  ;;  %v8304_v58 = vpop.f32.mrb[5].mxu1 }
  0xe9   :  { %v634_v43 = vadd.f32 %v8269_v19, %v633_v41  ;;  %6731 = vmatprep.mubr.msk.f32.mxu1 %vm1395_vm2, %v1254_v36 }
  0xea   :  { %6732 = vmatmul.mubr.msk.f32.gmra.mrb[64].mxu1 %vm1395_vm2, %v1255_v39  ;;  %v1257_v47 = vmax.f32 %v639_v40, 0.0 }
  0xeb   :  { %v1256_v44 = vmax.f32 %v634_v43, 0.0  ;;  %v6531_v45 = vpop.f32.mrb[6].mxu0  ;;  %v8309_v62 = vpop.f32.mrb[6].mxu1 }
  0xec   :  { %v649_v48 = vadd.f32 %v6531_v45, %v8269_v19  ;;  %v643_v49 = vpop.f32.mrb[7].mxu0  ;;  %v8312_v2 = vpop.f32.mrb[7].mxu1 }
  0xed   :  { %v644_v51 = vadd.f32 %v8269_v19, %v643_v49  ;;  %6734 = vmatprep.mubr.msk.f32.mxu1 %vm1395_vm2, %v1256_v44 }
  0xee   :  { %6735 = vmatmul.mubr.msk.f32.gmra.mrb[66].mxu1 %vm1395_vm2, %v1257_v47  ;;  %v1259_v55 = vmax.f32 %v649_v48, 0.0 }
  0xef   :  { %v1258_v52 = vmax.f32 %v644_v51, 0.0  ;;  %v6534_v53 = vpop.f32.mrb[8].mxu0  ;;  %v8317_v6 = vpop.f32.mrb[8].mxu1 }
  0xf0   :  { %v659_v56 = vadd.f32 %v6534_v53, %v8269_v19  ;;  %v653_v57 = vpop.f32.mrb[9].mxu0  ;;  %v8320_v10 = vpop.f32.mrb[9].mxu1 }
  0xf1   :  { %v654_v59 = vadd.f32 %v8269_v19, %v653_v57  ;;  %6737 = vmatprep.mubr.msk.f32.mxu1 %vm1395_vm2, %v1258_v52 }
  0xf2   :  { %6738 = vmatmul.mubr.msk.f32.gmra.mrb[68].mxu1 %vm1395_vm2, %v1259_v55  ;;  %v1261_v63 = vmax.f32 %v659_v56, 0.0 }
  0xf3   :  { %v1260_v60 = vmax.f32 %v654_v59, 0.0  ;;  %v6537_v61 = vpop.f32.mrb[10].mxu0  ;;  %v8325_v14 = vpop.f32.mrb[10].mxu1 }
  0xf4   :  { %v669_v0 = vadd.f32 %v6537_v61, %v8269_v19  ;;  %v663_v1 = vpop.f32.mrb[11].mxu0  ;;  %v8328_v18 = vpop.f32.mrb[11].mxu1 }
  0xf5   :  { %v664_v3 = vadd.f32 %v8269_v19, %v663_v1  ;;  %6740 = vmatprep.mubr.msk.f32.mxu1 %vm1395_vm2, %v1260_v60 }
  0xf6   :  { %6741 = vmatmul.mubr.msk.f32.gmra.mrb[70].mxu1 %vm1395_vm2, %v1261_v63  ;;  %v1263_v7 = vmax.f32 %v669_v0, 0.0 }
  0xf7   :  { %v1262_v4 = vmax.f32 %v664_v3, 0.0  ;;  %v6540_v5 = vpop.f32.mrb[12].mxu0  ;;  %v8333_v23 = vpop.f32.mrb[12].mxu1 }
  0xf8   :  { %v679_v8 = vadd.f32 %v6540_v5, %v8269_v19  ;;  %v673_v9 = vpop.f32.mrb[13].mxu0  ;;  %v8336_v27 = vpop.f32.mrb[13].mxu1 }
  0xf9   :  { %v674_v11 = vadd.f32 %v8269_v19, %v673_v9  ;;  %6743 = vmatprep.mubr.msk.f32.mxu1 %vm1395_vm2, %v1262_v4 }
  0xfa   :  { %6744 = vmatmul.mubr.msk.f32.gmra.mrb[72].mxu1 %vm1395_vm2, %v1263_v7  ;;  %v1265_v15 = vmax.f32 %v679_v8, 0.0 }
  0xfb   :  { %v1264_v12 = vmax.f32 %v674_v11, 0.0  ;;  %v6543_v13 = vpop.f32.mrb[14].mxu0  ;;  %v8341_v31 = vpop.f32.mrb[14].mxu1 }
  0xfc   :  { %v689_v16 = vadd.f32 %v6543_v13, %v8269_v19  ;;  %v683_v17 = vpop.f32.mrb[15].mxu0  ;;  %v8344_v35 = vpop.f32.mrb[15].mxu1 }
  0xfd   :  { %v684_v20 = vadd.f32 %v8269_v19, %v683_v17  ;;  %6746 = vmatprep.mubr.msk.f32.mxu1 %vm1395_vm2, %v1264_v12 }
  0xfe   :  { %6747 = vmatmul.mubr.msk.f32.gmra.mrb[74].mxu1 %vm1395_vm2, %v1265_v15  ;;  %v1267_v24 = vmax.f32 %v689_v16, 0.0 }
  0xff   :  { %v1266_v21 = vmax.f32 %v684_v20, 0.0  ;;  %v6546_v22 = vpop.f32.mrb[16].mxu0  ;;  %v8349_v40 = vpop.f32.mrb[16].mxu1 }
 0x100   :  { %v699_v25 = vadd.f32 %v6546_v22, %v8269_v19  ;;  %v693_v26 = vpop.f32.mrb[17].mxu0  ;;  %v8352_v45 = vpop.f32.mrb[17].mxu1 }
 0x101   :  { %v694_v28 = vadd.f32 %v8269_v19, %v693_v26  ;;  %6749 = vmatprep.mubr.msk.f32.mxu1 %vm1395_vm2, %v1266_v21 }
 0x102   :  { %6750 = vmatmul.mubr.msk.f32.gmra.mrb[76].mxu1 %vm1395_vm2, %v1267_v24  ;;  %v1269_v32 = vmax.f32 %v699_v25, 0.0 }
 0x103   :  { %v1268_v29 = vmax.f32 %v694_v28, 0.0  ;;  %v6549_v30 = vpop.f32.mrb[18].mxu0  ;;  %v8357_v51 = vpop.f32.mrb[18].mxu1 }
 0x104   :  { %v709_v33 = vadd.f32 %v6549_v30, %v8269_v19  ;;  %v703_v34 = vpop.f32.mrb[19].mxu0  ;;  %v8360_v56 = vpop.f32.mrb[19].mxu1 }
 0x105   :  { %v704_v36 = vadd.f32 %v8269_v19, %v703_v34  ;;  %6752 = vmatprep.mubr.msk.f32.mxu1 %vm1395_vm2, %v1268_v29 }
 0x106   :  { %6753 = vmatmul.mubr.msk.f32.gmra.mrb[78].mxu1 %vm1395_vm2, %v1269_v32  ;;  %v1271_v41 = vmax.f32 %v709_v33, 0.0 }
 0x107   :  { %v1270_v37 = vmax.f32 %v704_v36, 0.0  ;;  %v6552_v39 = vpop.f32.mrb[20].mxu0  ;;  %v8365_v61 = vpop.f32.mrb[20].mxu1 }
 0x108   :  { %v719_v43 = vadd.f32 %v6552_v39, %v8269_v19  ;;  %v713_v44 = vpop.f32.mrb[21].mxu0  ;;  %v8368_v3 = vpop.f32.mrb[21].mxu1 }
 0x109   :  { %v714_v47 = vadd.f32 %v8269_v19, %v713_v44  ;;  %6755 = vmatprep.mubr.msk.f32.mxu1 %vm1395_vm2, %v1270_v37 }
 0x10a   :  { %6756 = vmatmul.mubr.msk.f32.gmra.mrb[80].mxu1 %vm1395_vm2, %v1271_v41  ;;  %v1273_v52 = vmax.f32 %v719_v43, 0.0 }
 0x10b   :  { %v1272_v48 = vmax.f32 %v714_v47, 0.0  ;;  %v6555_v49 = vpop.f32.mrb[22].mxu0  ;;  %v8373_v8 = vpop.f32.mrb[22].mxu1 }
 0x10c   :  { %v729_v53 = vadd.f32 %v6555_v49, %v8269_v19  ;;  %v723_v55 = vpop.f32.mrb[23].mxu0  ;;  %v8376_v13 = vpop.f32.mrb[23].mxu1 }
 0x10d   :  { %v724_v57 = vadd.f32 %v8269_v19, %v723_v55  ;;  %6758 = vmatprep.mubr.msk.f32.mxu1 %vm1395_vm2, %v1272_v48 }
 0x10e   :  { %6759 = vmatmul.mubr.msk.f32.gmra.mrb[82].mxu1 %vm1395_vm2, %v1273_v52  ;;  %v1275_v63 = vmax.f32 %v729_v53, 0.0 }
 0x10f   :  { %v1274_v59 = vmax.f32 %v724_v57, 0.0  ;;  %v6558_v60 = vpop.f32.mrb[24].mxu0  ;;  %v8381_v20 = vpop.f32.mrb[24].mxu1 }
 0x110   :  { %v739_v0 = vadd.f32 %v6558_v60, %v8269_v19  ;;  %v733_v1 = vpop.f32.mrb[25].mxu0  ;;  %v8384_v25 = vpop.f32.mrb[25].mxu1 }
 0x111   :  { %v734_v4 = vadd.f32 %v8269_v19, %v733_v1  ;;  %6761 = vmatprep.mubr.msk.f32.mxu1 %vm1395_vm2, %v1274_v59 }
 0x112   :  { %6762 = vmatmul.mubr.msk.f32.gmra.mrb[84].mxu1 %vm1395_vm2, %v1275_v63  ;;  %v1277_v9 = vmax.f32 %v739_v0, 0.0 }
 0x113   :  { %v1276_v5 = vmax.f32 %v734_v4, 0.0  ;;  %v6561_v7 = vpop.f32.mrb[26].mxu0  ;;  %v8389_v30 = vpop.f32.mrb[26].mxu1 }
 0x114   :  { %v749_v11 = vadd.f32 %v6561_v7, %v8269_v19  ;;  %v743_v12 = vpop.f32.mrb[27].mxu0  ;;  %v8392_v36 = vpop.f32.mrb[27].mxu1 }
 0x115   :  { %v744_v15 = vadd.f32 %v8269_v19, %v743_v12  ;;  %6764 = vmatprep.mubr.msk.f32.mxu1 %vm1395_vm2, %v1276_v5 }
 0x116   :  { %6765 = vmatmul.mubr.msk.f32.gmra.mrb[86].mxu1 %vm1395_vm2, %v1277_v9  ;;  %v1279_v21 = vmax.f32 %v749_v11, 0.0 }
 0x117   :  { %v1278_v16 = vmax.f32 %v744_v15, 0.0  ;;  %v6564_v17 = vpop.f32.mrb[28].mxu0  ;;  %v8397_v43 = vpop.f32.mrb[28].mxu1 }
 0x118   :  { %v759_v22 = vadd.f32 %v6564_v17, %v8269_v19  ;;  %v753_v24 = vpop.f32.mrb[29].mxu0  ;;  %v8400_v49 = vpop.f32.mrb[29].mxu1 }
 0x119   :  { %v754_v26 = vadd.f32 %v8269_v19, %v753_v24  ;;  %6767 = vmatprep.mubr.msk.f32.mxu1 %vm1395_vm2, %v1278_v16 }
 0x11a   :  { %6768 = vmatmul.mubr.msk.f32.gmra.mrb[88].mxu1 %vm1395_vm2, %v1279_v21  ;;  %v1281_v32 = vmax.f32 %v759_v22, 0.0 }
 0x11b   :  { %v1280_v28 = vmax.f32 %v754_v26, 0.0  ;;  %v6567_v29 = vpop.f32.mrb[30].mxu0  ;;  %v8405_v57 = vpop.f32.mrb[30].mxu1 }
 0x11c   :  { %v769_v33 = vadd.f32 %v6567_v29, %v8269_v19  ;;  %v763_v34 = vpop.f32.mrb[31].mxu0  ;;  %v8408_v0 = vpop.f32.mrb[31].mxu1 }
 0x11d   :  { %v764_v37 = vadd.f32 %v8269_v19, %v763_v34  ;;  %6770 = vmatprep.mubr.msk.f32.mxu1 %vm1395_vm2, %v1280_v28 }
 0x11e   :  { %6771 = vmatmul.mubr.msk.f32.gmra.mrb[90].mxu1 %vm1395_vm2, %v1281_v32  ;;  %v1283_v44 = vmax.f32 %v769_v33, 0.0 }
 0x11f   :  { %v1282_v39 = vmax.f32 %v764_v37, 0.0  ;;  %v6570_v41 = vpop.f32.mrb[32].mxu0  ;;  %v8413_v7 = vpop.f32.mrb[32].mxu1 }
 0x120   :  { %v779_v47 = vadd.f32 %v6570_v41, %v8269_v19  ;;  %v773_v48 = vpop.f32.mrb[33].mxu0  ;;  %v8416_v15 = vpop.f32.mrb[33].mxu1 }
 0x121   :  { %v774_v52 = vadd.f32 %v8269_v19, %v773_v48  ;;  %6773 = vmatprep.mubr.msk.f32.mxu1 %vm1395_vm2, %v1282_v39 }
 0x122   :  { %6774 = vmatmul.mubr.msk.f32.gmra.mrb[92].mxu1 %vm1395_vm2, %v1283_v44  ;;  %v1285_v59 = vmax.f32 %v779_v47, 0.0 }
 0x123   :  { %v1284_v53 = vmax.f32 %v774_v52, 0.0  ;;  %v6573_v55 = vpop.f32.mrb[34].mxu0  ;;  %v8421_v22 = vpop.f32.mrb[34].mxu1 }
 0x124   :  { %v789_v60 = vadd.f32 %v6573_v55, %v8269_v19  ;;  %v783_v63 = vpop.f32.mrb[35].mxu0  ;;  %v8424_v29 = vpop.f32.mrb[35].mxu1 }
 0x125   :  { %v784_v1 = vadd.f32 %v8269_v19, %v783_v63  ;;  %6776 = vmatprep.mubr.msk.f32.mxu1 %vm1395_vm2, %v1284_v53 }
 0x126   :  { %6777 = vmatmul.mubr.msk.f32.gmra.mrb[94].mxu1 %vm1395_vm2, %v1285_v59  ;;  %v1287_v9 = vmax.f32 %v789_v60, 0.0 }
 0x127   :  { %v1286_v4 = vmax.f32 %v784_v1, 0.0  ;;  %v6576_v5 = vpop.f32.mrb[36].mxu0  ;;  %v8429_v37 = vpop.f32.mrb[36].mxu1 }
 0x128   :  { %v799_v11 = vadd.f32 %v6576_v5, %v8269_v19  ;;  %v793_v12 = vpop.f32.mrb[37].mxu0  ;;  %v8432_v47 = vpop.f32.mrb[37].mxu1 }
 0x129   :  { %v794_v16 = vadd.f32 %v8269_v19, %v793_v12  ;;  %6779 = vmatprep.mubr.msk.f32.mxu1 %vm1395_vm2, %v1286_v4 }
 0x12a   :  { %6780 = vmatmul.mubr.msk.f32.gmra.mrb[96].mxu1 %vm1395_vm2, %v1287_v9  ;;  %v1289_v24 = vmax.f32 %v799_v11, 0.0 }
 0x12b   :  { %v1288_v17 = vmax.f32 %v794_v16, 0.0  ;;  %v6579_v21 = vpop.f32.mrb[38].mxu0  ;;  %v8437_v55 = vpop.f32.mrb[38].mxu1 }
 0x12c   :  { %v809_v26 = vadd.f32 %v6579_v21, %v8269_v19  ;;  %v803_v28 = vpop.f32.mrb[39].mxu0  ;;  %v8440_v1 = vpop.f32.mrb[39].mxu1 }
 0x12d   :  { %v804_v32 = vadd.f32 %v8269_v19, %v803_v28  ;;  %6782 = vmatprep.mubr.msk.f32.mxu1 %vm1395_vm2, %v1288_v17 }
 0x12e   :  { %6783 = vmatmul.mubr.msk.f32.gmra.mrb[98].mxu1 %vm1395_vm2, %v1289_v24  ;;  %v1291_v39 = vmax.f32 %v809_v26, 0.0 }
 0x12f   :  { %v1290_v33 = vmax.f32 %v804_v32, 0.0  ;;  %v6582_v34 = vpop.f32.mrb[40].mxu0  ;;  %v8445_v11 = vpop.f32.mrb[40].mxu1 }
 0x130   :  { %v819_v41 = vadd.f32 %v6582_v34, %v8269_v19  ;;  %v813_v44 = vpop.f32.mrb[41].mxu0  ;;  %v8448_v21 = vpop.f32.mrb[41].mxu1 }
 0x131   :  { %v814_v48 = vadd.f32 %v8269_v19, %v813_v44  ;;  %6785 = vmatprep.mubr.msk.f32.mxu1 %vm1395_vm2, %v1290_v33 }
 0x132   :  { %6786 = vmatmul.mubr.msk.f32.gmra.mrb[100].mxu1 %vm1395_vm2, %v1291_v39  ;;  %v1293_v59 = vmax.f32 %v819_v41, 0.0 }
 0x133   :  { %v1292_v52 = vmax.f32 %v814_v48, 0.0  ;;  %v6585_v53 = vpop.f32.mrb[42].mxu0  ;;  %v8453_v32 = vpop.f32.mrb[42].mxu1 }
 0x134   :  { %v829_v60 = vadd.f32 %v6585_v53, %v8269_v19  ;;  %v823_v63 = vpop.f32.mrb[43].mxu0  ;;  %v8456_v41 = vpop.f32.mrb[43].mxu1 }
 0x135   :  { %v824_v4 = vadd.f32 %v8269_v19, %v823_v63  ;;  %6788 = vmatprep.mubr.msk.f32.mxu1 %vm1395_vm2, %v1292_v52 }
 0x136   :  { %6789 = vmatmul.mubr.msk.f32.gmra.mrb[102].mxu1 %vm1395_vm2, %v1293_v59  ;;  %v1295_v12 = vmax.f32 %v829_v60, 0.0 }
 0x137   :  { %v1294_v5 = vmax.f32 %v824_v4, 0.0  ;;  %v6588_v9 = vpop.f32.mrb[44].mxu0  ;;  %v8461_v53 = vpop.f32.mrb[44].mxu1 }
 0x138   :  { %v839_v16 = vadd.f32 %v6588_v9, %v8269_v19  ;;  %v833_v17 = vpop.f32.mrb[45].mxu0  ;;  %v8464_v4 = vpop.f32.mrb[45].mxu1 }
 0x139   :  { %v834_v24 = vadd.f32 %v8269_v19, %v833_v17  ;;  %6791 = vmatprep.mubr.msk.f32.mxu1 %vm1395_vm2, %v1294_v5 }
 0x13a   :  { %6792 = vmatmul.mubr.msk.f32.gmra.mrb[104].mxu1 %vm1395_vm2, %v1295_v12  ;;  %v1297_v33 = vmax.f32 %v839_v16, 0.0 }
 0x13b   :  { %v1296_v26 = vmax.f32 %v834_v24, 0.0  ;;  %v6591_v28 = vpop.f32.mrb[46].mxu0  ;;  %v8469_v16 = vpop.f32.mrb[46].mxu1 }
 0x13c   :  { %v849_v34 = vadd.f32 %v6591_v28, %v8269_v19  ;;  %v843_v39 = vpop.f32.mrb[47].mxu0  ;;  %v8472_v28 = vpop.f32.mrb[47].mxu1 }
 0x13d   :  { %v844_v44 = vadd.f32 %v8269_v19, %v843_v39  ;;  %6794 = vmatprep.mubr.msk.f32.mxu1 %vm1395_vm2, %v1296_v26 }
 0x13e   :  { %6795 = vmatmul.mubr.msk.f32.gmra.mrb[106].mxu1 %vm1395_vm2, %v1297_v33  ;;  %v1299_v59 = vmax.f32 %v849_v34, 0.0 }
 0x13f   :  { %v1298_v48 = vmax.f32 %v844_v44, 0.0  ;;  %v6594_v52 = vpop.f32.mrb[48].mxu0  ;;  %v8477_v44 = vpop.f32.mrb[48].mxu1 }
 0x140   :  { %v859_v60 = vadd.f32 %v6594_v52, %v8269_v19  ;;  %v853_v63 = vpop.f32.mrb[49].mxu0  ;;  %11574 = vst [vmem:[#allocation2_spill] sm:$0xff] %v8477_v44 }
 0x141   :  { %v854_v5 = vadd.f32 %v8269_v19, %v853_v63  ;;  %6797 = vmatprep.mubr.msk.f32.mxu1 %vm1395_vm2, %v1298_v48 }
 0x142   :  { %6798 = vmatmul.mubr.msk.f32.gmra.mrb[108].mxu1 %vm1395_vm2, %v1299_v59  ;;  %v1301_v17 = vmax.f32 %v859_v60, 0.0  ;;  %v8480_v60 = vpop.f32.mrb[49].mxu1 }
 0x143   :  { %v1300_v9 = vmax.f32 %v854_v5, 0.0  ;;  %v6597_v12 = vpop.f32.mrb[50].mxu0 }
 0x144   :  { %v869_v24 = vadd.f32 %v6597_v12, %v8269_v19  ;;  %v863_v26 = vpop.f32.mrb[51].mxu0  ;;  %v8485_v12 = vpop.f32.mrb[50].mxu1 }
 0x145   :  { %v864_v33 = vadd.f32 %v8269_v19, %v863_v26  ;;  %6800 = vmatprep.mubr.msk.f32.mxu1 %vm1395_vm2, %v1300_v9  ;;  %11575 = vst [vmem:[#allocation3_spill] sm:$0xff] %v8485_v12 }
 0x146   :  { %6801 = vmatmul.mubr.msk.f32.gmra.mrb[110].mxu1 %vm1395_vm2, %v1301_v17  ;;  %v1303_v48 = vmax.f32 %v869_v24, 0.0  ;;  %v8488_v24 = vpop.f32.mrb[51].mxu1 }
 0x147   :  { %v1302_v34 = vmax.f32 %v864_v33, 0.0  ;;  %v6600_v39 = vpop.f32.mrb[52].mxu0  ;;  %11576 = vst [vmem:[#allocation4_spill] sm:$0xff] %v8488_v24  ;;  %v8493_v44 = vpop.f32.mrb[52].mxu1 }
 0x148   :  { %v879_v52 = vadd.f32 %v6600_v39, %v8269_v19  ;;  %v873_v59 = vpop.f32.mrb[53].mxu0  ;;  %11577 = vst [vmem:[#allocation5_spill] sm:$0xff] %v8493_v44 }
 0x149   :  { %v874_v63 = vadd.f32 %v8269_v19, %v873_v59  ;;  %6803 = vmatprep.mubr.msk.f32.mxu1 %vm1395_vm2, %v1302_v34 }
 0x14a   :  { %6804 = vmatmul.mubr.msk.f32.gmra.mrb[112].mxu1 %vm1395_vm2, %v1303_v48  ;;  %v1305_v17 = vmax.f32 %v879_v52, 0.0  ;;  %v8496_v52 = vpop.f32.mrb[53].mxu1 }
 0x14b   :  { %v1304_v5 = vmax.f32 %v874_v63, 0.0  ;;  %v6603_v9 = vpop.f32.mrb[54].mxu0  ;;  %11578 = vst [vmem:[#allocation6_spill] sm:$0xff] %v8496_v52  ;;  %v8501_v24 = vpop.f32.mrb[54].mxu1 }
 0x14c   :  { %v889_v26 = vadd.f32 %v6603_v9, %v8269_v19  ;;  %v883_v33 = vpop.f32.mrb[55].mxu0  ;;  %11579 = vst [vmem:[#allocation7_spill] sm:$0xff] %v8501_v24 }
 0x14d   :  { %v884_v39 = vadd.f32 %v8269_v19, %v883_v33  ;;  %6806 = vmatprep.mubr.msk.f32.mxu1 %vm1395_vm2, %v1304_v5 }
 0x14e   :  { %6807 = vmatmul.mubr.msk.f32.gmra.mrb[114].mxu1 %vm1395_vm2, %v1305_v17  ;;  %v1307_v48 = vmax.f32 %v889_v26, 0.0  ;;  %v8504_v26 = vpop.f32.mrb[55].mxu1 }
 0x14f   :  { %v1306_v59 = vmax.f32 %v884_v39, 0.0  ;;  %v6606_v34 = vpop.f32.mrb[56].mxu0  ;;  %11580 = vst [vmem:[#allocation8_spill] sm:$0xff] %v8504_v26  ;;  %v8509_v52 = vpop.f32.mrb[56].mxu1 }
 0x150   :  { %v899_v63 = vadd.f32 %v6606_v34, %v8269_v19  ;;  %v893_v12 = vpop.f32.mrb[57].mxu0  ;;  %11581 = vst [vmem:[#allocation9_spill] sm:$0xff] %v8509_v52 }
 0x151   :  { %v894_v9 = vadd.f32 %v8269_v19, %v893_v12  ;;  %6809 = vmatprep.mubr.msk.f32.mxu1 %vm1395_vm2, %v1306_v59 }
 0x152   :  { %6810 = vmatmul.mubr.msk.f32.gmra.mrb[116].mxu1 %vm1395_vm2, %v1307_v48  ;;  %v1309_v17 = vmax.f32 %v899_v63, 0.0  ;;  %v8512_v63 = vpop.f32.mrb[57].mxu1 }
 0x153   :  { %v1308_v33 = vmax.f32 %v894_v9, 0.0  ;;  %v6609_v5 = vpop.f32.mrb[58].mxu0  ;;  %11582 = vst [vmem:[#allocation10_spill] sm:$0xff] %v8512_v63  ;;  %v8517_v26 = vpop.f32.mrb[58].mxu1 }
 0x154   :  { %v909_v39 = vadd.f32 %v6609_v5, %v8269_v19  ;;  %v903_v44 = vpop.f32.mrb[59].mxu0  ;;  %11583 = vst [vmem:[#allocation11_spill] sm:$0xff] %v8517_v26 }
 0x155   :  { %v904_v34 = vadd.f32 %v8269_v19, %v903_v44  ;;  %6812 = vmatprep.mubr.msk.f32.mxu1 %vm1395_vm2, %v1308_v33 }
 0x156   :  { %6813 = vmatmul.mubr.msk.f32.gmra.mrb[118].mxu1 %vm1395_vm2, %v1309_v17  ;;  %v1311_v48 = vmax.f32 %v909_v39, 0.0  ;;  %v8520_v39 = vpop.f32.mrb[59].mxu1 }
 0x157   :  { %v1310_v12 = vmax.f32 %v904_v34, 0.0  ;;  %v6612_v59 = vpop.f32.mrb[60].mxu0  ;;  %11584 = vst [vmem:[#allocation12_spill] sm:$0xff] %v8520_v39  ;;  %v8525_v63 = vpop.f32.mrb[60].mxu1 }
 0x158   :  { %v919_v9 = vadd.f32 %v6612_v59, %v8269_v19  ;;  %v913_v24 = vpop.f32.mrb[61].mxu0 }
 0x159   :  { %v914_v5 = vadd.f32 %v8269_v19, %v913_v24  ;;  %6815 = vmatprep.mubr.msk.f32.mxu1 %vm1395_vm2, %v1310_v12 }
 0x15a   :  { %6816 = vmatmul.mubr.msk.f32.gmra.mrb[120].mxu1 %vm1395_vm2, %v1311_v48  ;;  %v1313_v17 = vmax.f32 %v919_v9, 0.0  ;;  %v8528_v9 = vpop.f32.mrb[61].mxu1 }
 0x15b   :  { %v1312_v44 = vmax.f32 %v914_v5, 0.0  ;;  %v6615_v33 = vpop.f32.mrb[62].mxu0 }
 0x15c   :  { %v929_v34 = vadd.f32 %v6615_v33, %v8269_v19  ;;  %v923_v52 = vpop.f32.mrb[63].mxu0  ;;  %v944_v33 = vadd.f32 %v8269_v19, %v8288_v42 }
 0x15d   :  { %v924_v59 = vadd.f32 %v8269_v19, %v923_v52  ;;  %6818 = vmatprep.mubr.msk.f32.mxu1 %vm1395_vm2, %v1312_v44  ;;  %v949_v44 = vadd.f32 %v8285_v38, %v8269_v19 }
 0x15e   :  { %6819 = vmatmul.mubr.msk.f32.gmra.mrb[122].mxu1 %vm1395_vm2, %v1313_v17  ;;  %v1315_v48 = vmax.f32 %v929_v34, 0.0  ;;  %v1318_v34 = vmax.f32 %v944_v33, 0.0  ;;  %v984_v33 = vadd.f32 %v8269_v19, %v8320_v10  ;;  %v999_v10 = vadd.f32 %v8325_v14, %v8269_v19 }
 0x15f   :  { %v1314_v24 = vmax.f32 %v924_v59, 0.0  ;;  %v6618_v12 = vpop.f32.mrb[64].mxu0  ;;  %v954_v59 = vadd.f32 %v8269_v19, %v8296_v50  ;;  %v1319_v42 = vmax.f32 %v949_v44, 0.0  ;;  %v969_v50 = vadd.f32 %v8301_v54, %v8269_v19 }
 0x160   :  { %v939_v5 = vadd.f32 %v6618_v12, %v8269_v19  ;;  %v933_v26 = vpop.f32.mrb[65].mxu0  ;;  %v994_v44 = vadd.f32 %v8269_v19, %v8328_v18  ;;  %v1009_v18 = vadd.f32 %v8333_v23, %v8269_v19 }
 0x161   :  { %v934_v39 = vadd.f32 %v8269_v19, %v933_v26  ;;  %6821 = vmatprep.mubr.msk.f32.mxu1 %vm1395_vm2, %v1314_v24  ;;  %v959_v26 = vadd.f32 %v8293_v46, %v8269_v19  ;;  %v1320_v24 = vmax.f32 %v954_v59, 0.0  ;;  %v1323_v46 = vmax.f32 %v969_v50, 0.0 }
 0x162   :  { %6822 = vmatmul.mubr.msk.f32.gmra.mrb[124].mxu1 %vm1395_vm2, %v1315_v48  ;;  %v1317_v17 = vmax.f32 %v939_v5, 0.0  ;;  %v974_v48 = vadd.f32 %v8269_v19, %v8312_v2  ;;  %v989_v2 = vadd.f32 %v8317_v6, %v8269_v19  ;;  %v1329_v6 = vmax.f32 %v999_v10, 0.0 }
 0x163   :  { %v1316_v52 = vmax.f32 %v934_v39, 0.0  ;;  %v964_v39 = vadd.f32 %v8269_v19, %v8304_v58  ;;  %v1321_v38 = vmax.f32 %v959_v26, 0.0  ;;  %v979_v58 = vadd.f32 %v8309_v62, %v8269_v19 }
 0x164   :  { %v1324_v5 = vmax.f32 %v974_v48, 0.0  ;;  %v1327_v62 = vmax.f32 %v989_v2, 0.0  ;;  %v1331_v14 = vmax.f32 %v1009_v18, 0.0 }
 0x165   :  { %6824 = vmatprep.mubr.msk.f32.mxu1 %vm1395_vm2, %v1316_v52  ;;  %v1322_v12 = vmax.f32 %v964_v39, 0.0  ;;  %v1325_v54 = vmax.f32 %v979_v58, 0.0  ;;  %v1326_v52 = vmax.f32 %v984_v33, 0.0 }
 0x166   :  { %6825 = vmatmul.mubr.msk.f32.gmra.mrb[126].mxu1 %vm1395_vm2, %v1317_v17  ;;  %v1328_v17 = vmax.f32 %v994_v44, 0.0 }
 0x167   :  { %6827 = vmatprep.mubr.msk.f32.mxu1 %vm1395_vm2, %v1318_v34  ;;  %v1004_v34 = vadd.f32 %v8269_v19, %v8336_v27  ;;  %v1019_v27 = vadd.f32 %v8341_v31, %v8269_v19 }
 0x169   :  { %v1330_v59 = vmax.f32 %v1004_v34, 0.0  ;;  %v1333_v23 = vmax.f32 %v1019_v27, 0.0 }
 0x16a   :  { %6828 = vmatmul.mubr.msk.f32.gmra.mrb[128].mxu1 %vm1395_vm2, %v1319_v42  ;;  %v1014_v42 = vadd.f32 %v8269_v19, %v8344_v35  ;;  %v1029_v35 = vadd.f32 %v8349_v40, %v8269_v19 }
 0x16b   :  { %6830 = vmatprep.mubr.msk.f32.mxu1 %vm1395_vm2, %v1320_v24  ;;  %v1024_v24 = vadd.f32 %v8269_v19, %v8352_v45  ;;  %v1039_v45 = vadd.f32 %v8357_v51, %v8269_v19 }
 0x16c   :  { %v1332_v26 = vmax.f32 %v1014_v42, 0.0  ;;  %v1335_v31 = vmax.f32 %v1029_v35, 0.0  ;;  %v1159_v35 = vadd.f32 %v8453_v32, %v8269_v19 }
 0x16d   :  { %v1334_v39 = vmax.f32 %v1024_v24, 0.0  ;;  %v1337_v40 = vmax.f32 %v1039_v45, 0.0 }
 0x16e   :  { %6831 = vmatmul.mubr.msk.f32.gmra.mrb[130].mxu1 %vm1395_vm2, %v1321_v38  ;;  %v1034_v38 = vadd.f32 %v8269_v19, %v8360_v56  ;;  %v1049_v56 = vadd.f32 %v8365_v61, %v8269_v19 }
 0x16f   :  { %6833 = vmatprep.mubr.msk.f32.mxu1 %vm1395_vm2, %v1322_v12  ;;  %v1044_v12 = vadd.f32 %v8269_v19, %v8368_v3  ;;  %v1059_v3 = vadd.f32 %v8373_v8, %v8269_v19 }
 0x170   :  { %v1336_v50 = vmax.f32 %v1034_v38, 0.0  ;;  %v1339_v51 = vmax.f32 %v1049_v56, 0.0  ;;  %v1174_v56 = vadd.f32 %v8269_v19, %v8472_v28  ;;  %v1179_v28 = vadd.f32 %v8469_v16, %v8269_v19 }
 0x171   :  { %v1338_v48 = vmax.f32 %v1044_v12, 0.0  ;;  %v1341_v61 = vmax.f32 %v1059_v3, 0.0  ;;  %v1169_v12 = vadd.f32 %v8461_v53, %v8269_v19 }
 0x172   :  { %6834 = vmatmul.mubr.msk.f32.gmra.mrb[132].mxu1 %vm1395_vm2, %v1323_v46  ;;  %v1054_v46 = vadd.f32 %v8269_v19, %v8376_v13  ;;  %v1069_v13 = vadd.f32 %v8381_v20, %v8269_v19 }
 0x173   :  { %6836 = vmatprep.mubr.msk.f32.mxu1 %vm1395_vm2, %v1324_v5  ;;  %v1064_v5 = vadd.f32 %v8269_v19, %v8384_v25  ;;  %v1079_v25 = vadd.f32 %v8389_v30, %v8269_v19 }
 0x174   :  { %v1340_v58 = vmax.f32 %v1054_v46, 0.0  ;;  %v1343_v8 = vmax.f32 %v1069_v13, 0.0  ;;  %v1184_v13 = vadd.f32 %v8269_v19, %v8480_v60 }
 0x175   :  { %v1342_v33 = vmax.f32 %v1064_v5, 0.0  ;;  %v1345_v20 = vmax.f32 %v1079_v25, 0.0 }
 0x176   :  { %6837 = vmatmul.mubr.msk.f32.gmra.mrb[134].mxu1 %vm1395_vm2, %v1325_v54  ;;  %v1074_v54 = vadd.f32 %v8269_v19, %v8392_v36  ;;  %v1089_v36 = vadd.f32 %v8397_v43, %v8269_v19 }
 0x177   :  { %6839 = vmatprep.mubr.msk.f32.mxu1 %vm1395_vm2, %v1326_v52  ;;  %v1084_v52 = vadd.f32 %v8269_v19, %v8400_v49  ;;  %v1099_v49 = vadd.f32 %v8405_v57, %v8269_v19 }
 0x178   :  { %v1344_v2 = vmax.f32 %v1074_v54, 0.0  ;;  %v1347_v30 = vmax.f32 %v1089_v36, 0.0 }
 0x179   :  { %v1346_v44 = vmax.f32 %v1084_v52, 0.0  ;;  %v1349_v43 = vmax.f32 %v1099_v49, 0.0  ;;  %v1365_v52 = vmax.f32 %v1179_v28, 0.0 }
 0x17a   :  { %6840 = vmatmul.mubr.msk.f32.gmra.mrb[136].mxu1 %vm1395_vm2, %v1327_v62  ;;  %v1094_v62 = vadd.f32 %v8269_v19, %v8408_v0  ;;  %v1109_v0 = vadd.f32 %v8413_v7, %v8269_v19 }
 0x17b   :  { %6842 = vmatprep.mubr.msk.f32.mxu1 %vm1395_vm2, %v1328_v17  ;;  %v1104_v17 = vadd.f32 %v8269_v19, %v8416_v15  ;;  %v1119_v15 = vadd.f32 %v8421_v22, %v8269_v19 }
 0x17c   :  { %v1348_v10 = vmax.f32 %v1094_v62, 0.0  ;;  %v1351_v57 = vmax.f32 %v1109_v0, 0.0  ;;  %v8703_v62 = vld [vmem:[%s11483_s2] ss:$0 sm:$0xff] }
 0x17d   :  { %v1350_v34 = vmax.f32 %v1104_v17, 0.0  ;;  %v1353_v7 = vmax.f32 %v1119_v15, 0.0 }
 0x17e   :  { %6843 = vmatmul.mubr.msk.f32.gmra.mrb[138].mxu1 %vm1395_vm2, %v1329_v6  ;;  %v1114_v6 = vadd.f32 %v8269_v19, %v8424_v29  ;;  %v1129_v29 = vadd.f32 %v8429_v37, %v8269_v19 }
 0x17f   :  { %6845 = vmatprep.mubr.msk.f32.mxu1 %vm1395_vm2, %v1330_v59  ;;  %v1124_v59 = vadd.f32 %v8269_v19, %v8432_v47  ;;  %v1139_v47 = vadd.f32 %v8437_v55, %v8269_v19  ;;  %v8665_v55 = vld [vmem:[%s11485_s4] ss:$0 sm:$0xff] }
 0x180   :  { %v1352_v18 = vmax.f32 %v1114_v6, 0.0  ;;  %v1355_v22 = vmax.f32 %v1129_v29, 0.0  ;;  %v11588_v29 = vld [vmem:[#allocation6_spill] sm:$0xff] }
 0x181   :  { %v1354_v42 = vmax.f32 %v1124_v59, 0.0  ;;  %v1357_v37 = vmax.f32 %v1139_v47, 0.0 }
 0x182   :  { %6846 = vmatmul.mubr.msk.f32.gmra.mrb[140].mxu1 %vm1395_vm2, %v1331_v14  ;;  %v1134_v14 = vadd.f32 %v8269_v19, %v8440_v1  ;;  %v1149_v1 = vadd.f32 %v8445_v11, %v8269_v19  ;;  %v1164_v11 = vadd.f32 %v8269_v19, %v8464_v4 }
 0x183   :  { %6848 = vmatprep.mubr.msk.f32.mxu1 %vm1395_vm2, %v1332_v26  ;;  %v1144_v26 = vadd.f32 %v8269_v19, %v8448_v21 }
 0x184   :  { %v1356_v27 = vmax.f32 %v1134_v14, 0.0  ;;  %v1359_v21 = vmax.f32 %v1149_v1, 0.0  ;;  %v1362_v32 = vmax.f32 %v1164_v11, 0.0  ;;  %v11590_v11 = vld [vmem:[#allocation8_spill] sm:$0xff] }
 0x185   :  { %v1358_v24 = vmax.f32 %v1144_v26, 0.0 }
 0x186   :  { %6849 = vmatmul.mubr.msk.f32.gmra.mrb[142].mxu1 %vm1395_vm2, %v1333_v23  ;;  %v1154_v23 = vadd.f32 %v8269_v19, %v8456_v41 }
 0x187   :  { %6851 = vmatprep.mubr.msk.f32.mxu1 %vm1395_vm2, %v1334_v39 }
 0x188   :  { %v1360_v39 = vmax.f32 %v1154_v23, 0.0 }
 0x18a   :  { %6852 = vmatmul.mubr.msk.f32.gmra.mrb[144].mxu1 %vm1395_vm2, %v1335_v31 }
 0x18b   :  { %6854 = vmatprep.mubr.msk.f32.mxu1 %vm1395_vm2, %v1336_v50  ;;  %v1361_v50 = vmax.f32 %v1159_v35, 0.0 }
 0x18e   :  { %6855 = vmatmul.mubr.msk.f32.gmra.mrb[146].mxu1 %vm1395_vm2, %v1337_v40 }
 0x18f   :  { %6857 = vmatprep.mubr.msk.f32.mxu1 %vm1395_vm2, %v1338_v48 }
 0x192   :  { %6858 = vmatmul.mubr.msk.f32.gmra.mrb[148].mxu1 %vm1395_vm2, %v1339_v51 }
 0x193   :  { %6860 = vmatprep.mubr.msk.f32.mxu1 %vm1395_vm2, %v1340_v58  ;;  %v1363_v58 = vmax.f32 %v1169_v12, 0.0 }
 0x196   :  { %6861 = vmatmul.mubr.msk.f32.gmra.mrb[150].mxu1 %vm1395_vm2, %v1341_v61  ;;  %v1364_v61 = vmax.f32 %v1174_v56, 0.0 }
 0x197   :  { %6863 = vmatprep.mubr.msk.f32.mxu1 %vm1395_vm2, %v1342_v33 }
 0x19a   :  { %6864 = vmatmul.mubr.msk.f32.gmra.mrb[152].mxu1 %vm1395_vm2, %v1343_v8 }
 0x19b   :  { %6866 = vmatprep.mubr.msk.f32.mxu1 %vm1395_vm2, %v1344_v2 }
 0x19e   :  { %6867 = vmatmul.mubr.msk.f32.gmra.mrb[154].mxu1 %vm1395_vm2, %v1345_v20  ;;  %v11585_v20 = vld [vmem:[#allocation2_spill] sm:$0xff] }
 0x19f   :  { %6869 = vmatprep.mubr.msk.f32.mxu1 %vm1395_vm2, %v1346_v44  ;;  %v1189_v36 = vadd.f32 %v11585_v20, %v8269_v19  ;;  %v1366_v44 = vmax.f32 %v1184_v13, 0.0 }
 0x1a1   :  { %v1367_v15 = vmax.f32 %v1189_v36, 0.0 }
 0x1a2   :  { %6870 = vmatmul.mubr.msk.f32.gmra.mrb[156].mxu1 %vm1395_vm2, %v1347_v30  ;;  %v11586_v30 = vld [vmem:[#allocation4_spill] sm:$0xff] }
 0x1a3   :  { %6872 = vmatprep.mubr.msk.f32.mxu1 %vm1395_vm2, %v1348_v10  ;;  %v1194_v49 = vadd.f32 %v8703_v62, %v11586_v30 }
 0x1a6   :  { %6873 = vmatmul.mubr.msk.f32.gmra.mrb[158].mxu1 %vm1395_vm2, %v1349_v43 }
 0x1a7   :  { %6875 = vmatprep.mubr.msk.f32.mxu1 %vm1395_vm2, %v1350_v34 }
 0x1aa   :  { %6876 = vmatmul.mubr.msk.f32.gmra.mrb[160].mxu1 %vm1395_vm2, %v1351_v57 }
 0x1ab   :  { %6878 = vmatprep.mubr.msk.f32.mxu1 %vm1395_vm2, %v1352_v18  ;;  %v11587_v18 = vld [vmem:[#allocation3_spill] sm:$0xff] }
 0x1ac   :  { %v1199_v59 = vadd.f32 %v8703_v62, %v11587_v18 }
 0x1ae   :  { %6879 = vmatmul.mubr.msk.f32.gmra.mrb[162].mxu1 %vm1395_vm2, %v1353_v7  ;;  %v1368_v7 = vmax.f32 %v1194_v49, 0.0  ;;  %v1369_v23 = vmax.f32 %v1199_v59, 0.0 }
 0x1af   :  { %6881 = vmatprep.mubr.msk.f32.mxu1 %vm1395_vm2, %v1354_v42  ;;  %v1204_v42 = vadd.f32 %v8703_v62, %v11588_v29 }
 0x1b2   :  { %6882 = vmatmul.mubr.msk.f32.gmra.mrb[164].mxu1 %vm1395_vm2, %v1355_v22 }
 0x1b3   :  { %6884 = vmatprep.mubr.msk.f32.mxu1 %vm1395_vm2, %v1356_v27 }
 0x1b6   :  { %6885 = vmatmul.mubr.msk.f32.gmra.mrb[166].mxu1 %vm1395_vm2, %v1357_v37 }
 0x1b7   :  { %6887 = vmatprep.mubr.msk.f32.mxu1 %vm1395_vm2, %v1358_v24 }
 0x1b9   :  { %v6730_v38 = vpop.f32.mrb[62].mxu1 }
 0x1ba   :  { %v1852_v41 = vadd.f32 %v6730_v38, %v8665_v55  ;;  %v1846_v31 = vpop.f32.mrb[63].mxu1  ;;  %6888 = vmatmul.mubr.msk.f32.gmra.mrb[168].mxu1 %vm1395_vm2, %v1359_v21  ;;  %v11589_v21 = vld [vmem:[#allocation5_spill] sm:$0xff]  ;;  %v1214_v38 = vadd.f32 %v8703_v62, %v11590_v11 }
 0x1bb   :  { %v1847_v45 = vadd.f32 %v8665_v55, %v1846_v31  ;;  %6890 = vmatprep.mubr.msk.f32.mxu1 %vm1395_vm2, %v1360_v39  ;;  %v1209_v35 = vadd.f32 %v8703_v62, %v11589_v21  ;;  %v1370_v39 = vmax.f32 %v1204_v42, 0.0 }
 0x1bc   :  { %v3665_v40 = vmul.f32 %v1852_v41, %v1852_v41 }
 0x1bd   :  { %v6733_v4 = vpop.f32.mrb[64].mxu1  ;;  %6924 = vmatprep.mubr.msk.f32.mxu0 %vm2487_vm1, %v1847_v45  ;;  %v3664_v53 = vmul.f32 %v1847_v45, %v1847_v45 }
 0x1be   :  { %v1862_v48 = vadd.f32 %v6733_v4, %v8665_v55  ;;  %v1856_v46 = vpop.f32.mrb[65].mxu1  ;;  %6891 = vmatmul.mubr.msk.f32.gmra.mrb[170].mxu1 %vm1395_vm2, %v1361_v50  ;;  %6925 = vmatmul.mubr.msk.f32.vlgmr.msra.gmra.mrb[66].mxu0 %vm2487_vm1, %v1852_v41  ;;  %v3795_v51 = vsel %vm2487_vm1, %v3665_v40, 0.0  ;;  %v1371_v4 = vmax.f32 %v1209_v35, 0.0 }
 0x1bf   :  { %v1857_v3 = vadd.f32 %v8665_v55, %v1856_v46  ;;  %6893 = vmatprep.mubr.msk.f32.mxu1 %vm1395_vm2, %v1362_v32  ;;  %3796 = vadd.xlane.f32.xlu0 %v3795_v51  ;;  %v3792_v60 = vsel %vm2487_vm1, %v3664_v53, 0.0  ;;  %v1372_v51 = vmax.f32 %v1214_v38, 0.0 }
 0x1c0   :  { %v3667_v5 = vmul.f32 %v1862_v48, %v1862_v48 }
 0x1c1   :  { %v6736_v33 = vpop.f32.mrb[66].mxu1  ;;  %6927 = vmatprep.mubr.msk.f32.mxu0 %vm2487_vm1, %v1857_v3  ;;  %v3666_v2 = vmul.f32 %v1857_v3, %v1857_v3  ;;  %v11592_v3 = vld [vmem:[#allocation10_spill] sm:$0xff] }
 0x1c2   :  { %v1872_v54 = vadd.f32 %v6736_v33, %v8665_v55  ;;  %v1866_v8 = vpop.f32.mrb[67].mxu1  ;;  %6894 = vmatmul.mubr.msk.f32.gmra.mrb[172].mxu1 %vm1395_vm2, %v1363_v58  ;;  %6928 = vmatmul.mubr.msk.f32.gmra.mrb[68].mxu0 %vm2487_vm1, %v1862_v48  ;;  %v3801_v25 = vsel %vm2487_vm1, %v3667_v5, 0.0  ;;  %v11591_v48 = vld [vmem:[#allocation7_spill] sm:$0xff]  ;;  %v1224_v53 = vadd.f32 %v8703_v62, %v11592_v3 }
 0x1c3   :  { %v1867_v16 = vadd.f32 %v8665_v55, %v1866_v8  ;;  %6896 = vmatprep.mubr.msk.f32.mxu1 %vm1395_vm2, %v1364_v61  ;;  %3802 = vadd.xlane.f32.xlu1 %v3801_v25  ;;  %v3798_v19 = vsel %vm2487_vm1, %v3666_v2, 0.0  ;;  %v1219_v46 = vadd.f32 %v8703_v62, %v11591_v48  ;;  %v11593_v2 = vld [vmem:[#allocation9_spill] sm:$0xff] }
 0x1c4   :  { %3793 = vadd.xlane.f32.xlu0 %v3792_v60  ;;  %v3669_v34 = vmul.f32 %v1872_v54, %v1872_v54  ;;  %v1374_v60 = vmax.f32 %v1224_v53, 0.0 }
 0x1c5   :  { %v6739_v10 = vpop.f32.mrb[68].mxu1  ;;  %6930 = vmatprep.mubr.msk.f32.mxu0 %vm2487_vm1, %v1867_v16  ;;  %v3668_v17 = vmul.f32 %v1867_v16, %v1867_v16  ;;  %v1373_v25 = vmax.f32 %v1219_v46, 0.0  ;;  %v1229_v16 = vadd.f32 %v8703_v62, %v11593_v2 }
 0x1c6   :  { %v1882_v43 = vadd.f32 %v6739_v10, %v8665_v55  ;;  %v1876_v0 = vpop.f32.mrb[69].mxu1  ;;  %6897 = vmatmul.mubr.msk.f32.gmra.mrb[174].mxu1 %vm1395_vm2, %v1365_v52  ;;  %6931 = vmatmul.mubr.msk.f32.gmra.mrb[70].mxu0 %vm2487_vm1, %v1872_v54  ;;  %v3807_v26 = vsel %vm2487_vm1, %v3669_v34, 0.0  ;;  %v11594_v52 = vld [vmem:[#allocation12_spill] sm:$0xff]  ;;  %v11595_v34 = vld [vmem:[#allocation11_spill] sm:$0xff] }
 0x1c7   :  { %v1877_v6 = vadd.f32 %v8665_v55, %v1876_v0  ;;  %6899 = vmatprep.mubr.msk.f32.mxu1 %vm1395_vm2, %v1366_v44  ;;  %3799 = vadd.xlane.f32.xlu1 %v3798_v19  ;;  %v3804_v57 = vsel %vm2487_vm1, %v3668_v17, 0.0  ;;  %v1234_v20 = vadd.f32 %v8703_v62, %v11594_v52  ;;  %v1375_v19 = vmax.f32 %v1229_v16, 0.0 }
 0x1c8   :  { %3805 = vadd.xlane.f32.xlu0 %v3804_v57  ;;  %v3671_v37 = vmul.f32 %v1882_v43, %v1882_v43 }
 0x1c9   :  { %v6742_v14 = vpop.f32.mrb[70].mxu1  ;;  %6933 = vmatprep.mubr.msk.f32.mxu0 %vm2487_vm1, %v1877_v6  ;;  %v3670_v22 = vmul.f32 %v1877_v6, %v1877_v6  ;;  %v1239_v6 = vadd.f32 %v8703_v62, %v11595_v34  ;;  %v1376_v57 = vmax.f32 %v1234_v20, 0.0 }
 0x1ca   :  { %v1892_v47 = vadd.f32 %v6742_v14, %v8665_v55  ;;  %v1886_v27 = vpop.f32.mrb[71].mxu1  ;;  %6900 = vmatmul.mubr.msk.f32.gmra.mrb[176].mxu1 %vm1395_vm2, %v1367_v15  ;;  %6934 = vmatmul.mubr.msk.f32.gmra.mrb[72].mxu0 %vm2487_vm1, %v1882_v43  ;;  %v3813_v12 = vsel %vm2487_vm1, %v3671_v37, 0.0  ;;  %v1244_v15 = vadd.f32 %v8703_v62, %v8528_v9 }
 0x1cb   :  { %v1887_v1 = vadd.f32 %v8665_v55, %v1886_v27  ;;  %6902 = vmatprep.mubr.msk.f32.mxu1 %vm1395_vm2, %v1368_v7  ;;  %3808 = vadd.xlane.f32.xlu1 %v3807_v26  ;;  %v3810_v24 = vsel %vm2487_vm1, %v3670_v22, 0.0  ;;  %v1249_v27 = vadd.f32 %v8703_v62, %v8525_v63 }
 0x1cc   :  { %3811 = vadd.xlane.f32.xlu0 %v3810_v24  ;;  %v3673_v40 = vmul.f32 %v1892_v47, %v1892_v47  ;;  %v1378_v26 = vmax.f32 %v1244_v15, 0.0 }
 0x1cd   :  { %v6745_v41 = vpop.f32.mrb[72].mxu1  ;;  %6936 = vmatprep.mubr.msk.f32.mxu0 %vm2487_vm1, %v1887_v1  ;;  %v3672_v31 = vmul.f32 %v1887_v1, %v1887_v1  ;;  %v1379_v62 = vmax.f32 %v1249_v27, 0.0 }
 0x1ce   :  { %v1902_v45 = vadd.f32 %v6745_v41, %v8665_v55  ;;  %v1896_v50 = vpop.f32.mrb[73].mxu1  ;;  %6903 = vmatmul.mubr.msk.f32.gmra.mrb[178].mxu1 %vm1395_vm2, %v1369_v23  ;;  %6937 = vmatmul.mubr.msk.f32.gmra.mrb[74].mxu0 %vm2487_vm1, %v1892_v47  ;;  %v3819_v13 = vsel %vm2487_vm1, %v3673_v40, 0.0  ;;  %v1377_v47 = vmax.f32 %v1239_v6, 0.0 }
 0x1cf   :  { %v1897_v32 = vadd.f32 %v8665_v55, %v1896_v50  ;;  %6905 = vmatprep.mubr.msk.f32.mxu1 %vm1395_vm2, %v1370_v39  ;;  %3814 = vadd.xlane.f32.xlu1 %v3813_v12  ;;  %v3816_v56 = vsel %vm2487_vm1, %v3672_v31, 0.0 }
 0x1d0   :  { %3817 = vadd.xlane.f32.xlu0 %v3816_v56  ;;  %v3675_v33 = vmul.f32 %v1902_v45, %v1902_v45 }
 0x1d1   :  { %v6748_v58 = vpop.f32.mrb[74].mxu1  ;;  %6939 = vmatprep.mubr.msk.f32.mxu0 %vm2487_vm1, %v1897_v32  ;;  %v3674_v28 = vmul.f32 %v1897_v32, %v1897_v32  ;;  %v7681_v32 = vmov 0.0  }
 0x1d2   :  { %v1912_v5 = vadd.f32 %v6748_v58, %v8665_v55  ;;  %v1906_v61 = vpop.f32.mrb[75].mxu1  ;;  %6906 = vmatmul.mubr.msk.f32.gmra.mrb[180].mxu1 %vm1395_vm2, %v1371_v4  ;;  %6940 = vmatmul.mubr.msk.f32.gmra.mrb[76].mxu0 %vm2487_vm1, %v1902_v45  ;;  %v3825_v10 = vsel %vm2487_vm1, %v3675_v33, 0.0 }
 0x1d3   :  { %v1907_v54 = vadd.f32 %v8665_v55, %v1906_v61  ;;  %6908 = vmatprep.mubr.msk.f32.mxu1 %vm1395_vm2, %v1372_v51  ;;  %3820 = vadd.xlane.f32.xlu1 %v3819_v13  ;;  %v3822_v8 = vsel %vm2487_vm1, %v3674_v28, 0.0  ;;  %v7682_v51 = vmov 1.0  }
 0x1d4   :  { %3823 = vadd.xlane.f32.xlu0 %v3822_v8  ;;  %v3677_v17 = vmul.f32 %v1912_v5, %v1912_v5 }
 0x1d5   :  { %v6751_v36 = vpop.f32.mrb[76].mxu1  ;;  %6942 = vmatprep.mubr.msk.f32.mxu0 %vm2487_vm1, %v1907_v54  ;;  %v3676_v44 = vmul.f32 %v1907_v54, %v1907_v54 }
 0x1d6   :  { %v1922_v30 = vadd.f32 %v6751_v36, %v8665_v55  ;;  %v1916_v49 = vpop.f32.mrb[77].mxu1  ;;  %6909 = vmatmul.mubr.msk.f32.gmra.mrb[182].mxu1 %vm1395_vm2, %v1373_v25  ;;  %6943 = vmatmul.mubr.msk.f32.gmra.mrb[78].mxu0 %vm2487_vm1, %v1912_v5  ;;  %v3831_v42 = vsel %vm2487_vm1, %v3677_v17, 0.0 }
 0x1d7   :  { %v1917_v43 = vadd.f32 %v8665_v55, %v1916_v49  ;;  %6911 = vmatprep.mubr.msk.f32.mxu1 %vm1395_vm2, %v1374_v60  ;;  %3826 = vadd.xlane.f32.xlu1 %v3825_v10  ;;  %v3828_v0 = vsel %vm2487_vm1, %v3676_v44, 0.0 }
 0x1d8   :  { %3829 = vadd.xlane.f32.xlu0 %v3828_v0  ;;  %v3679_v14 = vmul.f32 %v1922_v30, %v1922_v30 }
 0x1d9   :  { %v6754_v18 = vpop.f32.mrb[78].mxu1  ;;  %6945 = vmatprep.mubr.msk.f32.mxu0 %vm2487_vm1, %v1917_v43  ;;  %v3678_v59 = vmul.f32 %v1917_v43, %v1917_v43 }
 0x1da   :  { %v1932_v7 = vadd.f32 %v6754_v18, %v8665_v55  ;;  %v1926_v29 = vpop.f32.mrb[79].mxu1  ;;  %6912 = vmatmul.mubr.msk.f32.gmra.mrb[184].mxu1 %vm1395_vm2, %v1375_v19  ;;  %6946 = vmatmul.mubr.msk.f32.gmra.mrb[80].mxu0 %vm2487_vm1, %v1922_v30  ;;  %v3837_v21 = vsel %vm2487_vm1, %v3679_v14, 0.0 }
 0x1db   :  { %v1927_v22 = vadd.f32 %v8665_v55, %v1926_v29  ;;  %6914 = vmatprep.mubr.msk.f32.mxu1 %vm1395_vm2, %v1376_v57  ;;  %3832 = vadd.xlane.f32.xlu1 %v3831_v42  ;;  %v3834_v9 = vsel %vm2487_vm1, %v3678_v59, 0.0 }
 0x1dc   :  { %3835 = vadd.xlane.f32.xlu0 %v3834_v9  ;;  %v3681_v35 = vmul.f32 %v1932_v7, %v1932_v7 }
 0x1dd   :  { %v6757_v37 = vpop.f32.mrb[80].mxu1  ;;  %6948 = vmatprep.mubr.msk.f32.mxu0 %vm2487_vm1, %v1927_v22  ;;  %v3680_v1 = vmul.f32 %v1927_v22, %v1927_v22 }
 0x1de   :  { %v1942_v24 = vadd.f32 %v6757_v37, %v8665_v55  ;;  %v1936_v23 = vpop.f32.mrb[81].mxu1  ;;  %6915 = vmatmul.mubr.msk.f32.gmra.mrb[186].mxu1 %vm1395_vm2, %v1377_v47  ;;  %6949 = vmatmul.mubr.msk.f32.gmra.mrb[82].mxu0 %vm2487_vm1, %v1932_v7  ;;  %v3843_v45 = vsel %vm2487_vm1, %v3681_v35, 0.0 }
 0x1df   :  { %v1937_v39 = vadd.f32 %v8665_v55, %v1936_v23  ;;  %6917 = vmatprep.mubr.msk.f32.mxu1 %vm1395_vm2, %v1378_v26  ;;  %3838 = vadd.xlane.f32.xlu1 %v3837_v21  ;;  %v3840_v63 = vsel %vm2487_vm1, %v3680_v1, 0.0 }
 0x1e0   :  { %3841 = vadd.xlane.f32.xlu0 %v3840_v63  ;;  %v3683_v50 = vmul.f32 %v1942_v24, %v1942_v24 }
 0x1e1   :  { %v6760_v11 = vpop.f32.mrb[82].mxu1  ;;  %6951 = vmatprep.mubr.msk.f32.mxu0 %vm2487_vm1, %v1937_v39  ;;  %v3682_v38 = vmul.f32 %v1937_v39, %v1937_v39 }
 0x1e2   :  { %v1952_v41 = vadd.f32 %v6760_v11, %v8665_v55  ;;  %v1946_v31 = vpop.f32.mrb[83].mxu1  ;;  %6918 = vmatmul.mubr.msk.f32.gmra.mrb[188].mxu1 %vm1395_vm2, %v1379_v62  ;;  %6952 = vmatmul.mubr.msk.f32.gmra.mrb[84].mxu0 %vm2487_vm1, %v1942_v24  ;;  %v3849_v3 = vsel %vm2487_vm1, %v3683_v50, 0.0 }
 0x1e3   :  { %v1947_v12 = vadd.f32 %v8665_v55, %v1946_v31  ;;  %3844 = vadd.xlane.f32.xlu1 %v3843_v45  ;;  %v3846_v40 = vsel %vm2487_vm1, %v3682_v38, 0.0  ;;  %7120 = vmatprep.mubr.msk.f32.mxu1 %vm7680_vm4, %v7681_v32 }
 0x1e4   :  { %3847 = vadd.xlane.f32.xlu0 %v3846_v40  ;;  %v3685_v53 = vmul.f32 %v1952_v41, %v1952_v41 }
 0x1e5   :  { %v6763_v56 = vpop.f32.mrb[84].mxu1  ;;  %6954 = vmatprep.mubr.msk.f32.mxu0 %vm2487_vm1, %v1947_v12  ;;  %v3684_v4 = vmul.f32 %v1947_v12, %v1947_v12 }
 0x1e6   :  { %v1962_v48 = vadd.f32 %v6763_v56, %v8665_v55  ;;  %v1956_v46 = vpop.f32.mrb[85].mxu1  ;;  %6955 = vmatmul.mubr.msk.f32.gmra.mrb[86].mxu0 %vm2487_vm1, %v1952_v41  ;;  %7121 = vmatmul.mubr.msk.f32.vlgmr.msra.gmra.mrb[190].mxu1 %vm2487_vm1, %v7682_v51  ;;  %v3855_v54 = vsel %vm2487_vm1, %v3685_v53, 0.0 }
 0x1e7   :  { %v1957_v58 = vadd.f32 %v8665_v55, %v1956_v46  ;;  %3850 = vadd.xlane.f32.xlu1 %v3849_v3  ;;  %v3852_v28 = vsel %vm2487_vm1, %v3684_v4, 0.0 }
 0x1e8   :  { %3853 = vadd.xlane.f32.xlu0 %v3852_v28  ;;  %v3687_v8 = vmul.f32 %v1962_v48, %v1962_v48 }
 0x1e9   :  { %v6766_v5 = vpop.f32.mrb[86].mxu1  ;;  %6957 = vmatprep.mubr.msk.f32.mxu0 %vm2487_vm1, %v1957_v58  ;;  %v3686_v61 = vmul.f32 %v1957_v58, %v1957_v58 }
 0x1ea   :  { %v1972_v13 = vadd.f32 %v6766_v5, %v8665_v55  ;;  %v1966_v33 = vpop.f32.mrb[87].mxu1  ;;  %6958 = vmatmul.mubr.msk.f32.gmra.mrb[88].mxu0 %vm2487_vm1, %v1962_v48  ;;  %v3861_v36 = vsel %vm2487_vm1, %v3687_v8, 0.0 }
 0x1eb   :  { %v1967_v25 = vadd.f32 %v8665_v55, %v1966_v33  ;;  %3856 = vadd.xlane.f32.xlu1 %v3855_v54  ;;  %v3858_v2 = vsel %vm2487_vm1, %v3686_v61, 0.0 }
 0x1ec   :  { %3859 = vadd.xlane.f32.xlu0 %v3858_v2  ;;  %v3689_v44 = vmul.f32 %v1972_v13, %v1972_v13 }
 0x1ed   :  { %v6769_v16 = vpop.f32.mrb[88].mxu1  ;;  %6960 = vmatprep.mubr.msk.f32.mxu0 %vm2487_vm1, %v1967_v25  ;;  %v3688_v60 = vmul.f32 %v1967_v25, %v1967_v25 }
 0x1ee   :  { %v1982_v52 = vadd.f32 %v6769_v16, %v8665_v55  ;;  %v1976_v20 = vpop.f32.mrb[89].mxu1  ;;  %6961 = vmatmul.mubr.msk.f32.gmra.mrb[90].mxu0 %vm2487_vm1, %v1972_v13  ;;  %v3867_v19 = vsel %vm2487_vm1, %v3689_v44, 0.0 }
 0x1ef   :  { %v1977_v30 = vadd.f32 %v8665_v55, %v1976_v20  ;;  %3862 = vadd.xlane.f32.xlu1 %v3861_v36  ;;  %v3864_v49 = vsel %vm2487_vm1, %v3688_v60, 0.0 }
 0x1f0   :  { %3865 = vadd.xlane.f32.xlu0 %v3864_v49  ;;  %v3691_v34 = vmul.f32 %v1982_v52, %v1982_v52 }
 0x1f1   :  { %v6772_v10 = vpop.f32.mrb[90].mxu1  ;;  %6963 = vmatprep.mubr.msk.f32.mxu0 %vm2487_vm1, %v1977_v30  ;;  %v3690_v17 = vmul.f32 %v1977_v30, %v1977_v30 }
 0x1f2   :  { %v1992_v43 = vadd.f32 %v6772_v10, %v8665_v55  ;;  %v1986_v0 = vpop.f32.mrb[91].mxu1  ;;  %6964 = vmatmul.mubr.msk.f32.gmra.mrb[92].mxu0 %vm2487_vm1, %v1982_v52  ;;  %v3873_v29 = vsel %vm2487_vm1, %v3691_v34, 0.0 }
 0x1f3   :  { %v1987_v6 = vadd.f32 %v8665_v55, %v1986_v0  ;;  %3868 = vadd.xlane.f32.xlu1 %v3867_v19  ;;  %v3870_v57 = vsel %vm2487_vm1, %v3690_v17, 0.0 }
 0x1f4   :  { %3871 = vadd.xlane.f32.xlu0 %v3870_v57  ;;  %v3693_v42 = vmul.f32 %v1992_v43, %v1992_v43 }
 0x1f5   :  { %v6775_v15 = vpop.f32.mrb[92].mxu1  ;;  %6966 = vmatprep.mubr.msk.f32.mxu0 %vm2487_vm1, %v1987_v6  ;;  %v3692_v18 = vmul.f32 %v1987_v6, %v1987_v6 }
 0x1f6   :  { %v2002_v59 = vadd.f32 %v6775_v15, %v8665_v55  ;;  %v1996_v7 = vpop.f32.mrb[93].mxu1  ;;  %6967 = vmatmul.mubr.msk.f32.gmra.mrb[94].mxu0 %vm2487_vm1, %v1992_v43  ;;  %v3879_v37 = vsel %vm2487_vm1, %v3693_v42, 0.0 }
 0x1f7   :  { %v1997_v14 = vadd.f32 %v8665_v55, %v1996_v7  ;;  %3874 = vadd.xlane.f32.xlu1 %v3873_v29  ;;  %v3876_v22 = vsel %vm2487_vm1, %v3692_v18, 0.0 }
 0x1f8   :  { %3877 = vadd.xlane.f32.xlu0 %v3876_v22  ;;  %v3695_v1 = vmul.f32 %v2002_v59, %v2002_v59 }
 0x1f9   :  { %v6778_v9 = vpop.f32.mrb[94].mxu1  ;;  %6969 = vmatprep.mubr.msk.f32.mxu0 %vm2487_vm1, %v1997_v14  ;;  %v3694_v47 = vmul.f32 %v1997_v14, %v1997_v14 }
 0x1fa   :  { %v2012_v27 = vadd.f32 %v6778_v9, %v8665_v55  ;;  %v2006_v26 = vpop.f32.mrb[95].mxu1  ;;  %6970 = vmatmul.mubr.msk.f32.gmra.mrb[96].mxu0 %vm2487_vm1, %v2002_v59  ;;  %v3885_v62 = vsel %vm2487_vm1, %v3695_v1, 0.0 }
 0x1fb   :  { %v2007_v24 = vadd.f32 %v8665_v55, %v2006_v26  ;;  %3880 = vadd.xlane.f32.xlu1 %v3879_v37  ;;  %v3882_v23 = vsel %vm2487_vm1, %v3694_v47, 0.0 }
 0x1fc   :  { %3883 = vadd.xlane.f32.xlu0 %v3882_v23  ;;  %v3697_v11 = vmul.f32 %v2012_v27, %v2012_v27 }
 0x1fd   :  { %v6781_v21 = vpop.f32.mrb[96].mxu1  ;;  %6972 = vmatprep.mubr.msk.f32.mxu0 %vm2487_vm1, %v2007_v24  ;;  %v3696_v35 = vmul.f32 %v2007_v24, %v2007_v24 }
 0x1fe   :  { %v2022_v39 = vadd.f32 %v6781_v21, %v8665_v55  ;;  %v2016_v63 = vpop.f32.mrb[97].mxu1  ;;  %6973 = vmatmul.mubr.msk.f32.gmra.mrb[98].mxu0 %vm2487_vm1, %v2012_v27  ;;  %v3891_v40 = vsel %vm2487_vm1, %v3697_v11, 0.0 }
 0x1ff   :  { %v2017_v38 = vadd.f32 %v8665_v55, %v2016_v63  ;;  %3886 = vadd.xlane.f32.xlu1 %v3885_v62  ;;  %v3888_v41 = vsel %vm2487_vm1, %v3696_v35, 0.0 }
 0x200   :  { %3889 = vadd.xlane.f32.xlu0 %v3888_v41  ;;  %v3699_v32 = vmul.f32 %v2022_v39, %v2022_v39 }
 0x201   :  { %v6784_v31 = vpop.f32.mrb[98].mxu1  ;;  %6975 = vmatprep.mubr.msk.f32.mxu0 %vm2487_vm1, %v2017_v38  ;;  %v3698_v45 = vmul.f32 %v2017_v38, %v2017_v38 }
 0x202   :  { %v2032_v50 = vadd.f32 %v6784_v31, %v8665_v55  ;;  %v2026_v12 = vpop.f32.mrb[99].mxu1  ;;  %6976 = vmatmul.mubr.msk.f32.gmra.mrb[100].mxu0 %vm2487_vm1, %v2022_v39  ;;  %v3897_v53 = vsel %vm2487_vm1, %v3699_v32, 0.0 }
 0x203   :  { %v2027_v56 = vadd.f32 %v8665_v55, %v2026_v12  ;;  %3892 = vadd.xlane.f32.xlu1 %v3891_v40  ;;  %v3894_v4 = vsel %vm2487_vm1, %v3698_v45, 0.0 }
 0x204   :  { %3895 = vadd.xlane.f32.xlu0 %v3894_v4  ;;  %v3701_v58 = vmul.f32 %v2032_v50, %v2032_v50 }
 0x205   :  { %v6787_v48 = vpop.f32.mrb[100].mxu1  ;;  %6978 = vmatprep.mubr.msk.f32.mxu0 %vm2487_vm1, %v2027_v56  ;;  %v3700_v46 = vmul.f32 %v2027_v56, %v2027_v56 }
 0x206   :  { %v2042_v51 = vadd.f32 %v6787_v48, %v8665_v55  ;;  %v2036_v3 = vpop.f32.mrb[101].mxu1  ;;  %6979 = vmatmul.mubr.msk.f32.gmra.mrb[102].mxu0 %vm2487_vm1, %v2032_v50  ;;  %v3903_v8 = vsel %vm2487_vm1, %v3701_v58, 0.0 }
 0x207   :  { %v2037_v28 = vadd.f32 %v8665_v55, %v2036_v3  ;;  %3898 = vadd.xlane.f32.xlu1 %v3897_v53  ;;  %v3900_v5 = vsel %vm2487_vm1, %v3700_v46, 0.0 }
 0x208   :  { %3901 = vadd.xlane.f32.xlu0 %v3900_v5  ;;  %v3703_v25 = vmul.f32 %v2042_v51, %v2042_v51 }
 0x209   :  { %v6790_v61 = vpop.f32.mrb[102].mxu1  ;;  %6981 = vmatprep.mubr.msk.f32.mxu0 %vm2487_vm1, %v2037_v28  ;;  %v3702_v13 = vmul.f32 %v2037_v28, %v2037_v28 }
 0x20a   :  { %v2052_v33 = vadd.f32 %v6790_v61, %v8665_v55  ;;  %v2046_v54 = vpop.f32.mrb[103].mxu1  ;;  %6982 = vmatmul.mubr.msk.f32.gmra.mrb[104].mxu0 %vm2487_vm1, %v2042_v51  ;;  %v3909_v44 = vsel %vm2487_vm1, %v3703_v25, 0.0 }
 0x20b   :  { %v2047_v2 = vadd.f32 %v8665_v55, %v2046_v54  ;;  %3904 = vadd.xlane.f32.xlu1 %v3903_v8  ;;  %v3906_v16 = vsel %vm2487_vm1, %v3702_v13, 0.0 }
 0x20c   :  { %3907 = vadd.xlane.f32.xlu0 %v3906_v16  ;;  %v3705_v30 = vmul.f32 %v2052_v33, %v2052_v33 }
 0x20d   :  { %v6793_v60 = vpop.f32.mrb[104].mxu1  ;;  %6984 = vmatprep.mubr.msk.f32.mxu0 %vm2487_vm1, %v2047_v2  ;;  %v3704_v52 = vmul.f32 %v2047_v2, %v2047_v2 }
 0x20e   :  { %v2062_v20 = vadd.f32 %v6793_v60, %v8665_v55  ;;  %v2056_v36 = vpop.f32.mrb[105].mxu1  ;;  %6985 = vmatmul.mubr.msk.f32.gmra.mrb[106].mxu0 %vm2487_vm1, %v2052_v33  ;;  %v3915_v34 = vsel %vm2487_vm1, %v3705_v30, 0.0 }
 0x20f   :  { %v2057_v49 = vadd.f32 %v8665_v55, %v2056_v36  ;;  %3910 = vadd.xlane.f32.xlu1 %v3909_v44  ;;  %v3912_v10 = vsel %vm2487_vm1, %v3704_v52, 0.0 }
 0x210   :  { %3913 = vadd.xlane.f32.xlu0 %v3912_v10  ;;  %v3707_v6 = vmul.f32 %v2062_v20, %v2062_v20 }
 0x211   :  { %v6796_v17 = vpop.f32.mrb[106].mxu1  ;;  %6987 = vmatprep.mubr.msk.f32.mxu0 %vm2487_vm1, %v2057_v49  ;;  %v3706_v43 = vmul.f32 %v2057_v49, %v2057_v49 }
 0x212   :  { %v2072_v0 = vadd.f32 %v6796_v17, %v8665_v55  ;;  %v2066_v19 = vpop.f32.mrb[107].mxu1  ;;  %6988 = vmatmul.mubr.msk.f32.gmra.mrb[108].mxu0 %vm2487_vm1, %v2062_v20  ;;  %v3921_v42 = vsel %vm2487_vm1, %v3707_v6, 0.0 }
 0x213   :  { %v2067_v57 = vadd.f32 %v8665_v55, %v2066_v19  ;;  %3916 = vadd.xlane.f32.xlu1 %v3915_v34  ;;  %v3918_v15 = vsel %vm2487_vm1, %v3706_v43, 0.0 }
 0x214   :  { %3919 = vadd.xlane.f32.xlu0 %v3918_v15  ;;  %v3709_v14 = vmul.f32 %v2072_v0, %v2072_v0 }
 0x215   :  { %v6799_v18 = vpop.f32.mrb[108].mxu1  ;;  %6990 = vmatprep.mubr.msk.f32.mxu0 %vm2487_vm1, %v2067_v57  ;;  %v3708_v59 = vmul.f32 %v2067_v57, %v2067_v57 }
 0x216   :  { %v2082_v7 = vadd.f32 %v6799_v18, %v8665_v55  ;;  %v2076_v29 = vpop.f32.mrb[109].mxu1  ;;  %6991 = vmatmul.mubr.msk.f32.gmra.mrb[110].mxu0 %vm2487_vm1, %v2072_v0  ;;  %v3927_v1 = vsel %vm2487_vm1, %v3709_v14, 0.0 }
 0x217   :  { %v2077_v22 = vadd.f32 %v8665_v55, %v2076_v29  ;;  %3922 = vadd.xlane.f32.xlu1 %v3921_v42  ;;  %v3924_v9 = vsel %vm2487_vm1, %v3708_v59, 0.0 }
 0x218   :  { %3925 = vadd.xlane.f32.xlu0 %v3924_v9  ;;  %v3711_v24 = vmul.f32 %v2082_v7, %v2082_v7 }
 0x219   :  { %v6802_v47 = vpop.f32.mrb[110].mxu1  ;;  %6993 = vmatprep.mubr.msk.f32.mxu0 %vm2487_vm1, %v2077_v22  ;;  %v3710_v27 = vmul.f32 %v2077_v22, %v2077_v22 }
 0x21a   :  { %v2092_v26 = vadd.f32 %v6802_v47, %v8665_v55  ;;  %v2086_v37 = vpop.f32.mrb[111].mxu1  ;;  %6994 = vmatmul.mubr.msk.f32.gmra.mrb[112].mxu0 %vm2487_vm1, %v2082_v7  ;;  %v3933_v11 = vsel %vm2487_vm1, %v3711_v24, 0.0 }
 0x21b   :  { %v2087_v23 = vadd.f32 %v8665_v55, %v2086_v37  ;;  %3928 = vadd.xlane.f32.xlu1 %v3927_v1  ;;  %v3930_v21 = vsel %vm2487_vm1, %v3710_v27, 0.0 }
 0x21c   :  { %3931 = vadd.xlane.f32.xlu0 %v3930_v21  ;;  %v3713_v38 = vmul.f32 %v2092_v26, %v2092_v26 }
 0x21d   :  { %v6805_v35 = vpop.f32.mrb[112].mxu1  ;;  %6996 = vmatprep.mubr.msk.f32.mxu0 %vm2487_vm1, %v2087_v23  ;;  %v3712_v39 = vmul.f32 %v2087_v23, %v2087_v23 }
 0x21e   :  { %v2102_v63 = vadd.f32 %v6805_v35, %v8665_v55  ;;  %v2096_v62 = vpop.f32.mrb[113].mxu1  ;;  %6997 = vmatmul.mubr.msk.f32.gmra.mrb[114].mxu0 %vm2487_vm1, %v2092_v26  ;;  %v3939_v32 = vsel %vm2487_vm1, %v3713_v38, 0.0 }
 0x21f   :  { %v2097_v41 = vadd.f32 %v8665_v55, %v2096_v62  ;;  %3934 = vadd.xlane.f32.xlu1 %v3933_v11  ;;  %v3936_v31 = vsel %vm2487_vm1, %v3712_v39, 0.0 }
 0x220   :  { %3937 = vadd.xlane.f32.xlu0 %v3936_v31  ;;  %v3715_v56 = vmul.f32 %v2102_v63, %v2102_v63 }
 0x221   :  { %v6808_v45 = vpop.f32.mrb[114].mxu1  ;;  %6999 = vmatprep.mubr.msk.f32.mxu0 %vm2487_vm1, %v2097_v41  ;;  %v3714_v50 = vmul.f32 %v2097_v41, %v2097_v41 }
 0x222   :  { %v2112_v12 = vadd.f32 %v6808_v45, %v8665_v55  ;;  %v2106_v40 = vpop.f32.mrb[115].mxu1  ;;  %7000 = vmatmul.mubr.msk.f32.gmra.mrb[116].mxu0 %vm2487_vm1, %v2102_v63  ;;  %v3945_v58 = vsel %vm2487_vm1, %v3715_v56, 0.0 }
 0x223   :  { %v2107_v4 = vadd.f32 %v8665_v55, %v2106_v40  ;;  %3940 = vadd.xlane.f32.xlu1 %v3939_v32  ;;  %v3942_v48 = vsel %vm2487_vm1, %v3714_v50, 0.0 }
 0x224   :  { %3943 = vadd.xlane.f32.xlu0 %v3942_v48  ;;  %v3717_v28 = vmul.f32 %v2112_v12, %v2112_v12 }
 0x225   :  { %v6811_v46 = vpop.f32.mrb[116].mxu1  ;;  %7002 = vmatprep.mubr.msk.f32.mxu0 %vm2487_vm1, %v2107_v4  ;;  %v3716_v51 = vmul.f32 %v2107_v4, %v2107_v4 }
 0x226   :  { %v2122_v3 = vadd.f32 %v6811_v46, %v8665_v55  ;;  %v2116_v53 = vpop.f32.mrb[117].mxu1  ;;  %7003 = vmatmul.mubr.msk.f32.gmra.mrb[118].mxu0 %vm2487_vm1, %v2112_v12  ;;  %v3951_v25 = vsel %vm2487_vm1, %v3717_v28, 0.0 }
 0x227   :  { %v2117_v5 = vadd.f32 %v8665_v55, %v2116_v53  ;;  %3946 = vadd.xlane.f32.xlu1 %v3945_v58  ;;  %v3948_v61 = vsel %vm2487_vm1, %v3716_v51, 0.0 }
 0x228   :  { %3949 = vadd.xlane.f32.xlu0 %v3948_v61  ;;  %v3719_v2 = vmul.f32 %v2122_v3, %v2122_v3 }
 0x229   :  { %v6814_v13 = vpop.f32.mrb[118].mxu1  ;;  %7005 = vmatprep.mubr.msk.f32.mxu0 %vm2487_vm1, %v2117_v5  ;;  %v3718_v33 = vmul.f32 %v2117_v5, %v2117_v5 }
 0x22a   :  { %v2132_v54 = vadd.f32 %v6814_v13, %v8665_v55  ;;  %v2126_v8 = vpop.f32.mrb[119].mxu1  ;;  %7006 = vmatmul.mubr.msk.f32.gmra.mrb[120].mxu0 %vm2487_vm1, %v2122_v3  ;;  %v3957_v30 = vsel %vm2487_vm1, %v3719_v2, 0.0 }
 0x22b   :  { %v2127_v16 = vadd.f32 %v8665_v55, %v2126_v8  ;;  %3952 = vadd.xlane.f32.xlu1 %v3951_v25  ;;  %v3954_v60 = vsel %vm2487_vm1, %v3718_v33, 0.0 }
 0x22c   :  { %3955 = vadd.xlane.f32.xlu0 %v3954_v60  ;;  %v3721_v49 = vmul.f32 %v2132_v54, %v2132_v54 }
 0x22d   :  { %v6817_v52 = vpop.f32.mrb[120].mxu1  ;;  %7008 = vmatprep.mubr.msk.f32.mxu0 %vm2487_vm1, %v2127_v16  ;;  %v3720_v20 = vmul.f32 %v2127_v16, %v2127_v16 }
 0x22e   :  { %v2142_v36 = vadd.f32 %v6817_v52, %v8665_v55  ;;  %v2136_v44 = vpop.f32.mrb[121].mxu1  ;;  %7009 = vmatmul.mubr.msk.f32.gmra.mrb[122].mxu0 %vm2487_vm1, %v2132_v54  ;;  %v3963_v6 = vsel %vm2487_vm1, %v3721_v49, 0.0 }
 0x22f   :  { %v2137_v10 = vadd.f32 %v8665_v55, %v2136_v44  ;;  %3958 = vadd.xlane.f32.xlu1 %v3957_v30  ;;  %v3960_v17 = vsel %vm2487_vm1, %v3720_v20, 0.0 }
 0x230   :  { %3961 = vadd.xlane.f32.xlu0 %v3960_v17  ;;  %v3723_v57 = vmul.f32 %v2142_v36, %v2142_v36 }
 0x231   :  { %v6820_v43 = vpop.f32.mrb[122].mxu1  ;;  %7011 = vmatprep.mubr.msk.f32.mxu0 %vm2487_vm1, %v2137_v10  ;;  %v3722_v0 = vmul.f32 %v2137_v10, %v2137_v10 }
 0x232   :  { %v2152_v19 = vadd.f32 %v6820_v43, %v8665_v55  ;;  %v2146_v34 = vpop.f32.mrb[123].mxu1  ;;  %7012 = vmatmul.mubr.msk.f32.gmra.mrb[124].mxu0 %vm2487_vm1, %v2142_v36  ;;  %v3969_v14 = vsel %vm2487_vm1, %v3723_v57, 0.0 }
 0x233   :  { %v2147_v15 = vadd.f32 %v8665_v55, %v2146_v34  ;;  %3964 = vadd.xlane.f32.xlu1 %v3963_v6  ;;  %v3966_v18 = vsel %vm2487_vm1, %v3722_v0, 0.0 }
 0x234   :  { %3967 = vadd.xlane.f32.xlu0 %v3966_v18  ;;  %v3725_v22 = vmul.f32 %v2152_v19, %v2152_v19 }
 0x235   :  { %v6823_v59 = vpop.f32.mrb[124].mxu1  ;;  %7014 = vmatprep.mubr.msk.f32.mxu0 %vm2487_vm1, %v2147_v15  ;;  %v3724_v7 = vmul.f32 %v2147_v15, %v2147_v15  ;;  %v8965_v15 = vld [vmem:[%s11485_s4] ss:$0 sm:$0xff] }
 0x236   :  { %v2162_v29 = vadd.f32 %v6823_v59, %v8665_v55  ;;  %v2156_v42 = vpop.f32.mrb[125].mxu1  ;;  %7015 = vmatmul.mubr.msk.f32.gmra.mrb[126].mxu0 %vm2487_vm1, %v2152_v19  ;;  %v3975_v24 = vsel %vm2487_vm1, %v3725_v22, 0.0 }
 0x237   :  { %v2157_v9 = vadd.f32 %v8665_v55, %v2156_v42  ;;  %3970 = vadd.xlane.f32.xlu1 %v3969_v14  ;;  %v3972_v47 = vsel %vm2487_vm1, %v3724_v7, 0.0 }
 0x238   :  { %3973 = vadd.xlane.f32.xlu0 %v3972_v47  ;;  %v3727_v23 = vmul.f32 %v2162_v29, %v2162_v29 }
 0x239   :  { %v6826_v27 = vpop.f32.mrb[126].mxu1  ;;  %7017 = vmatprep.mubr.msk.f32.mxu0 %vm2487_vm1, %v2157_v9  ;;  %v3726_v26 = vmul.f32 %v2157_v9, %v2157_v9 }
 0x23a   :  { %v2172_v37 = vadd.f32 %v6826_v27, %v8665_v55  ;;  %v2166_v1 = vpop.f32.mrb[127].mxu1  ;;  %7018 = vmatmul.mubr.msk.f32.gmra.mrb[128].mxu0 %vm2487_vm1, %v2162_v29  ;;  %v3981_v38 = vsel %vm2487_vm1, %v3727_v23, 0.0 }
 0x23b   :  { %v2167_v21 = vadd.f32 %v8665_v55, %v2166_v1  ;;  %3976 = vadd.xlane.f32.xlu1 %v3975_v24  ;;  %v3978_v35 = vsel %vm2487_vm1, %v3726_v26, 0.0 }
 0x23c   :  { %3979 = vadd.xlane.f32.xlu0 %v3978_v35  ;;  %v3729_v41 = vmul.f32 %v2172_v37, %v2172_v37 }
 0x23d   :  { %v6829_v39 = vpop.f32.mrb[128].mxu1  ;;  %7020 = vmatprep.mubr.msk.f32.mxu0 %vm2487_vm1, %v2167_v21  ;;  %v3728_v63 = vmul.f32 %v2167_v21, %v2167_v21 }
 0x23e   :  { %v2182_v62 = vadd.f32 %v6829_v39, %v8665_v55  ;;  %v2176_v11 = vpop.f32.mrb[129].mxu1  ;;  %7021 = vmatmul.mubr.msk.f32.gmra.mrb[130].mxu0 %vm2487_vm1, %v2172_v37  ;;  %v3987_v56 = vsel %vm2487_vm1, %v3729_v41, 0.0 }
 0x23f   :  { %v2177_v31 = vadd.f32 %v8665_v55, %v2176_v11  ;;  %3982 = vadd.xlane.f32.xlu1 %v3981_v38  ;;  %v3984_v45 = vsel %vm2487_vm1, %v3728_v63, 0.0 }
 0x240   :  { %3985 = vadd.xlane.f32.xlu0 %v3984_v45  ;;  %v3731_v4 = vmul.f32 %v2182_v62, %v2182_v62 }
 0x241   :  { %v6832_v50 = vpop.f32.mrb[130].mxu1  ;;  %7023 = vmatprep.mubr.msk.f32.mxu0 %vm2487_vm1, %v2177_v31  ;;  %v3730_v12 = vmul.f32 %v2177_v31, %v2177_v31 }
 0x242   :  { %v2192_v40 = vadd.f32 %v6832_v50, %v8665_v55  ;;  %v2186_v32 = vpop.f32.mrb[131].mxu1  ;;  %7024 = vmatmul.mubr.msk.f32.gmra.mrb[132].mxu0 %vm2487_vm1, %v2182_v62  ;;  %v3993_v28 = vsel %vm2487_vm1, %v3731_v4, 0.0 }
 0x243   :  { %v2187_v48 = vadd.f32 %v8665_v55, %v2186_v32  ;;  %3988 = vadd.xlane.f32.xlu1 %v3987_v56  ;;  %v3990_v46 = vsel %vm2487_vm1, %v3730_v12, 0.0 }
 0x244   :  { %3991 = vadd.xlane.f32.xlu0 %v3990_v46  ;;  %v3733_v5 = vmul.f32 %v2192_v40, %v2192_v40 }
 0x245   :  { %v6835_v51 = vpop.f32.mrb[132].mxu1  ;;  %7026 = vmatprep.mubr.msk.f32.mxu0 %vm2487_vm1, %v2187_v48  ;;  %v3732_v3 = vmul.f32 %v2187_v48, %v2187_v48 }
 0x246   :  { %v2202_v53 = vadd.f32 %v6835_v51, %v8665_v55  ;;  %v2196_v58 = vpop.f32.mrb[133].mxu1  ;;  %7027 = vmatmul.mubr.msk.f32.gmra.mrb[134].mxu0 %vm2487_vm1, %v2192_v40  ;;  %v3999_v2 = vsel %vm2487_vm1, %v3733_v5, 0.0 }
 0x247   :  { %v2197_v61 = vadd.f32 %v8665_v55, %v2196_v58  ;;  %3994 = vadd.xlane.f32.xlu1 %v3993_v28  ;;  %v3996_v13 = vsel %vm2487_vm1, %v3732_v3, 0.0 }
 0x248   :  { %3997 = vadd.xlane.f32.xlu0 %v3996_v13  ;;  %v3735_v16 = vmul.f32 %v2202_v53, %v2202_v53 }
 0x249   :  { %v6838_v33 = vpop.f32.mrb[134].mxu1  ;;  %7029 = vmatprep.mubr.msk.f32.mxu0 %vm2487_vm1, %v2197_v61  ;;  %v3734_v54 = vmul.f32 %v2197_v61, %v2197_v61 }
 0x24a   :  { %v2212_v8 = vadd.f32 %v6838_v33, %v8665_v55  ;;  %v2206_v25 = vpop.f32.mrb[135].mxu1  ;;  %7030 = vmatmul.mubr.msk.f32.gmra.mrb[136].mxu0 %vm2487_vm1, %v2202_v53  ;;  %v4005_v10 = vsel %vm2487_vm1, %v3735_v16, 0.0 }
 0x24b   :  { %v2207_v60 = vadd.f32 %v8665_v55, %v2206_v25  ;;  %4000 = vadd.xlane.f32.xlu1 %v3999_v2  ;;  %v4002_v52 = vsel %vm2487_vm1, %v3734_v54, 0.0 }
 0x24c   :  { %v8949_v20 = vpop.xlane.xlu0 %3796  ;;  %4003 = vadd.xlane.f32.xlu0 %v4002_v52  ;;  %v3737_v17 = vmul.f32 %v2212_v8, %v2212_v8 }
 0x24d   :  { %v6841_v36 = vpop.f32.mrb[136].mxu1  ;;  %7032 = vmatprep.mubr.msk.f32.mxu0 %vm2487_vm1, %v2207_v60  ;;  %v3736_v44 = vmul.f32 %v2207_v60, %v2207_v60 }
 0x24e   :  { %v2222_v30 = vadd.f32 %v6841_v36, %v8665_v55  ;;  %v2216_v49 = vpop.f32.mrb[137].mxu1  ;;  %7033 = vmatmul.mubr.msk.f32.gmra.mrb[138].mxu0 %vm2487_vm1, %v2212_v8  ;;  %v4011_v59 = vsel %vm2487_vm1, %v3737_v17, 0.0 }
 0x24f   :  { %v2217_v43 = vadd.f32 %v8665_v55, %v2216_v49  ;;  %4006 = vadd.xlane.f32.xlu1 %v4005_v10  ;;  %v4008_v0 = vsel %vm2487_vm1, %v3736_v44, 0.0 }
 0x250   :  { %v8957_v19 = vpop.xlane.xlu1 %3802  ;;  %4009 = vadd.xlane.f32.xlu0 %v4008_v0  ;;  %v3739_v7 = vmul.f32 %v2222_v30, %v2222_v30 }
 0x251   :  { %v8959_v34 = vpop.xlane.xlu0 %3793  ;;  %v6844_v6 = vpop.f32.mrb[138].mxu1  ;;  %7035 = vmatprep.mubr.msk.f32.mxu0 %vm2487_vm1, %v2217_v43  ;;  %v3738_v57 = vmul.f32 %v2217_v43, %v2217_v43 }
 0x252   :  { %v2232_v18 = vadd.f32 %v8965_v15, %v6844_v6  ;;  %v2226_v55 = vpop.f32.mrb[139].mxu1  ;;  %7036 = vmatmul.mubr.msk.f32.gmra.mrb[140].mxu0 %vm2487_vm1, %v2222_v30  ;;  %v4017_v37 = vsel %vm2487_vm1, %v3739_v7, 0.0 }
 0x253   :  { %v2227_v29 = vadd.f32 %v8965_v15, %v2226_v55  ;;  %4012 = vadd.xlane.f32.xlu1 %v4011_v59  ;;  %v4014_v42 = vsel %vm2487_vm1, %v3738_v57, 0.0 }
 0x254   :  { %v8972_v14 = vpop.xlane.xlu1 %3799  ;;  %4015 = vadd.xlane.f32.xlu0 %v4014_v42  ;;  %v3741_v1 = vmul.f32 %v2232_v18, %v2232_v18 }
 0x255   :  { %v6847_v22 = vpop.f32.mrb[140].mxu1  ;;  %v8974_v9 = vpop.xlane.xlu0 %3805  ;;  %7038 = vmatprep.mubr.msk.f32.mxu0 %vm2487_vm1, %v2227_v29  ;;  %v3740_v47 = vmul.f32 %v2227_v29, %v2227_v29 }
 0x256   :  { %v2242_v27 = vadd.f32 %v8965_v15, %v6847_v22  ;;  %v2236_v26 = vpop.f32.mrb[141].mxu1  ;;  %7039 = vmatmul.mubr.msk.f32.gmra.mrb[142].mxu0 %vm2487_vm1, %v2232_v18  ;;  %v4023_v38 = vsel %vm2487_vm1, %v3741_v1, 0.0 }
 0x257   :  { %v2237_v24 = vadd.f32 %v8965_v15, %v2236_v26  ;;  %4018 = vadd.xlane.f32.xlu1 %v4017_v37  ;;  %v4020_v23 = vsel %vm2487_vm1, %v3740_v47, 0.0 }
 0x258   :  { %v8982_v21 = vpop.xlane.xlu1 %3808  ;;  %4021 = vadd.xlane.f32.xlu0 %v4020_v23  ;;  %v3743_v41 = vmul.f32 %v2242_v27, %v2242_v27 }
 0x259   :  { %v6850_v35 = vpop.f32.mrb[142].mxu1  ;;  %v8984_v39 = vpop.xlane.xlu0 %3811  ;;  %7041 = vmatprep.mubr.msk.f32.mxu0 %vm2487_vm1, %v2237_v24  ;;  %v3742_v63 = vmul.f32 %v2237_v24, %v2237_v24 }
 0x25a   :  { %v2252_v62 = vadd.f32 %v8965_v15, %v6850_v35  ;;  %v2246_v11 = vpop.f32.mrb[143].mxu1  ;;  %7042 = vmatmul.mubr.msk.f32.gmra.mrb[144].mxu0 %vm2487_vm1, %v2242_v27  ;;  %v4029_v48 = vsel %vm2487_vm1, %v3743_v41, 0.0 }
 0x25b   :  { %v2247_v31 = vadd.f32 %v8965_v15, %v2246_v11  ;;  %4024 = vadd.xlane.f32.xlu1 %v4023_v38  ;;  %v4026_v45 = vsel %vm2487_vm1, %v3742_v63, 0.0 }
 0x25c   :  { %v8992_v50 = vpop.xlane.xlu1 %3814  ;;  %4027 = vadd.xlane.f32.xlu0 %v4026_v45  ;;  %v3745_v46 = vmul.f32 %v2252_v62, %v2252_v62 }
 0x25d   :  { %v6853_v12 = vpop.f32.mrb[144].mxu1  ;;  %v8994_v40 = vpop.xlane.xlu0 %3817  ;;  %7044 = vmatprep.mubr.msk.f32.mxu0 %vm2487_vm1, %v2247_v31  ;;  %v3744_v32 = vmul.f32 %v2247_v31, %v2247_v31 }
 0x25e   :  { %v2262_v56 = vadd.f32 %v8965_v15, %v6853_v12  ;;  %v2256_v4 = vpop.f32.mrb[145].mxu1  ;;  %7045 = vmatmul.mubr.msk.f32.gmra.mrb[146].mxu0 %vm2487_vm1, %v2252_v62  ;;  %v4035_v33 = vsel %vm2487_vm1, %v3745_v46, 0.0 }
 0x25f   :  { %v2257_v51 = vadd.f32 %v8965_v15, %v2256_v4  ;;  %4030 = vadd.xlane.f32.xlu1 %v4029_v48  ;;  %v4032_v3 = vsel %vm2487_vm1, %v3744_v32, 0.0 }
 0x260   :  { %v9002_v53 = vpop.xlane.xlu1 %3820  ;;  %4033 = vadd.xlane.f32.xlu0 %v4032_v3  ;;  %v3747_v54 = vmul.f32 %v2262_v56, %v2262_v56 }
 0x261   :  { %v6856_v58 = vpop.f32.mrb[146].mxu1  ;;  %v9004_v28 = vpop.xlane.xlu0 %3823  ;;  %7047 = vmatprep.mubr.msk.f32.mxu0 %vm2487_vm1, %v2257_v51  ;;  %v3746_v5 = vmul.f32 %v2257_v51, %v2257_v51 }
 0x262   :  { %v2272_v61 = vadd.f32 %v8965_v15, %v6856_v58  ;;  %v2266_v13 = vpop.f32.mrb[147].mxu1  ;;  %7048 = vmatmul.mubr.msk.f32.gmra.mrb[148].mxu0 %vm2487_vm1, %v2262_v56  ;;  %v4041_v30 = vsel %vm2487_vm1, %v3747_v54, 0.0 }
 0x263   :  { %v2267_v8 = vadd.f32 %v8965_v15, %v2266_v13  ;;  %4036 = vadd.xlane.f32.xlu1 %v4035_v33  ;;  %v4038_v25 = vsel %vm2487_vm1, %v3746_v5, 0.0 }
 0x264   :  { %v9012_v2 = vpop.xlane.xlu1 %3826  ;;  %4039 = vadd.xlane.f32.xlu0 %v4038_v25  ;;  %v3749_v49 = vmul.f32 %v2272_v61, %v2272_v61 }
 0x265   :  { %v6859_v16 = vpop.f32.mrb[148].mxu1  ;;  %v9014_v60 = vpop.xlane.xlu0 %3829  ;;  %7050 = vmatprep.mubr.msk.f32.mxu0 %vm2487_vm1, %v2267_v8  ;;  %v3748_v52 = vmul.f32 %v2267_v8, %v2267_v8 }
 0x266   :  { %v2282_v36 = vadd.f32 %v8965_v15, %v6859_v16  ;;  %v2276_v44 = vpop.f32.mrb[149].mxu1  ;;  %7051 = vmatmul.mubr.msk.f32.gmra.mrb[150].mxu0 %vm2487_vm1, %v2272_v61  ;;  %v4047_v59 = vsel %vm2487_vm1, %v3749_v49, 0.0 }
 0x267   :  { %v2277_v10 = vadd.f32 %v8965_v15, %v2276_v44  ;;  %4042 = vadd.xlane.f32.xlu1 %v4041_v30  ;;  %v4044_v17 = vsel %vm2487_vm1, %v3748_v52, 0.0 }
 0x268   :  { %v9022_v43 = vpop.xlane.xlu1 %3832  ;;  %4045 = vadd.xlane.f32.xlu0 %v4044_v17  ;;  %v3751_v7 = vmul.f32 %v2282_v36, %v2282_v36 }
 0x269   :  { %v6862_v0 = vpop.f32.mrb[150].mxu1  ;;  %v9024_v6 = vpop.xlane.xlu0 %3835  ;;  %7053 = vmatprep.mubr.msk.f32.mxu0 %vm2487_vm1, %v2277_v10  ;;  %v3750_v57 = vmul.f32 %v2277_v10, %v2277_v10 }
 0x26a   :  { %v2292_v18 = vadd.f32 %v8965_v15, %v6862_v0  ;;  %v2286_v55 = vpop.f32.mrb[151].mxu1  ;;  %7054 = vmatmul.mubr.msk.f32.gmra.mrb[152].mxu0 %vm2487_vm1, %v2282_v36  ;;  %v4053_v24 = vsel %vm2487_vm1, %v3751_v7, 0.0 }
 0x26b   :  { %v2287_v29 = vadd.f32 %v8965_v15, %v2286_v55  ;;  %4048 = vadd.xlane.f32.xlu1 %v4047_v59  ;;  %v4050_v42 = vsel %vm2487_vm1, %v3750_v57, 0.0 }
 0x26c   :  { %v9032_v22 = vpop.xlane.xlu1 %3838  ;;  %4051 = vadd.xlane.f32.xlu0 %v4050_v42  ;;  %v3753_v23 = vmul.f32 %v2292_v18, %v2292_v18 }
 0x26d   :  { %v6865_v47 = vpop.f32.mrb[152].mxu1  ;;  %v9034_v27 = vpop.xlane.xlu0 %3841  ;;  %7056 = vmatprep.mubr.msk.f32.mxu0 %vm2487_vm1, %v2287_v29  ;;  %v3752_v26 = vmul.f32 %v2287_v29, %v2287_v29 }
 0x26e   :  { %v2302_v37 = vadd.f32 %v8965_v15, %v6865_v47  ;;  %v2296_v1 = vpop.f32.mrb[153].mxu1  ;;  %7057 = vmatmul.mubr.msk.f32.gmra.mrb[154].mxu0 %vm2487_vm1, %v2292_v18  ;;  %v4059_v12 = vsel %vm2487_vm1, %v3753_v23, 0.0 }
 0x26f   :  { %v2297_v35 = vadd.f32 %v8965_v15, %v2296_v1  ;;  %4054 = vadd.xlane.f32.xlu1 %v4053_v24  ;;  %v4056_v63 = vsel %vm2487_vm1, %v3752_v26, 0.0 }
 0x270   :  { %v9042_v62 = vpop.xlane.xlu1 %3844  ;;  %4057 = vadd.xlane.f32.xlu0 %v4056_v63  ;;  %v3755_v32 = vmul.f32 %v2302_v37, %v2302_v37 }
 0x271   :  { %v6868_v11 = vpop.f32.mrb[154].mxu1  ;;  %v9044_v38 = vpop.xlane.xlu0 %3847  ;;  %7059 = vmatprep.mubr.msk.f32.mxu0 %vm2487_vm1, %v2297_v35  ;;  %v3754_v41 = vmul.f32 %v2297_v35, %v2297_v35 }
 0x272   :  { %v2312_v31 = vadd.f32 %v8965_v15, %v6868_v11  ;;  %v2306_v45 = vpop.f32.mrb[155].mxu1  ;;  %7060 = vmatmul.mubr.msk.f32.gmra.mrb[156].mxu0 %vm2487_vm1, %v2302_v37  ;;  %v4065_v61 = vsel %vm2487_vm1, %v3755_v32, 0.0 }
 0x273   :  { %v2307_v56 = vadd.f32 %v8965_v15, %v2306_v45  ;;  %4060 = vadd.xlane.f32.xlu1 %v4059_v12  ;;  %v4062_v4 = vsel %vm2487_vm1, %v3754_v41, 0.0 }
 0x274   :  { %v9052_v48 = vpop.xlane.xlu1 %3850  ;;  %4063 = vadd.xlane.f32.xlu0 %v4062_v4  ;;  %v3757_v13 = vmul.f32 %v2312_v31, %v2312_v31 }
 0x275   :  { %v6871_v46 = vpop.f32.mrb[156].mxu1  ;;  %v9054_v51 = vpop.xlane.xlu0 %3853  ;;  %7062 = vmatprep.mubr.msk.f32.mxu0 %vm2487_vm1, %v2307_v56  ;;  %v3756_v3 = vmul.f32 %v2307_v56, %v2307_v56 }
 0x276   :  { %v2322_v58 = vadd.f32 %v8965_v15, %v6871_v46  ;;  %v2316_v5 = vpop.f32.mrb[157].mxu1  ;;  %7063 = vmatmul.mubr.msk.f32.gmra.mrb[158].mxu0 %vm2487_vm1, %v2312_v31  ;;  %v4071_v30 = vsel %vm2487_vm1, %v3757_v13, 0.0 }
 0x277   :  { %v2317_v33 = vadd.f32 %v8965_v15, %v2316_v5  ;;  %4066 = vadd.xlane.f32.xlu1 %v4065_v61  ;;  %v4068_v54 = vsel %vm2487_vm1, %v3756_v3, 0.0 }
 0x278   :  { %v9062_v8 = vpop.xlane.xlu1 %3856  ;;  %4069 = vadd.xlane.f32.xlu0 %v4068_v54  ;;  %v3759_v49 = vmul.f32 %v2322_v58, %v2322_v58 }
 0x279   :  { %11596 = vst [vmem:[#allocation2_spill] sm:$0xff] %v9062_v8  ;;  %v6874_v25 = vpop.f32.mrb[158].mxu1  ;;  %v9064_v16 = vpop.xlane.xlu0 %3859  ;;  %7065 = vmatprep.mubr.msk.f32.mxu0 %vm2487_vm1, %v2317_v33  ;;  %v3758_v52 = vmul.f32 %v2317_v33, %v2317_v33 }
 0x27a   :  { %11597 = vst [vmem:[#allocation4_spill] sm:$0xff] %v9064_v16  ;;  %v2332_v36 = vadd.f32 %v8965_v15, %v6874_v25  ;;  %v2326_v44 = vpop.f32.mrb[159].mxu1  ;;  %7066 = vmatmul.mubr.msk.f32.gmra.mrb[160].mxu0 %vm2487_vm1, %v2322_v58  ;;  %v4077_v29 = vsel %vm2487_vm1, %v3759_v49, 0.0 }
 0x27b   :  { %v2327_v10 = vadd.f32 %v8965_v15, %v2326_v44  ;;  %4072 = vadd.xlane.f32.xlu1 %v4071_v30  ;;  %v4074_v17 = vsel %vm2487_vm1, %v3758_v52, 0.0 }
 0x27c   :  { %v9072_v0 = vpop.xlane.xlu1 %3862  ;;  %4075 = vadd.xlane.f32.xlu0 %v4074_v17  ;;  %v3761_v42 = vmul.f32 %v2332_v36, %v2332_v36 }
 0x27d   :  { %11598 = vst [vmem:[#allocation3_spill] sm:$0xff] %v9072_v0  ;;  %v6877_v57 = vpop.f32.mrb[160].mxu1  ;;  %v9074_v18 = vpop.xlane.xlu0 %3865  ;;  %7068 = vmatprep.mubr.msk.f32.mxu0 %vm2487_vm1, %v2327_v10  ;;  %v3760_v55 = vmul.f32 %v2327_v10, %v2327_v10 }
 0x27e   :  { %11599 = vst [vmem:[#allocation6_spill] sm:$0xff] %v9074_v18  ;;  %v2342_v59 = vadd.f32 %v8965_v15, %v6877_v57  ;;  %v2336_v7 = vpop.f32.mrb[161].mxu1  ;;  %7069 = vmatmul.mubr.msk.f32.gmra.mrb[162].mxu0 %vm2487_vm1, %v2332_v36  ;;  %v4083_v41 = vsel %vm2487_vm1, %v3761_v42, 0.0 }
 0x27f   :  { %v2337_v47 = vadd.f32 %v8965_v15, %v2336_v7  ;;  %4078 = vadd.xlane.f32.xlu1 %v4077_v29  ;;  %v4080_v26 = vsel %vm2487_vm1, %v3760_v55, 0.0 }
 0x280   :  { %v9082_v37 = vpop.xlane.xlu1 %3868  ;;  %4081 = vadd.xlane.f32.xlu0 %v4080_v26  ;;  %v3763_v35 = vmul.f32 %v2342_v59, %v2342_v59 }
 0x281   :  { %v3762_v1 = vmul.f32 %v2337_v47, %v2337_v47  ;;  %v6880_v24 = vpop.f32.mrb[162].mxu1  ;;  %v9084_v23 = vpop.xlane.xlu0 %3871  ;;  %7071 = vmatprep.mubr.msk.f32.mxu0 %vm2487_vm1, %v2337_v47 }
 0x282   :  { %v2352_v63 = vadd.f32 %v8965_v15, %v6880_v24  ;;  %v2346_v11 = vpop.f32.mrb[163].mxu1  ;;  %7072 = vmatmul.mubr.msk.f32.gmra.mrb[164].mxu0 %vm2487_vm1, %v2342_v59  ;;  %v4089_v5 = vsel %vm2487_vm1, %v3763_v35, 0.0 }
 0x283   :  { %v2347_v31 = vadd.f32 %v8965_v15, %v2346_v11  ;;  %4084 = vadd.xlane.f32.xlu1 %v4083_v41  ;;  %v4086_v45 = vsel %vm2487_vm1, %v3762_v1, 0.0 }
 0x284   :  { %v9092_v12 = vpop.xlane.xlu1 %3874  ;;  %4087 = vadd.xlane.f32.xlu0 %v4086_v45  ;;  %v3765_v46 = vmul.f32 %v2352_v63, %v2352_v63 }
 0x285   :  { %v3764_v32 = vmul.f32 %v2347_v31, %v2347_v31  ;;  %v6883_v56 = vpop.f32.mrb[164].mxu1  ;;  %v9094_v4 = vpop.xlane.xlu0 %3877  ;;  %7074 = vmatprep.mubr.msk.f32.mxu0 %vm2487_vm1, %v2347_v31 }
 0x286   :  { %v2362_v3 = vadd.f32 %v8965_v15, %v6883_v56  ;;  %v2356_v58 = vpop.f32.mrb[165].mxu1  ;;  %7075 = vmatmul.mubr.msk.f32.gmra.mrb[166].mxu0 %vm2487_vm1, %v2352_v63  ;;  %v4095_v49 = vsel %vm2487_vm1, %v3765_v46, 0.0 }
 0x287   :  { %v2357_v61 = vadd.f32 %v8965_v15, %v2356_v58  ;;  %4090 = vadd.xlane.f32.xlu1 %v4089_v5  ;;  %v4092_v13 = vsel %vm2487_vm1, %v3764_v32, 0.0 }
 0x288   :  { %v9102_v33 = vpop.xlane.xlu1 %3880  ;;  %4093 = vadd.xlane.f32.xlu0 %v4092_v13  ;;  %v3767_v36 = vmul.f32 %v2362_v3, %v2362_v3 }
 0x289   :  { %v3766_v54 = vmul.f32 %v2357_v61, %v2357_v61  ;;  %v6886_v25 = vpop.f32.mrb[166].mxu1  ;;  %v9104_v52 = vpop.xlane.xlu0 %3883  ;;  %7077 = vmatprep.mubr.msk.f32.mxu0 %vm2487_vm1, %v2357_v61 }
 0x28a   :  { %11600 = vst [vmem:[#allocation5_spill] sm:$0xff] %v9104_v52  ;;  %v2372_v44 = vadd.f32 %v8965_v15, %v6886_v25  ;;  %v2366_v30 = vpop.f32.mrb[167].mxu1  ;;  %7078 = vmatmul.mubr.msk.f32.gmra.mrb[168].mxu0 %vm2487_vm1, %v2362_v3  ;;  %v4101_v26 = vsel %vm2487_vm1, %v3767_v36, 0.0 }
 0x28b   :  { %v2367_v10 = vadd.f32 %v8965_v15, %v2366_v30  ;;  %4096 = vadd.xlane.f32.xlu1 %v4095_v49  ;;  %v4098_v17 = vsel %vm2487_vm1, %v3766_v54, 0.0 }
 0x28c   :  { %v9112_v57 = vpop.xlane.xlu1 %3886  ;;  %4099 = vadd.xlane.f32.xlu0 %v4098_v17  ;;  %v3769_v29 = vmul.f32 %v2372_v44, %v2372_v44 }
 0x28d   :  { %11601 = vst [vmem:[#allocation8_spill] sm:$0xff] %v9112_v57  ;;  %v3768_v55 = vmul.f32 %v2367_v10, %v2367_v10  ;;  %v6889_v59 = vpop.f32.mrb[168].mxu1  ;;  %v9114_v7 = vpop.xlane.xlu0 %3889  ;;  %7080 = vmatprep.mubr.msk.f32.mxu0 %vm2487_vm1, %v2367_v10 }
 0x28e   :  { %11602 = vst [vmem:[#allocation7_spill] sm:$0xff] %v9114_v7  ;;  %v2382_v42 = vadd.f32 %v8965_v15, %v6889_v59  ;;  %v2376_v47 = vpop.f32.mrb[169].mxu1  ;;  %7081 = vmatmul.mubr.msk.f32.gmra.mrb[170].mxu0 %vm2487_vm1, %v2372_v44  ;;  %v4107_v46 = vsel %vm2487_vm1, %v3769_v29, 0.0 }
 0x28f   :  { %v2377_v1 = vadd.f32 %v8965_v15, %v2376_v47  ;;  %4102 = vadd.xlane.f32.xlu1 %v4101_v26  ;;  %v4104_v24 = vsel %vm2487_vm1, %v3768_v55, 0.0 }
 0x290   :  { %v9122_v35 = vpop.xlane.xlu1 %3892  ;;  %4105 = vadd.xlane.f32.xlu0 %v4104_v24  ;;  %v3771_v31 = vmul.f32 %v2382_v42, %v2382_v42 }
 0x291   :  { %11603 = vst [vmem:[#allocation10_spill] sm:$0xff] %v9122_v35  ;;  %v3770_v63 = vmul.f32 %v2377_v1, %v2377_v1  ;;  %v6892_v11 = vpop.f32.mrb[170].mxu1  ;;  %v9124_v41 = vpop.xlane.xlu0 %3895  ;;  %7083 = vmatprep.mubr.msk.f32.mxu0 %vm2487_vm1, %v2377_v1 }
 0x292   :  { %11604 = vst [vmem:[#allocation9_spill] sm:$0xff] %v9124_v41  ;;  %v2392_v45 = vadd.f32 %v8965_v15, %v6892_v11  ;;  %v9128_v32 = vpop.f32.mrb[66].mxu0  ;;  %v2386_v56 = vpop.f32.mrb[171].mxu1  ;;  %7084 = vmatmul.mubr.msk.f32.gmra.mrb[172].mxu0 %vm2487_vm1, %v2382_v42  ;;  %v4113_v10 = vsel %vm2487_vm1, %v3771_v31, 0.0 }
 0x293   :  { %v2387_v3 = vadd.f32 %v8965_v15, %v2386_v56  ;;  %v9133_v58 = vpop.f32.mrb[67].mxu0  ;;  %4108 = vadd.xlane.f32.xlu1 %v4107_v46  ;;  %v4110_v5 = vsel %vm2487_vm1, %v3770_v63, 0.0 }
 0x294   :  { %v9136_v61 = vpop.xlane.xlu1 %3898  ;;  %4111 = vadd.xlane.f32.xlu0 %v4110_v5  ;;  %v3773_v36 = vmul.f32 %v2392_v45, %v2392_v45 }
 0x295   :  { %11605 = vst [vmem:[#allocation12_spill] sm:$0xff] %v9136_v61  ;;  %v3772_v13 = vmul.f32 %v2387_v3, %v2387_v3  ;;  %v6895_v54 = vpop.f32.mrb[172].mxu1  ;;  %v9138_v25 = vpop.xlane.xlu0 %3901  ;;  %7086 = vmatprep.mubr.msk.f32.mxu0 %vm2487_vm1, %v2387_v3 }
 0x296   :  { %11606 = vst [vmem:[#allocation11_spill] sm:$0xff] %v9138_v25  ;;  %v2402_v44 = vadd.f32 %v8965_v15, %v6895_v54  ;;  %v9142_v30 = vpop.f32.mrb[68].mxu0  ;;  %v2396_v49 = vpop.f32.mrb[173].mxu1  ;;  %7087 = vmatmul.mubr.msk.f32.gmra.mrb[174].mxu0 %vm2487_vm1, %v2392_v45  ;;  %v4119_v31 = vsel %vm2487_vm1, %v3773_v36, 0.0 }
 0x297   :  { %v2397_v17 = vadd.f32 %v8965_v15, %v2396_v49  ;;  %v9147_v55 = vpop.f32.mrb[69].mxu0  ;;  %4114 = vadd.xlane.f32.xlu1 %v4113_v10  ;;  %v4116_v59 = vsel %vm2487_vm1, %v3772_v13, 0.0 }
 0x298   :  { %v9150_v29 = vpop.xlane.xlu1 %3904  ;;  %4117 = vadd.xlane.f32.xlu0 %v4116_v59  ;;  %v3775_v1 = vmul.f32 %v2402_v44, %v2402_v44 }
 0x299   :  { %11607 = vst [vmem:[#allocation13_spill] sm:$0xff] %v9150_v29  ;;  %v3774_v42 = vmul.f32 %v2397_v17, %v2397_v17  ;;  %v6898_v47 = vpop.f32.mrb[174].mxu1  ;;  %v9152_v26 = vpop.xlane.xlu0 %3907  ;;  %7089 = vmatprep.mubr.msk.f32.mxu0 %vm2487_vm1, %v2397_v17 }
 0x29a   :  { %11608 = vst [vmem:[#allocation14_spill] sm:$0xff] %v9152_v26  ;;  %v2412_v24 = vadd.f32 %v8965_v15, %v6898_v47  ;;  %v9156_v63 = vpop.f32.mrb[70].mxu0  ;;  %v2406_v11 = vpop.f32.mrb[175].mxu1  ;;  %7090 = vmatmul.mubr.msk.f32.gmra.mrb[176].mxu0 %vm2487_vm1, %v2402_v44  ;;  %v4125_v17 = vsel %vm2487_vm1, %v3775_v1, 0.0 }
 0x29b   :  { %v2407_v45 = vadd.f32 %v8965_v15, %v2406_v11  ;;  %v9161_v56 = vpop.f32.mrb[71].mxu0  ;;  %4120 = vadd.xlane.f32.xlu1 %v4119_v31  ;;  %v4122_v46 = vsel %vm2487_vm1, %v3774_v42, 0.0 }
 0x29c   :  { %v9164_v3 = vpop.xlane.xlu1 %3910  ;;  %4123 = vadd.xlane.f32.xlu0 %v4122_v46  ;;  %v3777_v49 = vmul.f32 %v2412_v24, %v2412_v24 }
 0x29d   :  { %11609 = vst [vmem:[#allocation15_spill] sm:$0xff] %v9164_v3  ;;  %v3776_v5 = vmul.f32 %v2407_v45, %v2407_v45  ;;  %v6901_v13 = vpop.f32.mrb[176].mxu1  ;;  %v9166_v54 = vpop.xlane.xlu0 %3913  ;;  %7092 = vmatprep.mubr.msk.f32.mxu0 %vm2487_vm1, %v2407_v45 }
 0x29e   :  { %11610 = vst [vmem:[#allocation16_spill] sm:$0xff] %v9166_v54  ;;  %v2422_v44 = vadd.f32 %v8965_v15, %v6901_v13  ;;  %v9170_v36 = vpop.f32.mrb[72].mxu0  ;;  %v2416_v10 = vpop.f32.mrb[177].mxu1  ;;  %7093 = vmatmul.mubr.msk.f32.gmra.mrb[178].mxu0 %vm2487_vm1, %v2412_v24 }
 0x29f   :  { %v2417_v59 = vadd.f32 %v8965_v15, %v2416_v10  ;;  %v9175_v42 = vpop.f32.mrb[73].mxu0  ;;  %4126 = vadd.xlane.f32.xlu1 %v4125_v17  ;;  %v4128_v47 = vsel %vm2487_vm1, %v3776_v5, 0.0  ;;  %v4131_v17 = vsel %vm2487_vm1, %v3777_v49, 0.0 }
 0x2a0   :  { %v9178_v11 = vpop.xlane.xlu1 %3916  ;;  %4129 = vadd.xlane.f32.xlu0 %v4128_v47  ;;  %v3779_v13 = vmul.f32 %v2422_v44, %v2422_v44 }
 0x2a1   :  { %11611 = vst [vmem:[#allocation17_spill] sm:$0xff] %v9178_v11  ;;  %v3778_v31 = vmul.f32 %v2417_v59, %v2417_v59  ;;  %v6904_v45 = vpop.f32.mrb[178].mxu1  ;;  %v9180_v46 = vpop.xlane.xlu0 %3919  ;;  %7095 = vmatprep.mubr.msk.f32.mxu0 %vm2487_vm1, %v2417_v59 }
 0x2a2   :  { %11612 = vst [vmem:[#allocation18_spill] sm:$0xff] %v9180_v46  ;;  %v2432_v24 = vadd.f32 %v8965_v15, %v6904_v45  ;;  %v9184_v1 = vpop.f32.mrb[74].mxu0  ;;  %v2426_v10 = vpop.f32.mrb[179].mxu1  ;;  %7096 = vmatmul.mubr.msk.f32.gmra.mrb[180].mxu0 %vm2487_vm1, %v2422_v44 }
 0x2a3   :  { %v2427_v5 = vadd.f32 %v8965_v15, %v2426_v10  ;;  %v9189_v11 = vpop.f32.mrb[75].mxu0  ;;  %4132 = vadd.xlane.f32.xlu1 %v4131_v17  ;;  %v4134_v47 = vsel %vm2487_vm1, %v3778_v31, 0.0  ;;  %v4137_v17 = vsel %vm2487_vm1, %v3779_v13, 0.0 }
 0x2a4   :  { %v9192_v46 = vpop.xlane.xlu1 %3922  ;;  %4135 = vadd.xlane.f32.xlu0 %v4134_v47  ;;  %v3781_v3 = vmul.f32 %v2432_v24, %v2432_v24 }
 0x2a5   :  { %11613 = vst [vmem:[#allocation19_spill] sm:$0xff] %v9192_v46  ;;  %v3780_v59 = vmul.f32 %v2427_v5, %v2427_v5  ;;  %v6907_v54 = vpop.f32.mrb[180].mxu1  ;;  %v9194_v45 = vpop.xlane.xlu0 %3925  ;;  %7098 = vmatprep.mubr.msk.f32.mxu0 %vm2487_vm1, %v2427_v5 }
 0x2a6   :  { %11614 = vst [vmem:[#allocation20_spill] sm:$0xff] %v9194_v45  ;;  %v2442_v44 = vadd.f32 %v8965_v15, %v6907_v54  ;;  %v9198_v49 = vpop.f32.mrb[76].mxu0  ;;  %v2436_v10 = vpop.f32.mrb[181].mxu1  ;;  %7099 = vmatmul.mubr.msk.f32.gmra.mrb[182].mxu0 %vm2487_vm1, %v2432_v24 }
 0x2a7   :  { %v2437_v31 = vadd.f32 %v8965_v15, %v2436_v10  ;;  %v9203_v46 = vpop.f32.mrb[77].mxu0  ;;  %4138 = vadd.xlane.f32.xlu1 %v4137_v17  ;;  %v4140_v47 = vsel %vm2487_vm1, %v3780_v59, 0.0  ;;  %v4143_v17 = vsel %vm2487_vm1, %v3781_v3, 0.0 }
 0x2a8   :  { %v9206_v45 = vpop.xlane.xlu1 %3928  ;;  %4141 = vadd.xlane.f32.xlu0 %v4140_v47  ;;  %v3783_v29 = vmul.f32 %v2442_v44, %v2442_v44 }
 0x2a9   :  { %11615 = vst [vmem:[#allocation21_spill] sm:$0xff] %v9206_v45  ;;  %v3782_v5 = vmul.f32 %v2437_v31, %v2437_v31  ;;  %v6910_v26 = vpop.f32.mrb[182].mxu1  ;;  %v9208_v54 = vpop.xlane.xlu0 %3931  ;;  %7101 = vmatprep.mubr.msk.f32.mxu0 %vm2487_vm1, %v2437_v31 }
 0x2aa   :  { %11616 = vst [vmem:[#allocation22_spill] sm:$0xff] %v9208_v54  ;;  %v2452_v24 = vadd.f32 %v8965_v15, %v6910_v26  ;;  %v9212_v13 = vpop.f32.mrb[78].mxu0  ;;  %v2446_v10 = vpop.f32.mrb[183].mxu1  ;;  %7102 = vmatmul.mubr.msk.f32.gmra.mrb[184].mxu0 %vm2487_vm1, %v2442_v44 }
 0x2ab   :  { %v2447_v59 = vadd.f32 %v8965_v15, %v2446_v10  ;;  %v9217_v45 = vpop.f32.mrb[79].mxu0  ;;  %4144 = vadd.xlane.f32.xlu1 %v4143_v17  ;;  %v4146_v47 = vsel %vm2487_vm1, %v3782_v5, 0.0  ;;  %v4149_v17 = vsel %vm2487_vm1, %v3783_v29, 0.0 }
 0x2ac   :  { %v9220_v54 = vpop.xlane.xlu1 %3934  ;;  %4147 = vadd.xlane.f32.xlu0 %v4146_v47  ;;  %v3785_v61 = vmul.f32 %v2452_v24, %v2452_v24 }
 0x2ad   :  { %11617 = vst [vmem:[#allocation23_spill] sm:$0xff] %v9220_v54  ;;  %v3784_v31 = vmul.f32 %v2447_v59, %v2447_v59  ;;  %v6913_v25 = vpop.f32.mrb[184].mxu1  ;;  %v9222_v26 = vpop.xlane.xlu0 %3937  ;;  %7104 = vmatprep.mubr.msk.f32.mxu0 %vm2487_vm1, %v2447_v59 }
 0x2ae   :  { %11618 = vst [vmem:[#allocation24_spill] sm:$0xff] %v9222_v26  ;;  %v2462_v44 = vadd.f32 %v8965_v15, %v6913_v25  ;;  %v9226_v3 = vpop.f32.mrb[80].mxu0  ;;  %v2456_v10 = vpop.f32.mrb[185].mxu1  ;;  %7105 = vmatmul.mubr.msk.f32.gmra.mrb[186].mxu0 %vm2487_vm1, %v2452_v24 }
 0x2af   :  { %v2457_v5 = vadd.f32 %v8965_v15, %v2456_v10  ;;  %v9231_v54 = vpop.f32.mrb[81].mxu0  ;;  %4150 = vadd.xlane.f32.xlu1 %v4149_v17  ;;  %v4152_v47 = vsel %vm2487_vm1, %v3784_v31, 0.0  ;;  %v4155_v17 = vsel %vm2487_vm1, %v3785_v61, 0.0 }
 0x2b0   :  { %v9234_v26 = vpop.xlane.xlu1 %3940  ;;  %4153 = vadd.xlane.f32.xlu0 %v4152_v47  ;;  %v3787_v35 = vmul.f32 %v2462_v44, %v2462_v44 }
 0x2b1   :  { %11619 = vst [vmem:[#allocation25_spill] sm:$0xff] %v9234_v26  ;;  %v3786_v59 = vmul.f32 %v2457_v5, %v2457_v5  ;;  %v6916_v41 = vpop.f32.mrb[186].mxu1  ;;  %v9236_v25 = vpop.xlane.xlu0 %3943  ;;  %7107 = vmatprep.mubr.msk.f32.mxu0 %vm2487_vm1, %v2457_v5 }
 0x2b2   :  { %11620 = vst [vmem:[#allocation26_spill] sm:$0xff] %v9236_v25  ;;  %v2472_v24 = vadd.f32 %v8965_v15, %v6916_v41  ;;  %v9240_v29 = vpop.f32.mrb[82].mxu0  ;;  %v2466_v10 = vpop.f32.mrb[187].mxu1  ;;  %7108 = vmatmul.mubr.msk.f32.gmra.mrb[188].mxu0 %vm2487_vm1, %v2462_v44 }
 0x2b3   :  { %v2467_v31 = vadd.f32 %v8965_v15, %v2466_v10  ;;  %v9245_v26 = vpop.f32.mrb[83].mxu0  ;;  %4156 = vadd.xlane.f32.xlu1 %v4155_v17  ;;  %v4158_v47 = vsel %vm2487_vm1, %v3786_v59, 0.0  ;;  %v4161_v17 = vsel %vm2487_vm1, %v3787_v35, 0.0 }
 0x2b4   :  { %v9248_v25 = vpop.xlane.xlu1 %3946  ;;  %4159 = vadd.xlane.f32.xlu0 %v4158_v47  ;;  %v3789_v57 = vmul.f32 %v2472_v24, %v2472_v24 }
 0x2b5   :  { %11621 = vst [vmem:[#allocation27_spill] sm:$0xff] %v9248_v25  ;;  %v3788_v5 = vmul.f32 %v2467_v31, %v2467_v31  ;;  %v6919_v7 = vpop.f32.mrb[188].mxu1  ;;  %v9250_v41 = vpop.xlane.xlu0 %3949  ;;  %7110 = vmatprep.mubr.msk.f32.mxu0 %vm2487_vm1, %v2467_v31 }
 0x2b6   :  { %11622 = vst [vmem:[#allocation28_spill] sm:$0xff] %v9250_v41  ;;  %v2482_v44 = vadd.f32 %v8965_v15, %v6919_v7  ;;  %v9254_v61 = vpop.f32.mrb[84].mxu0  ;;  %v2476_v10 = vpop.f32.mrb[189].mxu1  ;;  %7111 = vmatmul.mubr.msk.f32.gmra.mrb[190].mxu0 %vm2487_vm1, %v2472_v24  ;;  %v4167_v35 = vsel %vm2487_vm1, %v3789_v57, 0.0 }
 0x2b7   :  { %v2477_v59 = vadd.f32 %v8965_v15, %v2476_v10  ;;  %v9259_v25 = vpop.f32.mrb[85].mxu0  ;;  %4162 = vadd.xlane.f32.xlu1 %v4161_v17  ;;  %v4164_v47 = vsel %vm2487_vm1, %v3788_v5, 0.0 }
 0x2b8   :  { %v9262_v41 = vpop.xlane.xlu1 %3952  ;;  %4165 = vadd.xlane.f32.xlu0 %v4164_v47  ;;  %v3791_v18 = vmul.f32 %v2482_v44, %v2482_v44  ;;  %v4176_v47 = vlaneseq }
 0x2b9   :  { %11623 = vst [vmem:[#allocation29_spill] sm:$0xff] %v9262_v41  ;;  %v3790_v31 = vmul.f32 %v2477_v59, %v2477_v59  ;;  %v3660_v52 = vpop.f32.mrb[190].mxu1  ;;  %v9264_v7 = vpop.xlane.xlu0 %3955  ;;  %7113 = vmatprep.mubr.msk.f32.mxu0 %vm2487_vm1, %v2477_v59 }
 0x2ba   :  { %11624 = vst [vmem:[#allocation30_spill] sm:$0xff] %v9264_v7  ;;  %v9267_v24 = vpop.f32.mrb[86].mxu0  ;;  %7114 = vmatmul.mubr.msk.f32.gmra.mrb[192].mxu0 %vm2487_vm1, %v2482_v44  ;;  %v7122_v15 = vpop.f32.mrb[191].mxu1  ;;  %v4173_v44 = vsel %vm2487_vm1, %v3791_v18, 0.0  ;;  %v4177_v57 = vshrl.u32 %v4176_v47, 7 }
 0x2bb   :  { %v9271_v10 = vpop.f32.mrb[87].mxu0  ;;  %4168 = vadd.xlane.f32.xlu1 %v4167_v35  ;;  %v4170_v5 = vsel %vm2487_vm1, %v3790_v31, 0.0 }
 0x2bc   :  { %11625 = vst [vmem:[#allocation31_spill] sm:$0xff] %v9271_v10  ;;  %v9274_v17 = vpop.xlane.xlu1 %3958  ;;  %4171 = vadd.xlane.f32.xlu0 %v4170_v5 }
 0x2bd   :  { %11626 = vst [vmem:[#allocation32_spill] sm:$0xff] %v9274_v17  ;;  %v9276_v7 = vpop.xlane.xlu0 %3961  ;;  %v9278_v59 = vpop.f32.mrb[88].mxu0  ;;  %v4178_v17 = vsub.s32 0, %v4177_v57 }
 0x2be   :  { %11627 = vst [vmem:[#allocation33_spill] sm:$0xff] %v9276_v7  ;;  %11628 = vst [vmem:[#allocation34_spill] sm:$0xff] %v9278_v59  ;;  %v9280_v41 = vpop.f32.mrb[89].mxu0 }
 0x2bf   :  { %11629 = vst [vmem:[#allocation35_spill] sm:$0xff] %v9280_v41  ;;  %4174 = vadd.xlane.f32.xlu1 %v4173_v44  ;;  %v9301_v44 = vrot.slane %v3660_v52, %v4178_v17  ;;  %v4309_v17 = vmul.f32 2.0, %v9128_v32  ;;  %v4311_v32 = vmul.f32 2.0, %v9142_v30  ;;  %v4313_v30 = vmul.f32 2.0, %v9156_v63 }
 0x2c0   :  { %v9283_v15 = vpop.xlane.xlu1 %3964 }
 0x2c1   :  { %11630 = vst [vmem:[#allocation36_spill] sm:$0xff] %v9283_v15  ;;  %v9285_v16 = vpop.xlane.xlu0 %3967  ;;  %v9287_v35 = vpop.f32.mrb[90].mxu0  ;;  %11636 = vst [vmem:[#allocation42_spill] sm:$0xff] %v9301_v44  ;;  %v4181_v57 = vadd.f32 %v9301_v44, %v8949_v20 }
 0x2c2   :  { %11631 = vst [vmem:[#allocation37_spill] sm:$0xff] %v9285_v16  ;;  %v9289_v31 = vpop.f32.mrb[91].mxu0 }
 0x2c3   :  { %11632 = vst [vmem:[#allocation38_spill] sm:$0xff] %v9289_v31  ;;  %v4437_v10 = vsub.f32 %v4181_v57, %v4309_v17 }
 0x2c4   :  { %v9291_v5 = vpop.xlane.xlu1 %3970 }
 0x2c5   :  { %11633 = vst [vmem:[#allocation39_spill] sm:$0xff] %v9291_v5  ;;  %v9293_v7 = vpop.xlane.xlu0 %3973  ;;  %v9295_v0 = vpop.f32.mrb[92].mxu0  ;;  %v4565_v17 = vmax.f32 %v4437_v10, 0.0  ;;  %v9354_v10 = vmul.f32 2.0, %v9184_v1 }
 0x2c6   :  { %11634 = vst [vmem:[#allocation40_spill] sm:$0xff] %v9293_v7  ;;  %v9297_v41 = vpop.f32.mrb[93].mxu0 }
 0x2c7   :  { %v4693_v63 = vadd.f32 1.0, %v4565_v17 }
 0x2c8   :  { %v9299_v18 = vpop.xlane.xlu1 %3976 }
 0x2c9   :  { %11635 = vst [vmem:[#allocation41_spill] sm:$0xff] %v9299_v18  ;;  %v9303_v47 = vpop.xlane.xlu0 %3979  ;;  %v9305_v16 = vpop.f32.mrb[94].mxu0  ;;  %v4180_v18 = vadd.f32 %v9301_v44, %v8959_v34  ;;  %7165 = vrcp.f32 %v4693_v63  ;;  %v9423_v63 = vmul.f32 2.0, %v9295_v0  ;;  %v9440_v0 = vadd.f32 %v9301_v44, %v9102_v33 }
 0x2ca   :  { %11637 = vst [vmem:[#allocation43_spill] sm:$0xff] %v9303_v47  ;;  %v9307_v15 = vpop.f32.mrb[95].mxu0  ;;  %v4308_v47 = vmul.f32 2.0, %v9133_v58  ;;  %v4310_v58 = vmul.f32 2.0, %v9147_v55  ;;  %v4312_v55 = vmul.f32 2.0, %v9161_v56 }
 0x2cc   :  { %v9309_v31 = vpop.xlane.xlu1 %3982  ;;  %v4436_v34 = vsub.f32 %v4180_v18, %v4308_v47 }
 0x2cd   :  { %11638 = vst [vmem:[#allocation44_spill] sm:$0xff] %v9309_v31  ;;  %v9313_v7 = vpop.xlane.xlu0 %3985  ;;  %v9315_v5 = vpop.f32.mrb[96].mxu0  ;;  %v4183_v31 = vadd.f32 %v9301_v44, %v8957_v19  ;;  %v4185_v19 = vadd.f32 %v9301_v44, %v8982_v21  ;;  %v4314_v21 = vmul.f32 2.0, %v9175_v42 }
 0x2ce   :  { %11639 = vst [vmem:[#allocation45_spill] sm:$0xff] %v9313_v7  ;;  %11640 = vst [vmem:[#allocation46_spill] sm:$0xff] %v9315_v5  ;;  %v9319_v52 = vpop.f32.mrb[97].mxu0  ;;  %v4182_v5 = vadd.f32 %v9301_v44, %v8972_v14  ;;  %v4184_v14 = vadd.f32 %v9301_v44, %v8974_v9  ;;  %v4564_v47 = vmax.f32 %v4436_v34, 0.0  ;;  %v4187_v9 = vadd.f32 %v9301_v44, %v8992_v50 }
 0x2cf   :  { %11641 = vst [vmem:[#allocation47_spill] sm:$0xff] %v9319_v52  ;;  %v4439_v57 = vsub.f32 %v4183_v31, %v4311_v32  ;;  %v4186_v31 = vadd.f32 %v9301_v44, %v8984_v39  ;;  %v9370_v39 = vmul.f32 2.0, %v9198_v49  ;;  %v9376_v50 = vmul.f32 2.0, %v9217_v45 }
 0x2d0   :  { %v9323_v59 = vpop.xlane.xlu1 %3988  ;;  %v4438_v18 = vsub.f32 %v4182_v5, %v4310_v58  ;;  %v4441_v5 = vsub.f32 %v4185_v19, %v4313_v30  ;;  %v4440_v42 = vsub.f32 %v4184_v14, %v4312_v55  ;;  %v4188_v19 = vadd.f32 %v9301_v44, %v8994_v40 }
 0x2d1   :  { %11642 = vst [vmem:[#allocation48_spill] sm:$0xff] %v9323_v59  ;;  %v9327_v20 = vpop.xlane.xlu0 %3991  ;;  %v9329_v7 = vpop.f32.mrb[98].mxu0  ;;  %v4567_v34 = vmax.f32 %v4439_v57, 0.0  ;;  %v9384_v57 = vadd.f32 %v9301_v44, %v9082_v37  ;;  %v4442_v17 = vsub.f32 %v4186_v31, %v4314_v21  ;;  %v9387_v49 = vmul.f32 2.0, %v9287_v35 }
 0x2d2   :  { %11643 = vst [vmem:[#allocation49_spill] sm:$0xff] %v9327_v20  ;;  %v9333_v8 = vpop.f32.mrb[99].mxu0  ;;  %v4566_v1 = vmax.f32 %v4438_v18, 0.0  ;;  %v4569_v18 = vmax.f32 %v4441_v5, 0.0  ;;  %v4568_v30 = vmax.f32 %v4440_v42, 0.0  ;;  %v4190_v35 = vadd.f32 %v9301_v44, %v9004_v28 }
 0x2d3   :  { %11644 = vst [vmem:[#allocation50_spill] sm:$0xff] %v9333_v8  ;;  %v4695_v45 = vadd.f32 1.0, %v4567_v34  ;;  %v9405_v21 = vadd.f32 %v9301_v44, %v9014_v60  ;;  %v9409_v31 = vadd.f32 %v9301_v44, %v9022_v43 }
 0x2d4   :  { %v9337_v52 = vpop.xlane.xlu1 %3994  ;;  %v4697_v60 = vadd.f32 1.0, %v4569_v18 }
 0x2d5   :  { %11645 = vst [vmem:[#allocation51_spill] sm:$0xff] %v9337_v52  ;;  %v9341_v20 = vpop.xlane.xlu0 %3997  ;;  %v9343_v59 = vpop.f32.mrb[100].mxu0  ;;  %v4315_v52 = vmul.f32 2.0, %v9170_v36  ;;  %v4316_v36 = vmul.f32 2.0, %v9189_v11  ;;  %v4189_v11 = vadd.f32 %v9301_v44, %v9002_v53  ;;  %v4694_v53 = vadd.f32 1.0, %v4566_v1 }
 0x2d6   :  { %11646 = vst [vmem:[#allocation52_spill] sm:$0xff] %v9341_v20  ;;  %v9347_v8 = vpop.f32.mrb[101].mxu0  ;;  %v4692_v20 = vadd.f32 1.0, %v4564_v47  ;;  %v4696_v1 = vadd.f32 1.0, %v4568_v30 }
 0x2d7   :  { %11647 = vst [vmem:[#allocation53_spill] sm:$0xff] %v9347_v8  ;;  %v4444_v28 = vsub.f32 %v4188_v19, %v4316_v36  ;;  %v4445_v5 = vsub.f32 %v4189_v11, %v9354_v10  ;;  %v9436_v10 = vadd.f32 %v9301_v44, %v9094_v4  ;;  %v9452_v4 = vmul.f32 2.0, %v9307_v15 }
 0x2d8   :  { %v9358_v32 = vpop.xlane.xlu1 %4000  ;;  %7167 = vrcp.f32 %v4692_v20  ;;  %v9413_v20 = vadd.f32 %v9301_v44, %v9084_v23  ;;  %v4570_v23 = vmax.f32 %v4442_v17, 0.0 }
 0x2d9   :  { %11648 = vst [vmem:[#allocation54_spill] sm:$0xff] %v9358_v32  ;;  %v9362_v58 = vpop.xlane.xlu0 %4003  ;;  %v9364_v56 = vpop.f32.mrb[102].mxu0  ;;  %v9373_v32 = vmul.f32 2.0, %v9203_v46  ;;  %v4443_v46 = vsub.f32 %v4187_v9, %v4315_v52  ;;  %v4191_v52 = vadd.f32 %v9301_v44, %v9012_v2  ;;  %v9417_v9 = vadd.f32 %v9301_v44, %v9092_v12 }
 0x2da   :  { %v9367_v8 = vpop.f32.mrb[103].mxu0  ;;  %7169 = vrcp.f32 %v4695_v45  ;;  %v9430_v12 = vmul.f32 2.0, %v9297_v41  ;;  %v4572_v33 = vmax.f32 %v4444_v28, 0.0  ;;  %v4573_v45 = vmax.f32 %v4445_v5, 0.0 }
 0x2db   :  { %v4571_v34 = vmax.f32 %v4443_v46, 0.0  ;;  %7171 = vrcp.f32 %v4694_v53  ;;  %v4446_v19 = vsub.f32 %v4190_v35, %v9373_v32  ;;  %v4447_v17 = vsub.f32 %v4191_v52, %v9370_v39  ;;  %v9466_v52 = vpop.eup %7165 }
 0x2dc   :  { %v9389_v14 = vpop.xlane.xlu1 %4006  ;;  %v9449_v46 = vmul.f32 2.0, %v9305_v16  ;;  %7173 = vrcp.f32 %v4697_v60  ;;  %v4698_v39 = vadd.f32 1.0, %v4570_v23  ;;  %11650 = vst [vmem:[#allocation56_spill] sm:$0xff] %v9466_v52  ;;  %v4321_v28 = vmul.f32 2.0, %v9212_v13 }
 0x2dd   :  { %v9391_v47 = vpop.xlane.xlu0 %4009  ;;  %v9393_v40 = vpop.f32.mrb[104].mxu0  ;;  %v4699_v30 = vadd.f32 1.0, %v4571_v34  ;;  %7175 = vrcp.f32 %v4696_v1  ;;  %v4322_v34 = vmul.f32 2.0, %v9231_v54  ;;  %v4194_v60 = vadd.f32 %v9301_v44, %v9024_v6 }
 0x2de   :  { %v9397_v55 = vpop.f32.mrb[105].mxu0  ;;  %v4195_v23 = vadd.f32 %v9301_v44, %v9032_v22  ;;  %v4448_v1 = vsub.f32 %v9405_v21, %v9376_v50  ;;  %v4449_v35 = vsub.f32 %v9409_v31, %v4321_v28  ;;  %v4575_v41 = vmax.f32 %v4447_v17, 0.0 }
 0x2df   :  { %v4701_v11 = vadd.f32 1.0, %v4573_v45  ;;  %7177 = vrcp.f32 %v4699_v30  ;;  %v4574_v54 = vmax.f32 %v4446_v19, 0.0  ;;  %v4951_v6 = vsel %vm2487_vm1, %v9466_v52, 0.0 }
 0x2e0   :  { %v9420_v2 = vpop.xlane.xlu1 %4012  ;;  %7179 = vrcp.f32 %v4698_v39  ;;  %v4323_v21 = vmul.f32 2.0, %v9226_v3  ;;  %4952 = vadd.xlane.f32.xlu1 %v4951_v6  ;;  %v4324_v45 = vmul.f32 2.0, %v9245_v26  ;;  %v4196_v19 = vadd.f32 %v9301_v44, %v9034_v27 }
 0x2e1   :  { %v9425_v43 = vpop.xlane.xlu0 %4015  ;;  %v9427_v42 = vpop.f32.mrb[106].mxu0  ;;  %v4450_v30 = vsub.f32 %v4194_v60, %v4322_v34  ;;  %v4577_v3 = vmax.f32 %v4449_v35, 0.0  ;;  %v4703_v6 = vadd.f32 1.0, %v4575_v41  ;;  %7181 = vrcp.f32 %v4701_v11 }
 0x2e2   :  { %v9432_v36 = vpop.f32.mrb[107].mxu0  ;;  %v9469_v5 = vpop.eup %7167  ;;  %v4451_v28 = vsub.f32 %v4195_v23, %v4323_v21  ;;  %v4702_v26 = vadd.f32 1.0, %v4574_v54  ;;  %v4325_v34 = vmul.f32 2.0, %v9240_v29  ;;  %v4327_v35 = vmul.f32 2.0, %v9254_v61 }
 0x2e3   :  { %11651 = vst [vmem:[#allocation57_spill] sm:$0xff] %v9469_v5  ;;  %v4948_v31 = vsel %vm2487_vm1, %v9469_v5, 0.0  ;;  %v4326_v60 = vmul.f32 2.0, %v9259_v25  ;;  %v4199_v23 = vadd.f32 %v9301_v44, %v9052_v48  ;;  %v4705_v21 = vadd.f32 1.0, %v4577_v3 }
 0x2e4   :  { %v9454_v18 = vpop.xlane.xlu1 %4018  ;;  %v9489_v50 = vpop.eup %7169  ;;  %4949 = vadd.xlane.f32.xlu0 %v4948_v31  ;;  %v4579_v61 = vmax.f32 %v4451_v28, 0.0 }
 0x2e5   :  { %v9456_v32 = vpop.xlane.xlu0 %4021  ;;  %v9458_v53 = vpop.f32.mrb[108].mxu0  ;;  %11654 = vst [vmem:[#allocation60_spill] sm:$0xff] %v9489_v50  ;;  %v4957_v27 = vsel %vm2487_vm1, %v9489_v50, 0.0 }
 0x2e6   :  { %11649 = vst [vmem:[#allocation55_spill] sm:$0xff] %v9456_v32  ;;  %v9464_v15 = vpop.f32.mrb[109].mxu0  ;;  %v4700_v32 = vadd.f32 1.0, %v4572_v33  ;;  %v9494_v17 = vpop.eup %7171  ;;  %v4197_v33 = vadd.f32 %v9301_v44, %v9042_v62  ;;  %4958 = vadd.xlane.f32.xlu1 %v4957_v27 }
 0x2e7   :  { %11655 = vst [vmem:[#allocation61_spill] sm:$0xff] %v9494_v17  ;;  %v9511_v62 = vpop.eup %7173  ;;  %v4954_v11 = vsel %vm2487_vm1, %v9494_v17, 0.0  ;;  %v4578_v17 = vmax.f32 %v4450_v30, 0.0  ;;  %v4200_v30 = vadd.f32 %v9301_v44, %v9054_v51 }
 0x2e8   :  { %v9478_v16 = vpop.xlane.xlu1 %4024  ;;  %7183 = vrcp.f32 %v4700_v32  ;;  %11657 = vst [vmem:[#allocation63_spill] sm:$0xff] %v9511_v62  ;;  %v9517_v41 = vpop.eup %7175  ;;  %v4198_v32 = vadd.f32 %v9301_v44, %v9044_v38  ;;  %4955 = vadd.xlane.f32.xlu0 %v4954_v11  ;;  %v4453_v29 = vsub.f32 %v4197_v33, %v4325_v34  ;;  %v4963_v38 = vsel %vm2487_vm1, %v9511_v62, 0.0 }
 0x2e9   :  { %11652 = vst [vmem:[#allocation58_spill] sm:$0xff] %v9478_v16  ;;  %v9481_v13 = vpop.xlane.xlu0 %4027  ;;  %v9483_v37 = vpop.f32.mrb[110].mxu0  ;;  %11658 = vst [vmem:[#allocation64_spill] sm:$0xff] %v9517_v41  ;;  %7185 = vrcp.f32 %v4703_v6  ;;  %v4455_v6 = vsub.f32 %v4199_v23, %v4327_v35  ;;  %v4707_v11 = vadd.f32 1.0, %v4579_v61 }
 0x2ea   :  { %11653 = vst [vmem:[#allocation59_spill] sm:$0xff] %v9481_v13  ;;  %v9487_v22 = vpop.f32.mrb[111].mxu0  ;;  %v4576_v13 = vmax.f32 %v4448_v1, 0.0  ;;  %v4452_v1 = vsub.f32 %v4196_v19, %v4324_v45  ;;  %7187 = vrcp.f32 %v4702_v26  ;;  %v9534_v48 = vpop.eup %7177  ;;  %v4329_v45 = vmul.f32 2.0, %v9267_v24  ;;  %4964 = vadd.xlane.f32.xlu1 %v4963_v38  ;;  %v11665_v24 = vld [vmem:[#allocation31_spill] sm:$0xff] }
 0x2eb   :  { %11661 = vst [vmem:[#allocation67_spill] sm:$0xff] %v9534_v48  ;;  %v4960_v19 = vsel %vm2487_vm1, %v9517_v41, 0.0  ;;  %v9539_v33 = vpop.eup %7179  ;;  %v4454_v3 = vsub.f32 %v4198_v32, %v4326_v60  ;;  %v4581_v34 = vmax.f32 %v4453_v29, 0.0  ;;  %v4328_v38 = vmul.f32 2.0, %v11665_v24 }
 0x2ec   :  { %v9501_v39 = vpop.xlane.xlu1 %4030  ;;  %v4704_v25 = vadd.f32 1.0, %v4576_v13  ;;  %11662 = vst [vmem:[#allocation68_spill] sm:$0xff] %v9539_v33  ;;  %v11663_v13 = vld [vmem:[#allocation2_spill] sm:$0xff]  ;;  %4961 = vadd.xlane.f32.xlu0 %v4960_v19  ;;  %7189 = vrcp.f32 %v4705_v21  ;;  %v4580_v41 = vmax.f32 %v4452_v1, 0.0  ;;  %v4969_v51 = vsel %vm2487_vm1, %v9534_v48, 0.0  ;;  %v9554_v60 = vpop.eup %7181 }
 0x2ed   :  { %v9503_v52 = vpop.xlane.xlu0 %4033  ;;  %v9505_v5 = vpop.f32.mrb[112].mxu0  ;;  %v4201_v28 = vadd.f32 %v9301_v44, %v11663_v13  ;;  %11666 = vst [vmem:[#allocation31_spill] sm:$0xff] %v9554_v60  ;;  %v4966_v35 = vsel %vm2487_vm1, %v9539_v33, 0.0  ;;  %v4582_v61 = vmax.f32 %v4454_v3, 0.0  ;;  %v4583_v1 = vmax.f32 %v4455_v6, 0.0  ;;  %v11670_v19 = vld [vmem:[#allocation34_spill] sm:$0xff] }
 0x2ee   :  { %11656 = vst [vmem:[#allocation62_spill] sm:$0xff] %v9503_v52  ;;  %v9509_v16 = vpop.f32.mrb[113].mxu0  ;;  %7191 = vrcp.f32 %v4704_v25  ;;  %4970 = vadd.xlane.f32.xlu1 %v4969_v51  ;;  %v4709_v21 = vadd.f32 1.0, %v4581_v34  ;;  %v4456_v25 = vsub.f32 %v4200_v30, %v4328_v38  ;;  %v4331_v13 = vmul.f32 2.0, %v11670_v19  ;;  %v11672_v33 = vld [vmem:[#allocation35_spill] sm:$0xff] }
 0x2ef   :  { %v4457_v29 = vsub.f32 %v4201_v28, %v4329_v45  ;;  %7193 = vrcp.f32 %v4707_v11  ;;  %v4708_v51 = vadd.f32 1.0, %v4580_v41  ;;  %v4330_v48 = vmul.f32 2.0, %v11672_v33  ;;  %v11675_v3 = vld [vmem:[#allocation3_spill] sm:$0xff]  ;;  %v11677_v41 = vld [vmem:[#allocation4_spill] sm:$0xff] }
 0x2f0   :  { %v9524_v54 = vpop.xlane.xlu1 %4036  ;;  %4967 = vadd.xlane.f32.xlu0 %v4966_v35  ;;  %v4203_v6 = vadd.f32 %v9301_v44, %v11675_v3  ;;  %v4710_v11 = vadd.f32 1.0, %v4582_v61  ;;  %v4711_v35 = vadd.f32 1.0, %v4583_v1  ;;  %v4584_v19 = vmax.f32 %v4456_v25, 0.0  ;;  %v11685_v25 = vld [vmem:[#allocation6_spill] sm:$0xff] }
 0x2f1   :  { %11659 = vst [vmem:[#allocation65_spill] sm:$0xff] %v9524_v54  ;;  %v9526_v31 = vpop.xlane.xlu0 %4039  ;;  %v9528_v27 = vpop.f32.mrb[114].mxu0  ;;  %v4585_v33 = vmax.f32 %v4457_v29, 0.0 }
 0x2f2   :  { %11660 = vst [vmem:[#allocation66_spill] sm:$0xff] %v9526_v31  ;;  %v9532_v50 = vpop.f32.mrb[115].mxu0  ;;  %v4706_v31 = vadd.f32 1.0, %v4578_v17  ;;  %v9560_v23 = vpop.eup %7183 }
 0x2f3   :  { %11668 = vst [vmem:[#allocation70_spill] sm:$0xff] %v9560_v23  ;;  %v9572_v28 = vpop.eup %7185  ;;  %v4972_v30 = vsel %vm2487_vm1, %v9560_v23, 0.0  ;;  %v11681_v23 = vld [vmem:[#allocation38_spill] sm:$0xff] }
 0x2f4   :  { %v9545_v26 = vpop.xlane.xlu1 %4042  ;;  %7195 = vrcp.f32 %v4706_v31  ;;  %11674 = vst [vmem:[#allocation72_spill] sm:$0xff] %v9572_v28  ;;  %v9578_v34 = vpop.eup %7187  ;;  %v4202_v31 = vadd.f32 %v9301_v44, %v11677_v41  ;;  %4973 = vadd.xlane.f32.xlu0 %v4972_v30  ;;  %v4981_v41 = vsel %vm2487_vm1, %v9572_v28, 0.0 }
 0x2f5   :  { %11664 = vst [vmem:[#allocation2_spill] sm:$0xff] %v9545_v26  ;;  %v9548_v62 = vpop.f32.mrb[116].mxu0  ;;  %v9558_v32 = vpop.xlane.xlu0 %4045  ;;  %11676 = vst [vmem:[#allocation3_spill] sm:$0xff] %v9578_v34  ;;  %7197 = vrcp.f32 %v4709_v21  ;;  %v4332_v26 = vmul.f32 2.0, %v11681_v23  ;;  %v4978_v1 = vsel %vm2487_vm1, %v9578_v34, 0.0 }
 0x2f6   :  { %v9552_v54 = vpop.f32.mrb[117].mxu0  ;;  %11667 = vst [vmem:[#allocation69_spill] sm:$0xff] %v9558_v32  ;;  %v4975_v32 = vsel %vm2487_vm1, %v9554_v60, 0.0  ;;  %v4459_v60 = vsub.f32 %v4203_v6, %v4331_v13  ;;  %7199 = vrcp.f32 %v4708_v51  ;;  %v4458_v3 = vsub.f32 %v4202_v31, %v4330_v48  ;;  %v9593_v61 = vpop.eup %7189 }
 0x2f7   :  { %4976 = vadd.xlane.f32.xlu1 %v4975_v32  ;;  %11683 = vst [vmem:[#allocation75_spill] sm:$0xff] %v9593_v61  ;;  %v4204_v13 = vadd.f32 %v9301_v44, %v11685_v25  ;;  %v4713_v48 = vadd.f32 1.0, %v4585_v33  ;;  %v4712_v51 = vadd.f32 1.0, %v4584_v19  ;;  %7201 = vrcp.f32 %v4711_v35  ;;  %v11693_v19 = vld [vmem:[#allocation8_spill] sm:$0xff] }
 0x2f8   :  { %v9562_v17 = vpop.xlane.xlu1 %4048  ;;  %v9597_v21 = vpop.eup %7191  ;;  %4979 = vadd.xlane.f32.xlu0 %v4978_v1  ;;  %v4587_v23 = vmax.f32 %v4459_v60, 0.0  ;;  %7203 = vrcp.f32 %v4710_v11  ;;  %v4586_v30 = vmax.f32 %v4458_v3, 0.0  ;;  %v11692_v11 = vld [vmem:[#allocation5_spill] sm:$0xff]  ;;  %v9623_v3 = vadd.f32 %v9301_v44, %v11693_v19  ;;  %v11694_v1 = vld [vmem:[#allocation7_spill] sm:$0xff] }
 0x2f9   :  { %11669 = vst [vmem:[#allocation71_spill] sm:$0xff] %v9562_v17  ;;  %v9565_v24 = vpop.f32.mrb[118].mxu0  ;;  %v9584_v17 = vpop.xlane.xlu0 %4051  ;;  %11684 = vst [vmem:[#allocation76_spill] sm:$0xff] %v9597_v21  ;;  %v4460_v31 = vsub.f32 %v4204_v13, %v4332_v26  ;;  %v4984_v33 = vsel %vm2487_vm1, %v9597_v21, 0.0  ;;  %v9619_v26 = vadd.f32 %v9301_v44, %v11692_v11  ;;  %v9627_v25 = vadd.f32 %v9301_v44, %v11694_v1  ;;  %v11695_v13 = vld [vmem:[#allocation10_spill] sm:$0xff]  ;;  %v11696_v21 = vld [vmem:[#allocation9_spill] sm:$0xff] }
 0x2fa   :  { %11671 = vst [vmem:[#allocation34_spill] sm:$0xff] %v9565_v24  ;;  %v9570_v45 = vpop.f32.mrb[119].mxu0  ;;  %11679 = vst [vmem:[#allocation73_spill] sm:$0xff] %v9584_v17  ;;  %7205 = vrcp.f32 %v4713_v48  ;;  %v4715_v11 = vadd.f32 1.0, %v4587_v23  ;;  %v4714_v1 = vadd.f32 1.0, %v4586_v30  ;;  %v11702_v23 = vld [vmem:[#allocation11_spill] sm:$0xff] }
 0x2fb   :  { %11673 = vst [vmem:[#allocation35_spill] sm:$0xff] %v9570_v45  ;;  %4982 = vadd.xlane.f32.xlu1 %v4981_v41  ;;  %v4987_v41 = vsel %vm2487_vm1, %v9593_v61, 0.0  ;;  %v9635_v61 = vadd.f32 %v9301_v44, %v11696_v21  ;;  %7207 = vrcp.f32 %v4712_v51  ;;  %v11701_v21 = vld [vmem:[#allocation12_spill] sm:$0xff]  ;;  %v11708_v17 = vld [vmem:[#allocation47_spill] sm:$0xff] }
 0x2fc   :  { %v9582_v38 = vpop.xlane.xlu1 %4054  ;;  %4985 = vadd.xlane.f32.xlu0 %v4984_v33  ;;  %v9650_v48 = vadd.f32 %v9301_v44, %v11701_v21  ;;  %v11706_v21 = vld [vmem:[#allocation15_spill] sm:$0xff]  ;;  %7209 = vrcp.f32 %v4715_v11 }
 0x2fd   :  { %11678 = vst [vmem:[#allocation4_spill] sm:$0xff] %v9582_v38  ;;  %v9586_v32 = vpop.f32.mrb[120].mxu0  ;;  %v9609_v38 = vpop.eup %7193  ;;  %7211 = vrcp.f32 %v4714_v1 }
 0x2fe   :  { %11680 = vst [vmem:[#allocation74_spill] sm:$0xff] %v9586_v32  ;;  %v9591_v29 = vpop.f32.mrb[121].mxu0  ;;  %11689 = vst [vmem:[#allocation79_spill] sm:$0xff] %v9609_v38  ;;  %v9613_v35 = vpop.xlane.xlu0 %4057 }
 0x2ff   :  { %11682 = vst [vmem:[#allocation38_spill] sm:$0xff] %v9591_v29  ;;  %4988 = vadd.xlane.f32.xlu1 %v4987_v41  ;;  %11690 = vst [vmem:[#allocation80_spill] sm:$0xff] %v9613_v35  ;;  %v9615_v60 = vpop.eup %7195  ;;  %v9631_v41 = vadd.f32 %v9301_v44, %v11695_v13  ;;  %v4993_v13 = vsel %vm2487_vm1, %v9609_v38, 0.0  ;;  %v4338_v29 = vmul.f32 2.0, %v11708_v17  ;;  %v11714_v17 = vsub.f32 %v9413_v20, %v9430_v12 }
 0x300   :  { %v9605_v28 = vpop.xlane.xlu1 %4060  ;;  %11691 = vst [vmem:[#allocation81_spill] sm:$0xff] %v9615_v60  ;;  %v9646_v33 = vpop.eup %7197  ;;  %v4990_v51 = vsel %vm2487_vm1, %v9615_v60, 0.0 }
 0x301   :  { %v9601_v6 = vpop.f32.mrb[122].mxu0  ;;  %11687 = vst [vmem:[#allocation77_spill] sm:$0xff] %v9605_v28  ;;  %v11697_v28 = vsub.f32 %v9384_v57, %v9387_v49  ;;  %11700 = vst [vmem:[#allocation7_spill] sm:$0xff] %v9646_v33  ;;  %v9654_v57 = vadd.f32 %v9301_v44, %v11702_v23  ;;  %v11703_v49 = vld [vmem:[#allocation13_spill] sm:$0xff]  ;;  %v9662_v30 = vpop.eup %7199  ;;  %v11707_v23 = vld [vmem:[#allocation46_spill] sm:$0xff]  ;;  %4991 = vadd.xlane.f32.xlu0 %v4990_v51  ;;  %v4590_v51 = vmax.f32 %v11714_v17, 0.0 }
 0x302   :  { %11686 = vst [vmem:[#allocation6_spill] sm:$0xff] %v9601_v6  ;;  %v9607_v34 = vpop.f32.mrb[123].mxu0  ;;  %11704 = vst [vmem:[#allocation10_spill] sm:$0xff] %v9662_v30  ;;  %v9683_v24 = vpop.xlane.xlu0 %4063  ;;  %v4996_v20 = vsel %vm2487_vm1, %v9662_v30, 0.0  ;;  %v11721_v17 = vld [vmem:[#allocation20_spill] sm:$0xff]  ;;  %v11723_v30 = vld [vmem:[#allocation50_spill] sm:$0xff] }
 0x303   :  { %11688 = vst [vmem:[#allocation78_spill] sm:$0xff] %v9607_v34  ;;  %v4589_v19 = vmax.f32 %v11697_v28, 0.0  ;;  %v4588_v34 = vmax.f32 %v4460_v31, 0.0  ;;  %v9658_v28 = vadd.f32 %v9301_v44, %v11703_v49  ;;  %4994 = vadd.xlane.f32.xlu1 %v4993_v13  ;;  %v11705_v31 = vld [vmem:[#allocation14_spill] sm:$0xff]  ;;  %v11710_v13 = vld [vmem:[#allocation16_spill] sm:$0xff]  ;;  %11712 = vst [vmem:[#allocation12_spill] sm:$0xff] %v9683_v24  ;;  %v9694_v11 = vpop.eup %7201  ;;  %v4466_v24 = vsub.f32 %v9619_v26, %v4338_v29 }
 0x304   :  { %v9666_v38 = vadd.f32 %v9301_v44, %v11705_v31  ;;  %v9674_v49 = vpop.xlane.xlu1 %4066  ;;  %v9678_v60 = vadd.f32 %v9301_v44, %v11710_v13  ;;  %v11711_v31 = vsub.f32 %v9417_v9, %v9423_v63  ;;  %v4999_v13 = vsel %vm2487_vm1, %v9646_v33, 0.0  ;;  %11716 = vst [vmem:[#allocation14_spill] sm:$0xff] %v9694_v11  ;;  %v11718_v63 = vld [vmem:[#allocation18_spill] sm:$0xff]  ;;  %v9710_v12 = vpop.eup %7203 }
 0x305   :  { %v9640_v35 = vpop.f32.mrb[124].mxu0  ;;  %11709 = vst [vmem:[#allocation9_spill] sm:$0xff] %v9674_v49  ;;  %v4717_v32 = vadd.f32 1.0, %v4589_v19  ;;  %v11717_v19 = vld [vmem:[#allocation17_spill] sm:$0xff]  ;;  %11720 = vst [vmem:[#allocation15_spill] sm:$0xff] %v9710_v12  ;;  %v9714_v33 = vadd.f32 %v9301_v44, %v11721_v17  ;;  %4997 = vadd.xlane.f32.xlu0 %v4996_v20  ;;  %v4718_v17 = vadd.f32 1.0, %v4590_v51 }
 0x306   :  { %11698 = vst [vmem:[#allocation5_spill] sm:$0xff] %v9640_v35  ;;  %v9644_v6 = vpop.f32.mrb[125].mxu0  ;;  %v4339_v35 = vmul.f32 2.0, %v11707_v23  ;;  %v4591_v45 = vmax.f32 %v11711_v31, 0.0  ;;  %v4716_v23 = vadd.f32 1.0, %v4588_v34  ;;  %v9698_v9 = vadd.f32 %v9301_v44, %v11717_v19  ;;  %v11719_v34 = vld [vmem:[#allocation19_spill] sm:$0xff]  ;;  %v9750_v51 = vpop.xlane.xlu0 %4069 }
 0x307   :  { %11699 = vst [vmem:[#allocation8_spill] sm:$0xff] %v9644_v6  ;;  %v9670_v6 = vadd.f32 %v9301_v44, %v11706_v21  ;;  %v9702_v31 = vadd.f32 %v9301_v44, %v11718_v63  ;;  %v9706_v1 = vadd.f32 %v9301_v44, %v11719_v34  ;;  %5000 = vadd.xlane.f32.xlu1 %v4999_v13  ;;  %v4341_v63 = vmul.f32 2.0, %v9329_v7  ;;  %v11730_v26 = vld [vmem:[#allocation22_spill] sm:$0xff] }
 0x308   :  { %v4467_v19 = vsub.f32 %v9623_v3, %v4339_v35  ;;  %7213 = vrcp.f32 %v4717_v32  ;;  %v4719_v34 = vadd.f32 1.0, %v4591_v45  ;;  %v11722_v13 = vsub.f32 %v9440_v0, %v9449_v46  ;;  %v9730_v29 = vpop.xlane.xlu1 %4072  ;;  %v9734_v32 = vpop.eup %7205  ;;  %v11729_v0 = vld [vmem:[#allocation21_spill] sm:$0xff]  ;;  %11732 = vst [vmem:[#allocation18_spill] sm:$0xff] %v9750_v51 }
 0x309   :  { %v9685_v21 = vpop.f32.mrb[126].mxu0  ;;  %7215 = vrcp.f32 %v4716_v23  ;;  %v11725_v35 = vsub.f32 %v9436_v10, %v9452_v4  ;;  %v5005_v7 = vsel %vm2487_vm1, %v9694_v11, 0.0  ;;  %11726 = vst [vmem:[#allocation47_spill] sm:$0xff] %v9730_v29  ;;  %11728 = vst [vmem:[#allocation17_spill] sm:$0xff] %v9734_v32  ;;  %v9738_v46 = vadd.f32 %v9301_v44, %v11729_v0  ;;  %v11731_v23 = vld [vmem:[#allocation23_spill] sm:$0xff]  ;;  %v9752_v20 = vpop.eup %7207 }
 0x30a   :  { %11713 = vst [vmem:[#allocation11_spill] sm:$0xff] %v9685_v21  ;;  %v9692_v49 = vpop.f32.mrb[127].mxu0  ;;  %v4340_v21 = vmul.f32 2.0, %v11723_v30  ;;  %v9742_v30 = vadd.f32 %v9301_v44, %v11730_v26  ;;  %v9746_v10 = vadd.f32 %v9301_v44, %v11731_v23  ;;  %v5002_v4 = vsel %vm2487_vm1, %v9710_v12, 0.0  ;;  %11733 = vst [vmem:[#allocation19_spill] sm:$0xff] %v9752_v20 }
 0x30b   :  { %11715 = vst [vmem:[#allocation13_spill] sm:$0xff] %v9692_v49  ;;  %v4593_v49 = vmax.f32 %v11722_v13, 0.0  ;;  %v4592_v3 = vmax.f32 %v11725_v35, 0.0  ;;  %5006 = vadd.xlane.f32.xlu1 %v5005_v7  ;;  %v11734_v13 = vld [vmem:[#allocation24_spill] sm:$0xff]  ;;  %v4595_v0 = vmax.f32 %v4467_v19, 0.0  ;;  %v4594_v11 = vmax.f32 %v4466_v24, 0.0  ;;  %5003 = vadd.xlane.f32.xlu0 %v5002_v4  ;;  %v9768_v24 = vpop.eup %7209 }
 0x30c   :  { %v9756_v35 = vadd.f32 %v9301_v44, %v11734_v13  ;;  %v4469_v26 = vsub.f32 %v9631_v41, %v4341_v63  ;;  %7217 = vrcp.f32 %v4719_v34  ;;  %v4468_v7 = vsub.f32 %v9627_v25, %v4340_v21  ;;  %11738 = vst [vmem:[#allocation21_spill] sm:$0xff] %v9768_v24  ;;  %v11739_v41 = vld [vmem:[#allocation25_spill] sm:$0xff]  ;;  %v11740_v25 = vld [vmem:[#allocation26_spill] sm:$0xff]  ;;  %v11741_v21 = vld [vmem:[#allocation27_spill] sm:$0xff] }
 0x30d   :  { %v9723_v52 = vpop.f32.mrb[128].mxu0  ;;  %v4721_v23 = vadd.f32 1.0, %v4593_v49  ;;  %v4343_v29 = vmul.f32 2.0, %v9343_v59  ;;  %7219 = vrcp.f32 %v4718_v17  ;;  %v4720_v51 = vadd.f32 1.0, %v4592_v3  ;;  %v9784_v17 = vpop.eup %7211  ;;  %v11743_v3 = vld [vmem:[#allocation28_spill] sm:$0xff] }
 0x30e   :  { %11724 = vst [vmem:[#allocation46_spill] sm:$0xff] %v9723_v52  ;;  %v9732_v45 = vpop.f32.mrb[129].mxu0  ;;  %v5011_v13 = vsel %vm2487_vm1, %v9734_v32, 0.0  ;;  %v9772_v49 = vadd.f32 %v9301_v44, %v11739_v41  ;;  %v9776_v59 = vadd.f32 %v9301_v44, %v11740_v25  ;;  %v9780_v63 = vadd.f32 %v9301_v44, %v11741_v21  ;;  %11742 = vst [vmem:[#allocation22_spill] sm:$0xff] %v9784_v17  ;;  %v9790_v25 = vpop.xlane.xlu1 %4078 }
 0x30f   :  { %11727 = vst [vmem:[#allocation16_spill] sm:$0xff] %v9732_v45  ;;  %v11736_v45 = vld [vmem:[#allocation53_spill] sm:$0xff]  ;;  %5012 = vadd.xlane.f32.xlu1 %v5011_v13  ;;  %v5008_v34 = vsel %vm2487_vm1, %v9752_v20, 0.0  ;;  %v4723_v4 = vadd.f32 1.0, %v4595_v0  ;;  %v4722_v41 = vadd.f32 1.0, %v4594_v11  ;;  %v4597_v32 = vmax.f32 %v4469_v26, 0.0 }
 0x310   :  { %v4342_v52 = vmul.f32 2.0, %v11736_v45  ;;  %v9788_v45 = vadd.f32 %v9301_v44, %v11743_v3  ;;  %5009 = vadd.xlane.f32.xlu0 %v5008_v34  ;;  %11744 = vst [vmem:[#allocation23_spill] sm:$0xff] %v9790_v25  ;;  %7221 = vrcp.f32 %v4721_v23  ;;  %v4471_v21 = vsub.f32 %v9650_v48, %v4343_v29 }
 0x311   :  { %v9761_v12 = vpop.f32.mrb[130].mxu0  ;;  %v4345_v13 = vmul.f32 2.0, %v9364_v56  ;;  %7223 = vrcp.f32 %v4720_v51  ;;  %v4344_v0 = vmul.f32 2.0, %v9367_v8  ;;  %v5017_v11 = vsel %vm2487_vm1, %v9768_v24, 0.0  ;;  %v11750_v56 = vld [vmem:[#allocation30_spill] sm:$0xff]  ;;  %v11753_v24 = vld [vmem:[#allocation33_spill] sm:$0xff] }
 0x312   :  { %11735 = vst [vmem:[#allocation20_spill] sm:$0xff] %v9761_v12  ;;  %v9766_v19 = vpop.f32.mrb[131].mxu0  ;;  %v9794_v12 = vpop.xlane.xlu0 %4075  ;;  %v4470_v3 = vsub.f32 %v9635_v61, %v4342_v52  ;;  %v9812_v29 = vadd.f32 %v9301_v44, %v11750_v56  ;;  %v4347_v51 = vmul.f32 2.0, %v9393_v40  ;;  %v5014_v8 = vsel %vm2487_vm1, %v9784_v17, 0.0  ;;  %v11752_v61 = vld [vmem:[#allocation32_spill] sm:$0xff] }
 0x313   :  { %11737 = vst [vmem:[#allocation50_spill] sm:$0xff] %v9766_v19  ;;  %v4596_v19 = vmax.f32 %v4468_v7, 0.0  ;;  %11745 = vst [vmem:[#allocation24_spill] sm:$0xff] %v9794_v12  ;;  %v9804_v23 = vpop.eup %7213  ;;  %v11749_v7 = vld [vmem:[#allocation29_spill] sm:$0xff]  ;;  %5018 = vadd.xlane.f32.xlu1 %v5017_v11  ;;  %v9821_v34 = vadd.f32 %v9301_v44, %v11752_v61  ;;  %v4725_v12 = vadd.f32 1.0, %v4597_v32  ;;  %v4346_v56 = vmul.f32 2.0, %v9397_v55 }
 0x314   :  { %11748 = vst [vmem:[#allocation26_spill] sm:$0xff] %v9804_v23  ;;  %v9808_v48 = vadd.f32 %v9301_v44, %v11749_v7  ;;  %v9817_v52 = vpop.eup %7215  ;;  %v9825_v7 = vadd.f32 %v9301_v44, %v11753_v24  ;;  %5015 = vadd.xlane.f32.xlu0 %v5014_v8  ;;  %7225 = vrcp.f32 %v4723_v4  ;;  %v4599_v11 = vmax.f32 %v4471_v21, 0.0  ;;  %v9834_v24 = vpop.xlane.xlu1 %4084  ;;  %v11758_v4 = vld [vmem:[#allocation36_spill] sm:$0xff] }
 0x315   :  { %v9796_v20 = vpop.f32.mrb[132].mxu0  ;;  %11751 = vst [vmem:[#allocation27_spill] sm:$0xff] %v9817_v52  ;;  %v4724_v40 = vadd.f32 1.0, %v4596_v19  ;;  %v4473_v25 = vsub.f32 %v9658_v28, %v4345_v13  ;;  %7227 = vrcp.f32 %v4722_v41  ;;  %v4472_v61 = vsub.f32 %v9654_v57, %v4344_v0  ;;  %11755 = vst [vmem:[#allocation29_spill] sm:$0xff] %v9834_v24  ;;  %v11759_v28 = vld [vmem:[#allocation37_spill] sm:$0xff]  ;;  %v11762_v0 = vld [vmem:[#allocation39_spill] sm:$0xff] }
 0x316   :  { %11746 = vst [vmem:[#allocation53_spill] sm:$0xff] %v9796_v20  ;;  %v9802_v26 = vpop.f32.mrb[133].mxu0  ;;  %v5023_v20 = vsel %vm2487_vm1, %v9804_v23, 0.0  ;;  %v9838_v55 = vpop.eup %7217  ;;  %v9842_v19 = vadd.f32 %v9301_v44, %v11758_v4  ;;  %v9846_v21 = vadd.f32 %v9301_v44, %v11759_v28  ;;  %v4475_v41 = vsub.f32 %v9670_v6, %v4347_v51  ;;  %v11763_v4 = vld [vmem:[#allocation40_spill] sm:$0xff] }
 0x317   :  { %11747 = vst [vmem:[#allocation25_spill] sm:$0xff] %v9802_v26  ;;  %v4598_v26 = vmax.f32 %v4470_v3, 0.0  ;;  %11757 = vst [vmem:[#allocation32_spill] sm:$0xff] %v9838_v55  ;;  %5024 = vadd.xlane.f32.xlu1 %v5023_v20  ;;  %v5020_v57 = vsel %vm2487_vm1, %v9817_v52, 0.0  ;;  %v9851_v13 = vpop.xlane.xlu0 %4081  ;;  %v9853_v3 = vpop.eup %7219  ;;  %v9857_v8 = vadd.f32 %v9301_v44, %v11762_v0  ;;  %v9861_v23 = vadd.f32 %v9301_v44, %v11763_v4 }
 0x318   :  { %11760 = vst [vmem:[#allocation33_spill] sm:$0xff] %v9851_v13  ;;  %11761 = vst [vmem:[#allocation36_spill] sm:$0xff] %v9853_v3  ;;  %v4474_v28 = vsub.f32 %v9666_v38, %v4346_v56  ;;  %v4349_v6 = vmul.f32 2.0, %v9427_v42  ;;  %5021 = vadd.xlane.f32.xlu0 %v5020_v57  ;;  %7229 = vrcp.f32 %v4725_v12  ;;  %v4727_v20 = vadd.f32 1.0, %v4599_v11  ;;  %v11767_v38 = vld [vmem:[#allocation41_spill] sm:$0xff]  ;;  %v11768_v12 = vld [vmem:[#allocation43_spill] sm:$0xff] }
 0x319   :  { %v9829_v17 = vpop.f32.mrb[134].mxu0  ;;  %v4601_v51 = vmax.f32 %v4473_v25, 0.0  ;;  %v4348_v52 = vmul.f32 2.0, %v9432_v36  ;;  %7231 = vrcp.f32 %v4724_v40  ;;  %v4726_v24 = vadd.f32 1.0, %v4598_v26  ;;  %v11770_v40 = vld [vmem:[#allocation44_spill] sm:$0xff] }
 0x31a   :  { %11754 = vst [vmem:[#allocation28_spill] sm:$0xff] %v9829_v17  ;;  %v9836_v32 = vpop.f32.mrb[135].mxu0  ;;  %v4600_v0 = vmax.f32 %v4472_v61, 0.0  ;;  %v9872_v17 = vpop.eup %7221  ;;  %v9876_v42 = vadd.f32 %v9301_v44, %v11767_v38  ;;  %v9880_v25 = vadd.f32 %v9301_v44, %v11768_v12  ;;  %v4603_v36 = vmax.f32 %v4475_v41, 0.0  ;;  %v11771_v61 = vld [vmem:[#allocation45_spill] sm:$0xff] }
 0x31b   :  { %11756 = vst [vmem:[#allocation30_spill] sm:$0xff] %v9836_v32  ;;  %v5029_v32 = vsel %vm2487_vm1, %v9838_v55, 0.0  ;;  %11766 = vst [vmem:[#allocation40_spill] sm:$0xff] %v9872_v17  ;;  %v5026_v26 = vsel %vm2487_vm1, %v9853_v3, 0.0  ;;  %v9884_v56 = vpop.eup %7223  ;;  %v9888_v11 = vadd.f32 %v9301_v44, %v11770_v40  ;;  %v9892_v57 = vadd.f32 %v9301_v44, %v11771_v61  ;;  %v9895_v12 = vpop.xlane.xlu1 %4090 }
 0x31c   :  { %5030 = vadd.xlane.f32.xlu1 %v5029_v32  ;;  %11769 = vst [vmem:[#allocation41_spill] sm:$0xff] %v9884_v56  ;;  %v4602_v38 = vmax.f32 %v4474_v28, 0.0  ;;  %v4477_v55 = vsub.f32 %v9698_v9, %v4349_v6  ;;  %5027 = vadd.xlane.f32.xlu0 %v5026_v26  ;;  %11772 = vst [vmem:[#allocation43_spill] sm:$0xff] %v9895_v12  ;;  %7233 = vrcp.f32 %v4727_v20  ;;  %v4729_v32 = vadd.f32 1.0, %v4601_v51  ;;  %v11776_v20 = vld [vmem:[#allocation48_spill] sm:$0xff] }
 0x31d   :  { %v9866_v13 = vpop.f32.mrb[136].mxu0  ;;  %v4476_v41 = vsub.f32 %v9678_v60, %v4348_v52  ;;  %v4351_v3 = vmul.f32 2.0, %v9458_v53  ;;  %7235 = vrcp.f32 %v4726_v24  ;;  %v4350_v61 = vmul.f32 2.0, %v9464_v15  ;;  %v11777_v53 = vld [vmem:[#allocation49_spill] sm:$0xff] }
 0x31e   :  { %11764 = vst [vmem:[#allocation37_spill] sm:$0xff] %v9866_v13  ;;  %v9870_v4 = vpop.f32.mrb[137].mxu0  ;;  %v4728_v13 = vadd.f32 1.0, %v4600_v0  ;;  %v5035_v9 = vsel %vm2487_vm1, %v9872_v17, 0.0  ;;  %v9908_v6 = vpop.eup %7225  ;;  %v9912_v60 = vadd.f32 %v9301_v44, %v11776_v20  ;;  %v9916_v52 = vadd.f32 %v9301_v44, %v11777_v53  ;;  %v11779_v0 = vld [vmem:[#allocation51_spill] sm:$0xff]  ;;  %v11780_v17 = vld [vmem:[#allocation52_spill] sm:$0xff] }
 0x31f   :  { %11765 = vst [vmem:[#allocation39_spill] sm:$0xff] %v9870_v4  ;;  %v9899_v4 = vpop.xlane.xlu0 %4087  ;;  %11775 = vst [vmem:[#allocation82_spill] sm:$0xff] %v9908_v6  ;;  %v4731_v51 = vadd.f32 1.0, %v4603_v36  ;;  %v5032_v15 = vsel %vm2487_vm1, %v9884_v56, 0.0  ;;  %v9920_v24 = vpop.eup %7227  ;;  %v9924_v26 = vadd.f32 %v9301_v44, %v11779_v0  ;;  %v9928_v12 = vadd.f32 %v9301_v44, %v11780_v17 }
 0x320   :  { %11773 = vst [vmem:[#allocation44_spill] sm:$0xff] %v9899_v4  ;;  %5036 = vadd.xlane.f32.xlu1 %v5035_v9  ;;  %11778 = vst [vmem:[#allocation48_spill] sm:$0xff] %v9920_v24  ;;  %v4730_v20 = vadd.f32 1.0, %v4602_v38  ;;  %v4605_v4 = vmax.f32 %v4477_v55, 0.0  ;;  %5033 = vadd.xlane.f32.xlu0 %v5032_v15  ;;  %7237 = vrcp.f32 %v4729_v32  ;;  %v4604_v53 = vmax.f32 %v4476_v41, 0.0  ;;  %v11784_v32 = vld [vmem:[#allocation54_spill] sm:$0xff] }
 0x321   :  { %v9901_v40 = vpop.f32.mrb[138].mxu0  ;;  %11781 = vst [vmem:[#allocation49_spill] sm:$0xff] %v9928_v12  ;;  %v4479_v36 = vsub.f32 %v9706_v1, %v4351_v3  ;;  %v4353_v9 = vmul.f32 2.0, %v9483_v37  ;;  %7239 = vrcp.f32 %v4728_v13  ;;  %v4352_v0 = vmul.f32 2.0, %v9487_v22  ;;  %v9938_v12 = vpop.xlane.xlu1 %4096 }
 0x322   :  { %v9906_v28 = vpop.f32.mrb[139].mxu0  ;;  %v5041_v17 = vsel %vm2487_vm1, %v9908_v6, 0.0  ;;  %11782 = vst [vmem:[#allocation51_spill] sm:$0xff] %v9938_v12  ;;  %v9942_v38 = vpop.eup %7229  ;;  %v9946_v1 = vadd.f32 %v9301_v44, %v11784_v32  ;;  %7241 = vrcp.f32 %v4731_v51  ;;  %v4355_v37 = vmul.f32 2.0, %v9505_v5 }
 0x323   :  { %11774 = vst [vmem:[#allocation45_spill] sm:$0xff] %v9906_v28  ;;  %v4478_v28 = vsub.f32 %v9702_v31, %v4350_v61  ;;  %11783 = vst [vmem:[#allocation52_spill] sm:$0xff] %v9942_v38  ;;  %v5038_v22 = vsel %vm2487_vm1, %v9920_v24, 0.0  ;;  %v9951_v31 = vpop.xlane.xlu0 %4093  ;;  %v9953_v13 = vpop.eup %7231  ;;  %v9957_v3 = vadd.f32 %v9301_v44, %v9362_v58  ;;  %v9961_v41 = vadd.f32 %v9301_v44, %v9389_v14 }
 0x324   :  { %5042 = vadd.xlane.f32.xlu1 %v5041_v17  ;;  %11785 = vst [vmem:[#allocation54_spill] sm:$0xff] %v9951_v31  ;;  %11786 = vst [vmem:[#allocation83_spill] sm:$0xff] %v9953_v13  ;;  %7243 = vrcp.f32 %v4730_v20  ;;  %v4733_v61 = vadd.f32 1.0, %v4605_v4  ;;  %5039 = vadd.xlane.f32.xlu0 %v5038_v22  ;;  %v4732_v5 = vadd.f32 1.0, %v4604_v53  ;;  %v4607_v51 = vmax.f32 %v4479_v36, 0.0 }
 0x325   :  { %v9932_v56 = vpop.f32.mrb[140].mxu0  ;;  %v4481_v15 = vsub.f32 %v9738_v46, %v4353_v9  ;;  %v4354_v17 = vmul.f32 2.0, %v9509_v16  ;;  %v4606_v24 = vmax.f32 %v4478_v28, 0.0  ;;  %v4480_v6 = vsub.f32 %v9714_v33, %v4352_v0  ;;  %v9997_v53 = vpop.xlane.xlu1 %4102 }
 0x326   :  { %v9940_v55 = vpop.f32.mrb[141].mxu0  ;;  %v4357_v58 = vmul.f32 2.0, %v9528_v27  ;;  %v5047_v14 = vsel %vm2487_vm1, %v9942_v38, 0.0  ;;  %v9973_v4 = vpop.eup %7233  ;;  %v9977_v20 = vadd.f32 %v9301_v44, %v9391_v47  ;;  %v9981_v16 = vadd.f32 %v9301_v44, %v9420_v2  ;;  %11789 = vst [vmem:[#allocation86_spill] sm:$0xff] %v9997_v53 }
 0x327   :  { %11787 = vst [vmem:[#allocation84_spill] sm:$0xff] %v9973_v4  ;;  %v4483_v46 = vsub.f32 %v9746_v10, %v4355_v37  ;;  %v5044_v27 = vsel %vm2487_vm1, %v9953_v13, 0.0  ;;  %v9986_v33 = vpop.eup %7235  ;;  %v9990_v28 = vadd.f32 %v9301_v44, %v9425_v43  ;;  %7245 = vrcp.f32 %v4733_v61  ;;  %v10000_v0 = vpop.xlane.xlu0 %4099 }
 0x328   :  { %5048 = vadd.xlane.f32.xlu1 %v5047_v14  ;;  %11788 = vst [vmem:[#allocation85_spill] sm:$0xff] %v9986_v33  ;;  %v9994_v47 = vadd.f32 %v9301_v44, %v9454_v18  ;;  %v4356_v2 = vmul.f32 2.0, %v9532_v50  ;;  %5045 = vadd.xlane.f32.xlu0 %v5044_v27  ;;  %7247 = vrcp.f32 %v4732_v5  ;;  %v4735_v10 = vadd.f32 1.0, %v4607_v51  ;;  %11790 = vst [vmem:[#allocation87_spill] sm:$0xff] %v10000_v0  ;;  %v11792_v5 = vld [vmem:[#allocation55_spill] sm:$0xff] }
 0x329   :  { %v9965_v32 = vpop.f32.mrb[142].mxu0  ;;  %v4609_v36 = vmax.f32 %v4481_v15, 0.0  ;;  %v4482_v9 = vsub.f32 %v9742_v30, %v4354_v17  ;;  %v4734_v43 = vadd.f32 1.0, %v4606_v24  ;;  %v4608_v22 = vmax.f32 %v4480_v6, 0.0  ;;  %v11793_v30 = vld [vmem:[#allocation58_spill] sm:$0xff]  ;;  %v11795_v24 = vld [vmem:[#allocation59_spill] sm:$0xff] }
 0x32a   :  { %v9971_v31 = vpop.f32.mrb[143].mxu0  ;;  %v4485_v61 = vsub.f32 %v9772_v49, %v4357_v58  ;;  %v5053_v18 = vsel %vm2487_vm1, %v9973_v4, 0.0  ;;  %v10009_v14 = vpop.eup %7237  ;;  %v10013_v51 = vadd.f32 %v9301_v44, %v11792_v5  ;;  %v10017_v15 = vadd.f32 %v9301_v44, %v11793_v30 }
 0x32b   :  { %11791 = vst [vmem:[#allocation88_spill] sm:$0xff] %v10009_v14  ;;  %v4611_v17 = vmax.f32 %v4483_v46, 0.0  ;;  %v5050_v49 = vsel %vm2487_vm1, %v9986_v33, 0.0  ;;  %v10021_v6 = vpop.eup %7239  ;;  %v10025_v58 = vadd.f32 %v9301_v44, %v11795_v24  ;;  %v10029_v27 = vadd.f32 %v9301_v44, %v9501_v39 }
 0x32c   :  { %5054 = vadd.xlane.f32.xlu1 %v5053_v18  ;;  %11794 = vst [vmem:[#allocation55_spill] sm:$0xff] %v10021_v6  ;;  %v4484_v5 = vsub.f32 %v9756_v35, %v4356_v2  ;;  %v4359_v30 = vmul.f32 2.0, %v9548_v62  ;;  %5051 = vadd.xlane.f32.xlu0 %v5050_v49  ;;  %v10033_v46 = vpop.eup %7241  ;;  %7249 = vrcp.f32 %v4735_v10  ;;  %v4737_v18 = vadd.f32 1.0, %v4609_v36  ;;  %v10042_v2 = vpop.xlane.xlu1 %4108  ;;  %v11799_v49 = vld [vmem:[#allocation62_spill] sm:$0xff] }
 0x32d   :  { %v10002_v37 = vpop.f32.mrb[144].mxu0  ;;  %11796 = vst [vmem:[#allocation58_spill] sm:$0xff] %v10033_v46  ;;  %v4610_v33 = vmax.f32 %v4482_v9, 0.0  ;;  %v4358_v4 = vmul.f32 2.0, %v9552_v54  ;;  %7251 = vrcp.f32 %v4734_v43  ;;  %v4736_v38 = vadd.f32 1.0, %v4608_v22  ;;  %11798 = vst [vmem:[#allocation89_spill] sm:$0xff] %v10042_v2  ;;  %v10056_v22 = vpop.xlane.xlu0 %4105 }
 0x32e   :  { %v10007_v50 = vpop.f32.mrb[145].mxu0  ;;  %v10038_v24 = vpop.eup %7243  ;;  %v4613_v39 = vmax.f32 %v4485_v61, 0.0  ;;  %v5059_v35 = vsel %vm2487_vm1, %v10009_v14, 0.0  ;;  %v10048_v10 = vadd.f32 %v9301_v44, %v11799_v49  ;;  %v4739_v36 = vadd.f32 1.0, %v4611_v17  ;;  %v11801_v54 = vld [vmem:[#allocation65_spill] sm:$0xff]  ;;  %v11803_v61 = vld [vmem:[#allocation66_spill] sm:$0xff] }
 0x32f   :  { %11797 = vst [vmem:[#allocation59_spill] sm:$0xff] %v10038_v24  ;;  %v10052_v9 = vadd.f32 %v9301_v44, %v11801_v54  ;;  %v5056_v43 = vsel %vm2487_vm1, %v10021_v6, 0.0  ;;  %11802 = vst [vmem:[#allocation65_spill] sm:$0xff] %v10056_v22  ;;  %v10060_v14 = vadd.f32 %v9301_v44, %v11803_v61  ;;  %v4612_v2 = vmax.f32 %v4484_v5, 0.0  ;;  %v11805_v49 = vld [vmem:[#allocation34_spill] sm:$0xff] }
 0x330   :  { %11800 = vst [vmem:[#allocation62_spill] sm:$0xff] %v10048_v10  ;;  %5060 = vadd.xlane.f32.xlu1 %v5059_v35  ;;  %v4487_v0 = vsub.f32 %v9780_v63, %v4359_v30  ;;  %v4361_v53 = vmul.f32 2.0, %v11805_v49  ;;  %5057 = vadd.xlane.f32.xlu0 %v5056_v43  ;;  %7253 = vrcp.f32 %v4737_v18  ;;  %v4738_v17 = vadd.f32 1.0, %v4610_v33  ;;  %v11806_v35 = vld [vmem:[#allocation35_spill] sm:$0xff]  ;;  %v11808_v61 = vld [vmem:[#allocation2_spill] sm:$0xff] }
 0x331   :  { %v10036_v13 = vpop.f32.mrb[146].mxu0  ;;  %11804 = vst [vmem:[#allocation66_spill] sm:$0xff] %v10060_v14  ;;  %v4486_v54 = vsub.f32 %v9776_v59, %v4358_v4  ;;  %v4360_v12 = vmul.f32 2.0, %v11806_v35  ;;  %v10068_v6 = vpop.eup %7245  ;;  %7255 = vrcp.f32 %v4736_v38  ;;  %v4741_v22 = vadd.f32 1.0, %v4613_v39  ;;  %v11810_v59 = vld [vmem:[#allocation69_spill] sm:$0xff]  ;;  %v11812_v18 = vld [vmem:[#allocation74_spill] sm:$0xff] }
 0x332   :  { %v10044_v62 = vpop.f32.mrb[147].mxu0  ;;  %11807 = vst [vmem:[#allocation34_spill] sm:$0xff] %v10068_v6  ;;  %v10072_v5 = vadd.f32 %v9301_v44, %v11808_v61  ;;  %v5065_v63 = vsel %vm2487_vm1, %v10033_v46, 0.0  ;;  %v10078_v33 = vpop.eup %7247  ;;  %7257 = vrcp.f32 %v4739_v36  ;;  %v10082_v4 = vadd.f32 %v9301_v44, %v11810_v59  ;;  %v11813_v35 = vld [vmem:[#allocation71_spill] sm:$0xff] }
 0x333   :  { %11809 = vst [vmem:[#allocation35_spill] sm:$0xff] %v10078_v33  ;;  %v4363_v43 = vmul.f32 2.0, %v11812_v18  ;;  %v5062_v38 = vsel %vm2487_vm1, %v10038_v24, 0.0  ;;  %v4740_v39 = vadd.f32 1.0, %v4612_v2  ;;  %v4615_v49 = vmax.f32 %v4487_v0, 0.0  ;;  %v10092_v36 = vpop.xlane.xlu1 %4114  ;;  %v11816_v18 = vld [vmem:[#allocation38_spill] sm:$0xff]  ;;  %v10096_v14 = vpop.xlane.xlu0 %4111 }
 0x334   :  { %11811 = vst [vmem:[#allocation2_spill] sm:$0xff] %v10082_v4  ;;  %5066 = vadd.xlane.f32.xlu1 %v5065_v63  ;;  %v10089_v61 = vadd.f32 %v9301_v44, %v11813_v35  ;;  %v4489_v46 = vsub.f32 %v9808_v48, %v4361_v53  ;;  %5063 = vadd.xlane.f32.xlu0 %v5062_v38  ;;  %11815 = vst [vmem:[#allocation74_spill] sm:$0xff] %v10092_v36  ;;  %7259 = vrcp.f32 %v4738_v17  ;;  %v11818_v0 = vld [vmem:[#allocation73_spill] sm:$0xff]  ;;  %v11820_v35 = vld [vmem:[#allocation6_spill] sm:$0xff] }
 0x335   :  { %v10066_v10 = vpop.f32.mrb[148].mxu0  ;;  %v4614_v59 = vmax.f32 %v4486_v54, 0.0  ;;  %v4488_v4 = vsub.f32 %v9788_v45, %v4360_v12  ;;  %v4362_v63 = vmul.f32 2.0, %v11816_v18  ;;  %11817 = vst [vmem:[#allocation71_spill] sm:$0xff] %v10096_v14  ;;  %7261 = vrcp.f32 %v4741_v22  ;;  %v11823_v45 = vld [vmem:[#allocation4_spill] sm:$0xff]  ;;  %v11825_v22 = vld [vmem:[#allocation78_spill] sm:$0xff] }
 0x336   :  { %v10076_v30 = vpop.f32.mrb[149].mxu0  ;;  %11814 = vst [vmem:[#allocation69_spill] sm:$0xff] %v10089_v61  ;;  %v10102_v2 = vadd.f32 %v9301_v44, %v11818_v0  ;;  %v4365_v48 = vmul.f32 2.0, %v11820_v35  ;;  %v5071_v53 = vsel %vm2487_vm1, %v10068_v6, 0.0  ;;  %v10109_v54 = vpop.eup %7249  ;;  %v10113_v12 = vadd.f32 %v9301_v44, %v11823_v45  ;;  %v11827_v14 = vld [vmem:[#allocation5_spill] sm:$0xff] }
 0x337   :  { %11822 = vst [vmem:[#allocation6_spill] sm:$0xff] %v10109_v54  ;;  %v4491_v38 = vsub.f32 %v9821_v34, %v4363_v43  ;;  %v4364_v18 = vmul.f32 2.0, %v11825_v22  ;;  %v5068_v0 = vsel %vm2487_vm1, %v10078_v33, 0.0  ;;  %v10119_v35 = vpop.eup %7251  ;;  %7263 = vrcp.f32 %v4740_v39  ;;  %v11831_v39 = vld [vmem:[#allocation11_spill] sm:$0xff] }
 0x338   :  { %11819 = vst [vmem:[#allocation38_spill] sm:$0xff] %v10102_v2  ;;  %11824 = vst [vmem:[#allocation4_spill] sm:$0xff] %v10113_v12  ;;  %5072 = vadd.xlane.f32.xlu1 %v5071_v53  ;;  %v4743_v6 = vadd.f32 1.0, %v4615_v49  ;;  %v4617_v36 = vmax.f32 %v4489_v46, 0.0  ;;  %v4367_v2 = vmul.f32 2.0, %v11827_v14  ;;  %5069 = vadd.xlane.f32.xlu0 %v5068_v0  ;;  %v4742_v61 = vadd.f32 1.0, %v4614_v59  ;;  %v10134_v46 = vpop.xlane.xlu1 %4120 }
 0x339   :  { %v10098_v24 = vpop.f32.mrb[150].mxu0  ;;  %11826 = vst [vmem:[#allocation78_spill] sm:$0xff] %v10119_v35  ;;  %v4490_v45 = vsub.f32 %v9812_v29, %v4362_v63  ;;  %v11828_v12 = vld [vmem:[#allocation8_spill] sm:$0xff]  ;;  %v4493_v33 = vsub.f32 %v9842_v19, %v4365_v48  ;;  %v4369_v49 = vmul.f32 2.0, %v11831_v39  ;;  %v5077_v14 = vsel %vm2487_vm1, %v10109_v54, 0.0  ;;  %v10144_v48 = vpop.xlane.xlu0 %4117 }
 0x33a   :  { %v10107_v17 = vpop.f32.mrb[151].mxu0  ;;  %v4366_v34 = vmul.f32 2.0, %v11828_v12  ;;  %v11829_v53 = vld [vmem:[#allocation80_spill] sm:$0xff]  ;;  %11832 = vst [vmem:[#allocation8_spill] sm:$0xff] %v10134_v46  ;;  %v10138_v29 = vpop.eup %7253  ;;  %v4619_v59 = vmax.f32 %v4491_v38, 0.0  ;;  %v4492_v63 = vsub.f32 %v9825_v7, %v4364_v18  ;;  %v11834_v12 = vld [vmem:[#allocation13_spill] sm:$0xff]  ;;  %7265 = vrcp.f32 %v4743_v6 }
 0x33b   :  { %11821 = vst [vmem:[#allocation73_spill] sm:$0xff] %v10107_v17  ;;  %v4616_v17 = vmax.f32 %v4488_v4, 0.0  ;;  %v10128_v22 = vadd.f32 %v9301_v44, %v11829_v53  ;;  %11833 = vst [vmem:[#allocation80_spill] sm:$0xff] %v10138_v29  ;;  %v4368_v0 = vmul.f32 2.0, %v11834_v12  ;;  %v5074_v19 = vsel %vm2487_vm1, %v10119_v35, 0.0  ;;  %v10146_v53 = vpop.eup %7255  ;;  %v11837_v46 = vld [vmem:[#allocation46_spill] sm:$0xff] }
 0x33c   :  { %5078 = vadd.xlane.f32.xlu1 %v5077_v14  ;;  %11835 = vst [vmem:[#allocation11_spill] sm:$0xff] %v10144_v48  ;;  %11836 = vst [vmem:[#allocation13_spill] sm:$0xff] %v10146_v53  ;;  %v4745_v39 = vadd.f32 1.0, %v4617_v36  ;;  %v4495_v54 = vsub.f32 %v9857_v8, %v4367_v2  ;;  %5075 = vadd.xlane.f32.xlu0 %v5074_v19  ;;  %v10150_v38 = vpop.eup %7257  ;;  %v4618_v18 = vmax.f32 %v4490_v45, 0.0  ;;  %v11839_v12 = vld [vmem:[#allocation77_spill] sm:$0xff]  ;;  %7267 = vrcp.f32 %v4742_v61  ;;  %v11842_v61 = vld [vmem:[#allocation16_spill] sm:$0xff] }
 0x33d   :  { %v10124_v43 = vpop.f32.mrb[152].mxu0  ;;  %11830 = vst [vmem:[#allocation5_spill] sm:$0xff] %v10128_v22  ;;  %v4371_v22 = vmul.f32 2.0, %v11837_v46  ;;  %11838 = vst [vmem:[#allocation46_spill] sm:$0xff] %v10150_v38  ;;  %v4744_v7 = vadd.f32 1.0, %v4616_v17  ;;  %v10154_v14 = vadd.f32 %v9301_v44, %v11839_v12  ;;  %v4494_v35 = vsub.f32 %v9846_v21, %v4366_v34  ;;  %v10173_v12 = vpop.xlane.xlu1 %4126 }
 0x33e   :  { %v10136_v4 = vpop.f32.mrb[153].mxu0  ;;  %v4621_v6 = vmax.f32 %v4493_v33, 0.0  ;;  %v4497_v36 = vsub.f32 %v9876_v42, %v4369_v49  ;;  %v5083_v8 = vsel %vm2487_vm1, %v10138_v29, 0.0  ;;  %v10164_v46 = vpop.eup %7259  ;;  %v4747_v17 = vadd.f32 1.0, %v4619_v59  ;;  %11843 = vst [vmem:[#allocation16_spill] sm:$0xff] %v10173_v12  ;;  %v11844_v29 = vld [vmem:[#allocation20_spill] sm:$0xff] }
 0x33f   :  { %11840 = vst [vmem:[#allocation77_spill] sm:$0xff] %v10164_v46  ;;  %v4620_v45 = vmax.f32 %v4492_v63, 0.0  ;;  %v4496_v19 = vsub.f32 %v9861_v23, %v4368_v0  ;;  %v5080_v21 = vsel %vm2487_vm1, %v10146_v53, 0.0  ;;  %v10169_v34 = vpop.eup %7261  ;;  %7269 = vrcp.f32 %v4745_v39  ;;  %v10176_v0 = vpop.xlane.xlu0 %4123 }
 0x340   :  { %5084 = vadd.xlane.f32.xlu1 %v5083_v8  ;;  %11841 = vst [vmem:[#allocation90_spill] sm:$0xff] %v10169_v34  ;;  %v4623_v33 = vmax.f32 %v4495_v54, 0.0  ;;  %v4499_v42 = vsub.f32 %v9888_v11, %v4371_v22  ;;  %v4370_v49 = vmul.f32 2.0, %v11842_v61  ;;  %5081 = vadd.xlane.f32.xlu0 %v5080_v21  ;;  %7271 = vrcp.f32 %v4744_v7  ;;  %11845 = vst [vmem:[#allocation20_spill] sm:$0xff] %v10176_v0  ;;  %v11847_v54 = vld [vmem:[#allocation9_spill] sm:$0xff]  ;;  %v11849_v0 = vld [vmem:[#allocation50_spill] sm:$0xff] }
 0x341   :  { %v10157_v48 = vpop.f32.mrb[154].mxu0  ;;  %v4746_v59 = vadd.f32 1.0, %v4618_v18  ;;  %v4622_v63 = vmax.f32 %v4494_v35, 0.0  ;;  %v4373_v23 = vmul.f32 2.0, %v11844_v29  ;;  %v10180_v53 = vpop.eup %7263  ;;  %v4749_v39 = vadd.f32 1.0, %v4621_v6 }
 0x342   :  { %v10162_v2 = vpop.f32.mrb[155].mxu0  ;;  %11846 = vst [vmem:[#allocation91_spill] sm:$0xff] %v10180_v53  ;;  %v10184_v11 = vadd.f32 %v9301_v44, %v11847_v54  ;;  %v4625_v22 = vmax.f32 %v4497_v36, 0.0  ;;  %v5089_v21 = vsel %vm2487_vm1, %v10150_v38, 0.0  ;;  %7273 = vrcp.f32 %v4747_v17  ;;  %v11850_v44 = vld [vmem:[#allocation53_spill] sm:$0xff] }
 0x343   :  { %v4748_v35 = vadd.f32 1.0, %v4620_v45  ;;  %v4624_v29 = vmax.f32 %v4496_v19, 0.0  ;;  %v5086_v18 = vsel %vm2487_vm1, %v10164_v46, 0.0  ;;  %v4751_v61 = vadd.f32 1.0, %v4623_v33  ;;  %v11857_v46 = vld [vmem:[#allocation37_spill] sm:$0xff] }
 0x344   :  { %5090 = vadd.xlane.f32.xlu1 %v5089_v21  ;;  %v4627_v12 = vmax.f32 %v4499_v42, 0.0  ;;  %v4498_v6 = vsub.f32 %v9880_v25, %v4370_v49  ;;  %v4372_v54 = vmul.f32 2.0, %v11849_v0  ;;  %5087 = vadd.xlane.f32.xlu0 %v5086_v18  ;;  %7275 = vrcp.f32 %v4746_v59  ;;  %v10198_v45 = vpop.eup %7265  ;;  %v11852_v21 = vld [vmem:[#allocation25_spill] sm:$0xff]  ;;  %v10201_v42 = vpop.xlane.xlu1 %4132 }
 0x345   :  { %v10178_v8 = vpop.f32.mrb[156].mxu0  ;;  %v4750_v36 = vadd.f32 1.0, %v4622_v63  ;;  %v4501_v38 = vsub.f32 %v9912_v60, %v4373_v23  ;;  %11851 = vst [vmem:[#allocation50_spill] sm:$0xff] %v10198_v45  ;;  %7277 = vrcp.f32 %v4749_v39  ;;  %v4753_v19 = vadd.f32 1.0, %v4625_v22  ;;  %v11853_v60 = vld [vmem:[#allocation28_spill] sm:$0xff] }
 0x346   :  { %v10188_v7 = vpop.f32.mrb[157].mxu0  ;;  %v4374_v33 = vmul.f32 2.0, %v11852_v21  ;;  %v5095_v25 = vsel %vm2487_vm1, %v10169_v34, 0.0  ;;  %7279 = vrcp.f32 %v4748_v35  ;;  %v4752_v59 = vadd.f32 1.0, %v4624_v29  ;;  %v10212_v0 = vpop.eup %7267  ;;  %v11855_v29 = vld [vmem:[#allocation30_spill] sm:$0xff] }
 0x347   :  { %11848 = vst [vmem:[#allocation9_spill] sm:$0xff] %v10188_v7  ;;  %v4375_v7 = vmul.f32 2.0, %v11850_v44  ;;  %v4377_v63 = vmul.f32 2.0, %v11853_v60  ;;  %v10208_v44 = vpop.xlane.xlu0 %4129  ;;  %v5092_v23 = vsel %vm2487_vm1, %v10180_v53, 0.0  ;;  %11854 = vst [vmem:[#allocation53_spill] sm:$0xff] %v10212_v0  ;;  %7281 = vrcp.f32 %v4751_v61 }
 0x348   :  { %5096 = vadd.xlane.f32.xlu1 %v5095_v25  ;;  %v4755_v39 = vadd.f32 1.0, %v4627_v12  ;;  %v4626_v22 = vmax.f32 %v4498_v6, 0.0  ;;  %v4500_v18 = vsub.f32 %v9892_v57, %v4372_v54  ;;  %5093 = vadd.xlane.f32.xlu0 %v5092_v23  ;;  %7283 = vrcp.f32 %v4750_v36 }
 0x349   :  { %v10196_v17 = vpop.f32.mrb[158].mxu0  ;;  %v4629_v21 = vmax.f32 %v4501_v38, 0.0  ;;  %v4503_v35 = vsub.f32 %v9924_v26, %v4375_v7  ;;  %v4376_v60 = vmul.f32 2.0, %v11855_v29  ;;  %v10219_v25 = vpop.eup %7269  ;;  %7285 = vrcp.f32 %v4753_v19  ;;  %v11859_v38 = vld [vmem:[#allocation39_spill] sm:$0xff]  ;;  %v11861_v29 = vld [vmem:[#allocation49_spill] sm:$0xff] }
 0x34a   :  { %v10205_v49 = vpop.f32.mrb[159].mxu0  ;;  %11856 = vst [vmem:[#allocation25_spill] sm:$0xff] %v10219_v25  ;;  %v4502_v53 = vsub.f32 %v9916_v52, %v4374_v33  ;;  %v4379_v61 = vmul.f32 2.0, %v11857_v46  ;;  %v5101_v12 = vsel %vm2487_vm1, %v10198_v45, 0.0  ;;  %v10227_v6 = vpop.eup %7271  ;;  %7287 = vrcp.f32 %v4752_v59 }
 0x34b   :  { %11858 = vst [vmem:[#allocation28_spill] sm:$0xff] %v10227_v6  ;;  %v4505_v26 = vsub.f32 %v9946_v1, %v4377_v63  ;;  %v4378_v7 = vmul.f32 2.0, %v11859_v38  ;;  %v5098_v54 = vsel %vm2487_vm1, %v10212_v0, 0.0  ;;  %7289 = vrcp.f32 %v4755_v39  ;;  %v10234_v19 = vpop.xlane.xlu1 %4138  ;;  %v11862_v63 = vld [vmem:[#allocation45_spill] sm:$0xff] }
 0x34c   :  { %5102 = vadd.xlane.f32.xlu1 %v5101_v12  ;;  %v4754_v52 = vadd.f32 1.0, %v4626_v22  ;;  %v4628_v36 = vmax.f32 %v4500_v18, 0.0  ;;  %v4381_v46 = vmul.f32 2.0, %v9901_v40  ;;  %5099 = vadd.xlane.f32.xlu0 %v5098_v54  ;;  %v10236_v33 = vpop.eup %7273  ;;  %v4757_v23 = vadd.f32 1.0, %v4629_v21  ;;  %v10240_v12 = vpop.xlane.xlu0 %4135 }
 0x34d   :  { %v10217_v34 = vpop.f32.mrb[160].mxu0  ;;  %11860 = vst [vmem:[#allocation30_spill] sm:$0xff] %v10236_v33  ;;  %v4631_v59 = vmax.f32 %v4503_v35, 0.0  ;;  %v4504_v1 = vsub.f32 %v11861_v29, %v4376_v60  ;;  %v4380_v38 = vmul.f32 2.0, %v11862_v63  ;;  %v4630_v39 = vmax.f32 %v4502_v53, 0.0 }
 0x34e   :  { %v10225_v57 = vpop.f32.mrb[161].mxu0  ;;  %v4507_v22 = vsub.f32 %v9961_v41, %v4379_v61  ;;  %v4383_v40 = vmul.f32 2.0, %v9932_v56  ;;  %v5107_v18 = vsel %vm2487_vm1, %v10219_v25, 0.0  ;;  %v10250_v21 = vpop.eup %7275  ;;  %v4633_v35 = vmax.f32 %v4505_v26, 0.0 }
 0x34f   :  { %11863 = vst [vmem:[#allocation37_spill] sm:$0xff] %v10250_v21  ;;  %v4506_v60 = vsub.f32 %v9957_v3, %v4378_v7  ;;  %v4382_v29 = vmul.f32 2.0, %v9940_v55  ;;  %v5104_v53 = vsel %vm2487_vm1, %v10227_v6, 0.0  ;;  %v10256_v63 = vpop.eup %7277  ;;  %7291 = vrcp.f32 %v4754_v52 }
 0x350   :  { %5108 = vadd.xlane.f32.xlu1 %v5107_v18  ;;  %11864 = vst [vmem:[#allocation39_spill] sm:$0xff] %v10256_v63  ;;  %v4756_v56 = vadd.f32 1.0, %v4628_v36  ;;  %v4509_v41 = vsub.f32 %v9981_v16, %v4381_v46  ;;  %v4385_v61 = vmul.f32 2.0, %v9965_v32  ;;  %5105 = vadd.xlane.f32.xlu0 %v5104_v53  ;;  %v10260_v25 = vpop.eup %7279  ;;  %7293 = vrcp.f32 %v4757_v23  ;;  %v10268_v36 = vpop.xlane.xlu1 %4144 }
 0x351   :  { %v10242_v45 = vpop.f32.mrb[162].mxu0  ;;  %11865 = vst [vmem:[#allocation49_spill] sm:$0xff] %v10260_v25  ;;  %v4759_v26 = vadd.f32 1.0, %v4631_v59  ;;  %v4632_v3 = vmax.f32 %v4504_v1, 0.0  ;;  %v4508_v55 = vsub.f32 %v9977_v20, %v4380_v38  ;;  %v10265_v18 = vpop.eup %7281  ;;  %v4758_v6 = vadd.f32 1.0, %v4630_v39 }
 0x352   :  { %v10248_v54 = vpop.f32.mrb[163].mxu0  ;;  %11866 = vst [vmem:[#allocation45_spill] sm:$0xff] %v10265_v18  ;;  %v4635_v0 = vmax.f32 %v4507_v22, 0.0  ;;  %v4511_v52 = vsub.f32 %v9994_v47, %v4383_v40  ;;  %v5113_v32 = vsel %vm2487_vm1, %v10236_v33, 0.0  ;;  %v10274_v46 = vpop.eup %7283  ;;  %v4761_v23 = vadd.f32 1.0, %v4633_v35 }
 0x353   :  { %11867 = vst [vmem:[#allocation92_spill] sm:$0xff] %v10274_v46  ;;  %v4634_v59 = vmax.f32 %v4506_v60, 0.0  ;;  %v4510_v20 = vsub.f32 %v9990_v28, %v4382_v29  ;;  %v10277_v1 = vpop.xlane.xlu0 %4141  ;;  %v5110_v38 = vsel %vm2487_vm1, %v10250_v21, 0.0  ;;  %v10281_v47 = vpop.eup %7285  ;;  %7295 = vrcp.f32 %v4756_v56 }
 0x354   :  { %5114 = vadd.xlane.f32.xlu1 %v5113_v32  ;;  %11868 = vst [vmem:[#allocation93_spill] sm:$0xff] %v10281_v47  ;;  %v4637_v39 = vmax.f32 %v4509_v41, 0.0  ;;  %v4513_v22 = vsub.f32 %v10017_v15, %v4385_v61  ;;  %v4384_v40 = vmul.f32 2.0, %v9971_v31  ;;  %5111 = vadd.xlane.f32.xlu0 %v5110_v38  ;;  %v10285_v53 = vpop.eup %7287  ;;  %7297 = vrcp.f32 %v4759_v26 }
 0x355   :  { %v10263_v7 = vpop.f32.mrb[164].mxu0  ;;  %11869 = vst [vmem:[#allocation94_spill] sm:$0xff] %v10285_v53  ;;  %v4760_v35 = vadd.f32 1.0, %v4632_v3  ;;  %v4636_v28 = vmax.f32 %v4508_v55, 0.0  ;;  %v4387_v60 = vmul.f32 2.0, %v10002_v37  ;;  %v10290_v32 = vpop.eup %7289  ;;  %7299 = vrcp.f32 %v4758_v6 }
 0x356   :  { %v10272_v16 = vpop.f32.mrb[165].mxu0  ;;  %11870 = vst [vmem:[#allocation95_spill] sm:$0xff] %v10290_v32  ;;  %v4763_v21 = vadd.f32 1.0, %v4635_v0  ;;  %v4639_v56 = vmax.f32 %v4511_v52, 0.0  ;;  %v5119_v15 = vsel %vm2487_vm1, %v10256_v63, 0.0  ;;  %7301 = vrcp.f32 %v4761_v23  ;;  %v10300_v0 = vpop.xlane.xlu1 %4150 }
 0x357   :  { %v4762_v31 = vadd.f32 1.0, %v4634_v59  ;;  %v4638_v61 = vmax.f32 %v4510_v20, 0.0  ;;  %v5116_v26 = vsel %vm2487_vm1, %v10260_v25, 0.0  ;;  %v4765_v37 = vadd.f32 1.0, %v4637_v39  ;;  %v10304_v59 = vpop.xlane.xlu0 %4147 }
 0x358   :  { %5120 = vadd.xlane.f32.xlu1 %v5119_v15  ;;  %v4641_v3 = vmax.f32 %v4513_v22, 0.0  ;;  %v4512_v55 = vsub.f32 %v10013_v51, %v4384_v40  ;;  %v4386_v6 = vmul.f32 2.0, %v10007_v50  ;;  %5117 = vadd.xlane.f32.xlu0 %v5116_v26  ;;  %7303 = vrcp.f32 %v4760_v35 }
 0x359   :  { %v10288_v29 = vpop.f32.mrb[166].mxu0  ;;  %v4764_v52 = vadd.f32 1.0, %v4636_v28  ;;  %v4515_v38 = vsub.f32 %v10029_v27, %v4387_v60  ;;  %v4389_v23 = vmul.f32 2.0, %v10036_v13  ;;  %v10308_v15 = vpop.eup %7291  ;;  %7305 = vrcp.f32 %v4763_v21 }
 0x35a   :  { %v10294_v41 = vpop.f32.mrb[167].mxu0  ;;  %11871 = vst [vmem:[#allocation96_spill] sm:$0xff] %v10308_v15  ;;  %v4767_v39 = vadd.f32 1.0, %v4639_v56  ;;  %v4388_v51 = vmul.f32 2.0, %v10044_v62  ;;  %v5125_v50 = vsel %vm2487_vm1, %v10265_v18, 0.0  ;;  %v10315_v40 = vpop.eup %7293  ;;  %7307 = vrcp.f32 %v4762_v31 }
 0x35b   :  { %11872 = vst [vmem:[#allocation97_spill] sm:$0xff] %v10315_v40  ;;  %v4766_v27 = vadd.f32 1.0, %v4638_v61  ;;  %v4391_v13 = vmul.f32 2.0, %v10066_v10  ;;  %v5122_v35 = vsel %vm2487_vm1, %v10274_v46, 0.0  ;;  %7309 = vrcp.f32 %v4765_v37  ;;  %v11874_v10 = vld [vmem:[#allocation62_spill] sm:$0xff] }
 0x35c   :  { %5126 = vadd.xlane.f32.xlu1 %v5125_v50  ;;  %v4769_v21 = vadd.f32 1.0, %v4641_v3  ;;  %v4640_v28 = vmax.f32 %v4512_v55, 0.0  ;;  %v4514_v62 = vsub.f32 %v10025_v58, %v4386_v6  ;;  %5123 = vadd.xlane.f32.xlu0 %v5122_v35  ;;  %7311 = vrcp.f32 %v4764_v52  ;;  %v10329_v3 = vpop.xlane.xlu1 %4156 }
 0x35d   :  { %v10306_v20 = vpop.f32.mrb[168].mxu0  ;;  %v4643_v60 = vmax.f32 %v4515_v38, 0.0  ;;  %v4517_v56 = vsub.f32 %v10052_v9, %v4389_v23  ;;  %v4390_v26 = vmul.f32 2.0, %v10076_v30  ;;  %v10325_v61 = vpop.eup %7295  ;;  %7313 = vrcp.f32 %v4767_v39  ;;  %v11876_v30 = vld [vmem:[#allocation73_spill] sm:$0xff] }
 0x35e   :  { %v10313_v22 = vpop.f32.mrb[169].mxu0  ;;  %11873 = vst [vmem:[#allocation98_spill] sm:$0xff] %v10325_v61  ;;  %v4516_v50 = vsub.f32 %v11874_v10, %v4388_v51  ;;  %v4393_v37 = vmul.f32 2.0, %v10098_v24  ;;  %v5131_v58 = vsel %vm2487_vm1, %v10281_v47, 0.0  ;;  %v10335_v6 = vpop.eup %7297  ;;  %7315 = vrcp.f32 %v4766_v27 }
 0x35f   :  { %11875 = vst [vmem:[#allocation62_spill] sm:$0xff] %v10335_v6  ;;  %v4519_v9 = vsub.f32 %v10072_v5, %v4391_v13  ;;  %v4392_v52 = vmul.f32 2.0, %v11876_v30  ;;  %v10339_v38 = vpop.xlane.xlu0 %4153  ;;  %v5128_v24 = vsel %vm2487_vm1, %v10285_v53, 0.0  ;;  %v10343_v23 = vpop.eup %7299  ;;  %7317 = vrcp.f32 %v4769_v21  ;;  %v11879_v13 = vld [vmem:[#allocation66_spill] sm:$0xff]  ;;  %v11880_v53 = vld [vmem:[#allocation69_spill] sm:$0xff] }
 0x360   :  { %5132 = vadd.xlane.f32.xlu1 %v5131_v58  ;;  %11877 = vst [vmem:[#allocation73_spill] sm:$0xff] %v10343_v23  ;;  %v4768_v39 = vadd.f32 1.0, %v4640_v28  ;;  %v4642_v51 = vmax.f32 %v4514_v62, 0.0  ;;  %v4395_v35 = vmul.f32 2.0, %v10124_v43  ;;  %5129 = vadd.xlane.f32.xlu0 %v5128_v24  ;;  %v10346_v10 = vpop.eup %7301  ;;  %v4771_v27 = vadd.f32 1.0, %v4643_v60 }
 0x361   :  { %v10323_v31 = vpop.f32.mrb[170].mxu0  ;;  %11878 = vst [vmem:[#allocation99_spill] sm:$0xff] %v10346_v10  ;;  %v4645_v5 = vmax.f32 %v4517_v56, 0.0  ;;  %v4518_v30 = vsub.f32 %v11879_v13, %v4390_v26  ;;  %v4394_v47 = vmul.f32 2.0, %v10136_v4  ;;  %v4644_v46 = vmax.f32 %v4516_v50, 0.0  ;;  %v11882_v56 = vld [vmem:[#allocation2_spill] sm:$0xff]  ;;  %v10367_v13 = vpop.xlane.xlu1 %4162 }
 0x362   :  { %v10333_v55 = vpop.f32.mrb[171].mxu0  ;;  %v4521_v18 = vsub.f32 %v11880_v53, %v4393_v37  ;;  %v4397_v21 = vmul.f32 2.0, %v10157_v48  ;;  %v5137_v28 = vsel %vm2487_vm1, %v10290_v32, 0.0  ;;  %v10358_v62 = vpop.eup %7303  ;;  %v4647_v60 = vmax.f32 %v4519_v9, 0.0  ;;  %v11884_v53 = vld [vmem:[#allocation4_spill] sm:$0xff]  ;;  %11885 = vst [vmem:[#allocation2_spill] sm:$0xff] %v10367_v13 }
 0x363   :  { %11881 = vst [vmem:[#allocation66_spill] sm:$0xff] %v10358_v62  ;;  %v4520_v24 = vsub.f32 %v11882_v56, %v4392_v52  ;;  %v4396_v26 = vmul.f32 2.0, %v10162_v2  ;;  %v5134_v4 = vsel %vm2487_vm1, %v10308_v15, 0.0  ;;  %v10364_v50 = vpop.eup %7305  ;;  %7319 = vrcp.f32 %v4768_v39  ;;  %v10373_v25 = vpop.xlane.xlu0 %4159  ;;  %v11895_v13 = vld [vmem:[#allocation12_spill] sm:$0xff] }
 0x364   :  { %5138 = vadd.xlane.f32.xlu1 %v5137_v28  ;;  %11883 = vst [vmem:[#allocation69_spill] sm:$0xff] %v10364_v50  ;;  %v4770_v48 = vadd.f32 1.0, %v4642_v51  ;;  %v4523_v37 = vsub.f32 %v11884_v53, %v4395_v35  ;;  %v4399_v32 = vmul.f32 2.0, %v10178_v8  ;;  %5135 = vadd.xlane.f32.xlu0 %v5134_v4  ;;  %v10370_v9 = vpop.eup %7307  ;;  %7321 = vrcp.f32 %v4771_v27  ;;  %v11887_v28 = vld [vmem:[#allocation38_spill] sm:$0xff] }
 0x365   :  { %v10350_v58 = vpop.f32.mrb[172].mxu0  ;;  %11886 = vst [vmem:[#allocation4_spill] sm:$0xff] %v10370_v9  ;;  %v4773_v52 = vadd.f32 1.0, %v4645_v5  ;;  %v4646_v2 = vmax.f32 %v4518_v30, 0.0  ;;  %v4522_v56 = vsub.f32 %v11887_v28, %v4394_v47  ;;  %11888 = vst [vmem:[#allocation38_spill] sm:$0xff] %v10373_v25  ;;  %v10377_v39 = vpop.eup %7309  ;;  %v4772_v51 = vadd.f32 1.0, %v4644_v46 }
 0x366   :  { %v10356_v43 = vpop.f32.mrb[173].mxu0  ;;  %11889 = vst [vmem:[#allocation100_spill] sm:$0xff] %v10377_v39  ;;  %v4649_v35 = vmax.f32 %v4521_v18, 0.0  ;;  %v4525_v53 = vsub.f32 %v10154_v14, %v4397_v21  ;;  %v5143_v8 = vsel %vm2487_vm1, %v10315_v40, 0.0  ;;  %v10384_v27 = vpop.eup %7311  ;;  %v4775_v5 = vadd.f32 1.0, %v4647_v60  ;;  %v11891_v47 = vld [vmem:[#allocation5_spill] sm:$0xff] }
 0x367   :  { %11890 = vst [vmem:[#allocation101_spill] sm:$0xff] %v10384_v27  ;;  %v4648_v30 = vmax.f32 %v4520_v24, 0.0  ;;  %v4524_v28 = vsub.f32 %v11891_v47, %v4396_v26  ;;  %v5140_v63 = vsel %vm2487_vm1, %v10325_v61, 0.0  ;;  %v10389_v33 = vpop.eup %7313  ;;  %7323 = vrcp.f32 %v4770_v48  ;;  %v11893_v46 = vld [vmem:[#allocation9_spill] sm:$0xff]  ;;  %v11896_v60 = vld [vmem:[#allocation42_spill] sm:$0xff]  ;;  %v10401_v25 = vpop.xlane.xlu1 %4168 }
 0x368   :  { %5144 = vadd.xlane.f32.xlu1 %v5143_v8  ;;  %11892 = vst [vmem:[#allocation5_spill] sm:$0xff] %v10389_v33  ;;  %v4651_v18 = vmax.f32 %v4523_v37, 0.0  ;;  %v4527_v14 = vsub.f32 %v10184_v11, %v4399_v32  ;;  %v4398_v21 = vmul.f32 2.0, %v11893_v46  ;;  %5141 = vadd.xlane.f32.xlu0 %v5140_v63  ;;  %v10393_v40 = vpop.eup %7315  ;;  %v4270_v24 = vadd.f32 %v11896_v60, %v11895_v13 }
 0x369   :  { %v10375_v15 = vpop.f32.mrb[174].mxu0  ;;  %11894 = vst [vmem:[#allocation9_spill] sm:$0xff] %v10393_v40  ;;  %7325 = vrcp.f32 %v4773_v52  ;;  %v4774_v26 = vadd.f32 1.0, %v4646_v2  ;;  %v4650_v8 = vmax.f32 %v4522_v56, 0.0  ;;  %v10399_v61 = vpop.eup %7317  ;;  %v4777_v48 = vadd.f32 1.0, %v4649_v35  ;;  %11898 = vst [vmem:[#allocation42_spill] sm:$0xff] %v10401_v25 }
 0x36a   :  { %v10382_v4 = vpop.f32.mrb[175].mxu0  ;;  %11897 = vst [vmem:[#allocation12_spill] sm:$0xff] %v10399_v61  ;;  %7327 = vrcp.f32 %v4772_v51  ;;  %v4653_v37 = vmax.f32 %v4525_v53, 0.0  ;;  %v5149_v11 = vsel %vm2487_vm1, %v10335_v6, 0.0  ;;  %v4776_v32 = vadd.f32 1.0, %v4648_v30  ;;  %v10407_v52 = vpop.xlane.xlu0 %4165 }
 0x36b   :  { %7329 = vrcp.f32 %v4775_v5  ;;  %v4652_v13 = vmax.f32 %v4524_v28, 0.0  ;;  %11899 = vst [vmem:[#allocation102_spill] sm:$0xff] %v10407_v52  ;;  %v5146_v2 = vsel %vm2487_vm1, %v10343_v23, 0.0  ;;  %v4779_v56 = vadd.f32 1.0, %v4651_v18  ;;  %v11900_v5 = vld [vmem:[#allocation47_spill] sm:$0xff]  ;;  %v11925_v52 = vld [vmem:[#allocation56_spill] sm:$0xff] }
 0x36c   :  { %5150 = vadd.xlane.f32.xlu1 %v5149_v11  ;;  %v4655_v51 = vmax.f32 %v4527_v14, 0.0  ;;  %v4526_v35 = vsub.f32 %v4270_v24, %v4398_v21  ;;  %v4401_v53 = vmul.f32 2.0, %v10196_v17  ;;  %5147 = vadd.xlane.f32.xlu0 %v5146_v2  ;;  %7331 = vrcp.f32 %v4774_v26  ;;  %v11902_v2 = vld [vmem:[#allocation18_spill] sm:$0xff] }
 0x36d   :  { %v10397_v47 = vpop.f32.mrb[176].mxu0  ;;  %v4778_v46 = vadd.f32 1.0, %v4650_v8  ;;  %v10414_v25 = vpop.eup %7319  ;;  %v4273_v30 = vadd.f32 %v11896_v60, %v11900_v5  ;;  %7333 = vrcp.f32 %v4777_v48  ;;  %v4781_v28 = vadd.f32 1.0, %v4653_v37 }
 0x36e   :  { %v10405_v63 = vpop.f32.mrb[177].mxu0  ;;  %v5155_v11 = vsel %vm2487_vm1, %v10346_v10, 0.0  ;;  %v10422_v14 = vpop.eup %7321  ;;  %7335 = vrcp.f32 %v4776_v32  ;;  %v4780_v17 = vadd.f32 1.0, %v4652_v13  ;;  %v4400_v21 = vmul.f32 2.0, %v10205_v49 }
 0x36f   :  { %v5152_v24 = vsel %vm2487_vm1, %v10358_v62, 0.0  ;;  %7337 = vrcp.f32 %v4779_v56  ;;  %v4783_v26 = vadd.f32 1.0, %v4655_v51  ;;  %v4654_v8 = vmax.f32 %v4526_v35, 0.0  ;;  %v10427_v37 = vpop.xlane.xlu1 %4174  ;;  %v10431_v10 = vpop.xlane.xlu0 %4171  ;;  %v11908_v62 = vld [vmem:[#allocation23_spill] sm:$0xff] }
 0x370   :  { %5156 = vadd.xlane.f32.xlu1 %v5155_v11  ;;  %v4529_v48 = vsub.f32 %v4273_v30, %v4401_v53  ;;  %11901 = vst [vmem:[#allocation47_spill] sm:$0xff] %v10427_v37  ;;  %5153 = vadd.xlane.f32.xlu0 %v5152_v24  ;;  %v4272_v5 = vadd.f32 %v11896_v60, %v11902_v2  ;;  %7339 = vrcp.f32 %v4778_v46  ;;  %11903 = vst [vmem:[#allocation18_spill] sm:$0xff] %v10431_v10  ;;  %v11915_v10 = vld [vmem:[#allocation29_spill] sm:$0xff] }
 0x371   :  { %v10412_v6 = vpop.f32.mrb[178].mxu0  ;;  %v10435_v49 = vpop.eup %7323  ;;  %7341 = vrcp.f32 %v4781_v28  ;;  %v5161_v13 = vsel %vm2487_vm1, %v10364_v50, 0.0  ;;  %v4403_v53 = vmul.f32 2.0, %v10217_v34  ;;  %v5158_v46 = vsel %vm2487_vm1, %v10370_v9, 0.0 }
 0x372   :  { %v10420_v18 = vpop.f32.mrb[179].mxu0  ;;  %7343 = vrcp.f32 %v4780_v17  ;;  %v4528_v35 = vsub.f32 %v4272_v5, %v4400_v21  ;;  %v4782_v11 = vadd.f32 1.0, %v4654_v8  ;;  %v4657_v28 = vmax.f32 %v4529_v48, 0.0  ;;  %v11910_v5 = vld [vmem:[#allocation24_spill] sm:$0xff] }
 0x373   :  { %v10441_v51 = vpop.eup %7325  ;;  %7345 = vrcp.f32 %v4783_v26  ;;  %v4402_v24 = vmul.f32 2.0, %v10225_v57  ;;  %v4953_v2 = vpop.xlane.xlu1 %4952  ;;  %v4275_v17 = vadd.f32 %v11896_v60, %v11908_v62  ;;  %v5167_v26 = vsel %vm2487_vm1, %v10377_v39, 0.0 }
 0x374   :  { %5162 = vadd.xlane.f32.xlu1 %v5161_v13  ;;  %v10446_v30 = vpop.eup %7327  ;;  %5159 = vadd.xlane.f32.xlu0 %v5158_v46  ;;  %7347 = vrcp.f32 %v4953_v2  ;;  %v4950_v34 = vpop.xlane.xlu0 %4949  ;;  %v4274_v13 = vadd.f32 %v11896_v60, %v11910_v5  ;;  %v4656_v48 = vmax.f32 %v4528_v35, 0.0  ;;  %v4405_v9 = vmul.f32 2.0, %v10242_v45 }
 0x375   :  { %v10433_v32 = vpop.f32.mrb[180].mxu0  ;;  %11906 = vst [vmem:[#allocation105_spill] sm:$0xff] %v10446_v30  ;;  %v10449_v50 = vpop.eup %7329  ;;  %7349 = vrcp.f32 %v4950_v34  ;;  %v4531_v46 = vsub.f32 %v4275_v17, %v4403_v53  ;;  %v5164_v62 = vsel %vm2487_vm1, %v10384_v27, 0.0  ;;  %v4785_v5 = vadd.f32 1.0, %v4657_v28 }
 0x376   :  { %11904 = vst [vmem:[#allocation103_spill] sm:$0xff] %v10433_v32  ;;  %v10439_v56 = vpop.f32.mrb[181].mxu0  ;;  %11907 = vst [vmem:[#allocation106_spill] sm:$0xff] %v10449_v50  ;;  %v10461_v57 = vpop.eup %7331  ;;  %7351 = vrcp.f32 %v4782_v11  ;;  %v4530_v34 = vsub.f32 %v4274_v13, %v4402_v24  ;;  %v4404_v23 = vmul.f32 2.0, %v10248_v54  ;;  %v4277_v35 = vadd.f32 %v11896_v60, %v11915_v10 }
 0x377   :  { %11905 = vst [vmem:[#allocation104_spill] sm:$0xff] %v10439_v56  ;;  %11912 = vst [vmem:[#allocation107_spill] sm:$0xff] %v10461_v57  ;;  %v10466_v2 = vpop.eup %7333  ;;  %v4959_v39 = vpop.xlane.xlu1 %4958  ;;  %v5173_v54 = vsel %vm2487_vm1, %v10389_v33, 0.0  ;;  %v4784_v13 = vadd.f32 1.0, %v4656_v48  ;;  %v11926_v56 = vld [vmem:[#allocation57_spill] sm:$0xff] }
 0x378   :  { %5168 = vadd.xlane.f32.xlu1 %v5167_v26  ;;  %11913 = vst [vmem:[#allocation108_spill] sm:$0xff] %v10466_v2  ;;  %5165 = vadd.xlane.f32.xlu0 %v5164_v62  ;;  %v10469_v37 = vpop.eup %7335  ;;  %7353 = vrcp.f32 %v4959_v39  ;;  %v4956_v45 = vpop.xlane.xlu0 %4955  ;;  %v11918_v26 = vld [vmem:[#allocation33_spill] sm:$0xff]  ;;  %v4659_v62 = vmax.f32 %v4531_v46, 0.0  ;;  %v4533_v10 = vsub.f32 %v4277_v35, %v4405_v9  ;;  %v5170_v39 = vsel %vm2487_vm1, %v10393_v40, 0.0 }
 0x379   :  { %v10453_v21 = vpop.f32.mrb[182].mxu0  ;;  %11914 = vst [vmem:[#allocation109_spill] sm:$0xff] %v10469_v37  ;;  %v10475_v17 = vpop.eup %7337  ;;  %v4276_v11 = vadd.f32 %v11896_v60, %v11918_v26  ;;  %7355 = vrcp.f32 %v4956_v45  ;;  %v4407_v45 = vmul.f32 2.0, %v10263_v7  ;;  %v5179_v7 = vsel %vm2487_vm1, %v10399_v61, 0.0 }
 0x37a   :  { %11909 = vst [vmem:[#allocation23_spill] sm:$0xff] %v10453_v21  ;;  %v10459_v8 = vpop.f32.mrb[183].mxu0  ;;  %11917 = vst [vmem:[#allocation110_spill] sm:$0xff] %v10475_v17  ;;  %v10483_v24 = vpop.eup %7339  ;;  %7357 = vrcp.f32 %v4785_v5 }
 0x37b   :  { %11911 = vst [vmem:[#allocation24_spill] sm:$0xff] %v10459_v8  ;;  %11920 = vst [vmem:[#allocation111_spill] sm:$0xff] %v10483_v24  ;;  %v10487_v27 = vpop.eup %7341  ;;  %v4532_v26 = vsub.f32 %v4276_v11, %v4404_v23  ;;  %v4965_v33 = vpop.xlane.xlu1 %4964  ;;  %v4406_v23 = vmul.f32 2.0, %v10272_v16 }
 0x37c   :  { %5174 = vadd.xlane.f32.xlu1 %v5173_v54  ;;  %5171 = vadd.xlane.f32.xlu0 %v5170_v39  ;;  %v10490_v8 = vpop.eup %7343  ;;  %7359 = vrcp.f32 %v4965_v33  ;;  %v4962_v9 = vpop.xlane.xlu0 %4961  ;;  %v11923_v54 = vld [vmem:[#allocation43_spill] sm:$0xff]  ;;  %v4661_v33 = vmax.f32 %v4533_v10, 0.0  ;;  %v5176_v39 = vsel %vm2487_vm1, %v10414_v25, 0.0 }
 0x37d   :  { %v10473_v53 = vpop.f32.mrb[184].mxu0  ;;  %v10496_v35 = vpop.eup %7345  ;;  %v4279_v5 = vadd.f32 %v11896_v60, %v11923_v54  ;;  %7361 = vrcp.f32 %v4962_v9  ;;  %v4660_v21 = vmax.f32 %v4532_v26, 0.0  ;;  %v5182_v26 = vsel %vm2487_vm1, %v10435_v49, 0.0 }
 0x37e   :  { %11916 = vst [vmem:[#allocation29_spill] sm:$0xff] %v10473_v53  ;;  %v10481_v28 = vpop.f32.mrb[185].mxu0  ;;  %v4658_v53 = vmax.f32 %v4530_v34, 0.0  ;;  %v7348_v11 = vpop.eup %7347  ;;  %7363 = vrcp.f32 %v4784_v13 }
 0x37f   :  { %11919 = vst [vmem:[#allocation33_spill] sm:$0xff] %v10481_v28  ;;  %v11921_v28 = vld [vmem:[#allocation44_spill] sm:$0xff]  ;;  %v7350_v40 = vpop.eup %7349  ;;  %v4535_v54 = vsub.f32 %v4279_v5, %v4407_v45  ;;  %v5461_v16 = vmul.f32 %v7348_v11, %v11925_v52  ;;  %v4971_v9 = vpop.xlane.xlu1 %4970  ;;  %v5185_v52 = vsel %vm2487_vm1, %v10422_v14, 0.0  ;;  %v11928_v11 = vld [vmem:[#allocation51_spill] sm:$0xff] }
 0x380   :  { %v4278_v48 = vadd.f32 %v11896_v60, %v11921_v28  ;;  %v4787_v28 = vadd.f32 1.0, %v4659_v62  ;;  %5180 = vadd.xlane.f32.xlu1 %v5179_v7  ;;  %5177 = vadd.xlane.f32.xlu0 %v5176_v39  ;;  %v5460_v61 = vmul.f32 %v7350_v40, %v11926_v56  ;;  %7365 = vrcp.f32 %v4971_v9  ;;  %v10511_v13 = vpop.eup %7351 }
 0x381   :  { %v10494_v46 = vpop.f32.mrb[186].mxu0  ;;  %5589 = vst.msk [vmem:[%s11486_s6 + $0x8] sm:$0xff] %vm2487_vm1, %v5461_v16  ;;  %v4789_v40 = vadd.f32 1.0, %v4661_v33  ;;  %v4409_v56 = vmul.f32 2.0, %v10288_v29  ;;  %v4663_v5 = vmax.f32 %v4535_v54, 0.0  ;;  %v4281_v29 = vadd.f32 %v11896_v60, %v11928_v11 }
 0x382   :  { %11922 = vst [vmem:[#allocation44_spill] sm:$0xff] %v10494_v46  ;;  %v10503_v34 = vpop.f32.mrb[187].mxu0  ;;  %v4786_v46 = vadd.f32 1.0, %v4658_v53  ;;  %v4534_v62 = vsub.f32 %v4278_v48, %v4406_v23  ;;  %v7354_v10 = vpop.eup %7353  ;;  %5588 = vst.msk [vmem:[%s11486_s6] sm:$0xff] %vm2487_vm1, %v5460_v61  ;;  %v4788_v48 = vadd.f32 1.0, %v4660_v21  ;;  %v11927_v23 = vld [vmem:[#allocation60_spill] sm:$0xff] }
 0x383   :  { %11924 = vst [vmem:[#allocation43_spill] sm:$0xff] %v10503_v34  ;;  %v4968_v34 = vpop.xlane.xlu0 %4967  ;;  %v7356_v45 = vpop.eup %7355  ;;  %v5463_v7 = vmul.f32 %v7354_v10, %v11927_v23  ;;  %v5191_v21 = vsel %vm2487_vm1, %v10441_v51, 0.0  ;;  %v5188_v10 = vsel %vm2487_vm1, %v10446_v30, 0.0  ;;  %v4408_v23 = vmul.f32 2.0, %v10294_v41 }
 0x384   :  { %7367 = vrcp.f32 %v4968_v34  ;;  %5186 = vadd.xlane.f32.xlu1 %v5185_v52  ;;  %5183 = vadd.xlane.f32.xlu0 %v5182_v26  ;;  %v4977_v34 = vpop.xlane.xlu1 %4976  ;;  %v10534_v16 = vpop.eup %7357  ;;  %v4662_v9 = vmax.f32 %v4534_v62, 0.0  ;;  %v4537_v52 = vsub.f32 %v4281_v29, %v4409_v56  ;;  %v11931_v56 = vld [vmem:[#allocation64_spill] sm:$0xff]  ;;  %v5197_v41 = vsel %vm2487_vm1, %v10449_v50, 0.0 }
 0x385   :  { %v10509_v32 = vpop.f32.mrb[188].mxu0  ;;  %7369 = vrcp.f32 %v4787_v28  ;;  %v11929_v28 = vld [vmem:[#allocation61_spill] sm:$0xff]  ;;  %5591 = vst.msk [vmem:[%s11486_s6 + $0x18] sm:$0xff] %vm2487_vm1, %v5463_v7  ;;  %v11930_v7 = vld [vmem:[#allocation63_spill] sm:$0xff]  ;;  %v11935_v50 = vld [vmem:[#allocation68_spill] sm:$0xff] }
 0x386   :  { %v10519_v53 = vpop.f32.mrb[189].mxu0  ;;  %7371 = vrcp.f32 %v4786_v46  ;;  %v5462_v33 = vmul.f32 %v7356_v45, %v11929_v28  ;;  %v7360_v54 = vpop.eup %7359  ;;  %v4791_v45 = vadd.f32 1.0, %v4663_v5 }
 0x387   :  { %7373 = vrcp.f32 %v4977_v34  ;;  %v4974_v39 = vpop.xlane.xlu0 %4973  ;;  %v7362_v26 = vpop.eup %7361  ;;  %v5465_v34 = vmul.f32 %v7360_v54, %v11930_v7  ;;  %v4665_v54 = vmax.f32 %v4537_v52, 0.0 }
 0x388   :  { %7375 = vrcp.f32 %v4974_v39  ;;  %5590 = vst.msk [vmem:[%s11486_s6 + $0x10] sm:$0xff] %vm2487_vm1, %v5462_v33  ;;  %5192 = vadd.xlane.f32.xlu1 %v5191_v21  ;;  %5189 = vadd.xlane.f32.xlu0 %v5188_v10  ;;  %v10552_v62 = vpop.eup %7363  ;;  %v5464_v11 = vmul.f32 %v7362_v26, %v11931_v56  ;;  %v11932_v33 = vld [vmem:[#allocation54_spill] sm:$0xff]  ;;  %v4790_v21 = vadd.f32 1.0, %v4662_v9  ;;  %v4411_v10 = vmul.f32 2.0, %v10306_v20  ;;  %v11933_v56 = vld [vmem:[#allocation67_spill] sm:$0xff] }
 0x389   :  { %v10532_v61 = vpop.f32.mrb[190].mxu0  ;;  %7377 = vrcp.f32 %v4789_v40  ;;  %v4983_v40 = vpop.xlane.xlu1 %4982  ;;  %v4280_v39 = vadd.f32 %v11896_v60, %v11932_v33  ;;  %5593 = vst.msk [vmem:[%s11486_s6 + $0x28] sm:$0xff] %vm2487_vm1, %v5465_v34  ;;  %v5194_v26 = vsel %vm2487_vm1, %v10461_v57, 0.0  ;;  %v11934_v20 = vld [vmem:[#allocation86_spill] sm:$0xff]  ;;  %v11936_v57 = vld [vmem:[#allocation87_spill] sm:$0xff] }
 0x38a   :  { %v10542_v46 = vpop.f32.mrb[191].mxu0  ;;  %7379 = vrcp.f32 %v4788_v48  ;;  %v7366_v5 = vpop.eup %7365  ;;  %5592 = vst.msk [vmem:[%s11486_s6 + $0x20] sm:$0xff] %vm2487_vm1, %v5464_v11  ;;  %v4283_v33 = vadd.f32 %v11896_v60, %v11934_v20 }
 0x38b   :  { %7381 = vrcp.f32 %v4983_v40  ;;  %v4980_v29 = vpop.xlane.xlu0 %4979  ;;  %v4536_v34 = vsub.f32 %v4280_v39, %v4408_v23  ;;  %v4410_v40 = vmul.f32 2.0, %v10313_v22  ;;  %v5203_v22 = vsel %vm2487_vm1, %v10466_v2, 0.0 }
 0x38c   :  { %7383 = vrcp.f32 %v4980_v29  ;;  %5198 = vadd.xlane.f32.xlu1 %v5197_v41  ;;  %v5467_v29 = vmul.f32 %v7366_v5, %v11933_v56  ;;  %5195 = vadd.xlane.f32.xlu0 %v5194_v26  ;;  %v4539_v39 = vsub.f32 %v4283_v33, %v4411_v10  ;;  %v4793_v26 = vadd.f32 1.0, %v4665_v54  ;;  %v11939_v33 = vld [vmem:[#allocation89_spill] sm:$0xff] }
 0x38d   :  { %v10555_v28 = vpop.f32.mrb[192].mxu0  ;;  %7385 = vrcp.f32 %v4791_v45  ;;  %v4989_v9 = vpop.xlane.xlu1 %4988  ;;  %v4282_v45 = vadd.f32 %v11896_v60, %v11936_v57  ;;  %v5200_v57 = vsel %vm2487_vm1, %v10469_v37, 0.0 }
 0x38e   :  { %v10565_v48 = vpop.f32.mrb[193].mxu0  ;;  %v7368_v7 = vpop.eup %7367  ;;  %7387 = vrcp.f32 %v4989_v9  ;;  %5595 = vst.msk [vmem:[%s11486_s6 + $0x38] sm:$0xff] %vm2487_vm1, %v5467_v29  ;;  %v11937_v29 = vld [vmem:[#allocation31_spill] sm:$0xff] }
 0x38f   :  { %v10576_v52 = vpop.eup %7369  ;;  %v5466_v11 = vmul.f32 %v7368_v7, %v11935_v50  ;;  %v4986_v41 = vpop.xlane.xlu0 %4985  ;;  %v4413_v50 = vmul.f32 2.0, %v10323_v31  ;;  %v4664_v7 = vmax.f32 %v4536_v34, 0.0  ;;  %v4538_v56 = vsub.f32 %v4282_v45, %v4410_v40  ;;  %v11938_v31 = vld [vmem:[#allocation65_spill] sm:$0xff]  ;;  %v11941_v34 = vld [vmem:[#allocation71_spill] sm:$0xff]  ;;  %v11942_v45 = vld [vmem:[#allocation74_spill] sm:$0xff] }
 0x390   :  { %v10581_v30 = vpop.eup %7371  ;;  %7389 = vrcp.f32 %v4986_v41  ;;  %5204 = vadd.xlane.f32.xlu1 %v5203_v22  ;;  %5201 = vadd.xlane.f32.xlu0 %v5200_v57  ;;  %v10603_v20 = vadd.f32 %v11896_v60, %v11938_v31  ;;  %v11940_v41 = vld [vmem:[#allocation70_spill] sm:$0xff]  ;;  %v10612_v40 = vadd.f32 %v11896_v60, %v11941_v34  ;;  %v5209_v57 = vsel %vm2487_vm1, %v10475_v17, 0.0  ;;  %v11943_v34 = vld [vmem:[#allocation72_spill] sm:$0xff] }
 0x391   :  { %v7374_v23 = vpop.eup %7373  ;;  %7391 = vrcp.f32 %v4790_v21  ;;  %5594 = vst.msk [vmem:[%s11486_s6 + $0x30] sm:$0xff] %vm2487_vm1, %v5466_v11  ;;  %v4995_v21 = vpop.xlane.xlu1 %4994  ;;  %v4285_v11 = vadd.f32 %v11896_v60, %v11939_v33  ;;  %v4412_v31 = vmul.f32 2.0, %v10333_v55  ;;  %v5206_v33 = vsel %vm2487_vm1, %v10483_v24, 0.0 }
 0x392   :  { %v7376_v5 = vpop.eup %7375  ;;  %v5469_v9 = vmul.f32 %v7374_v23, %v11937_v29  ;;  %7393 = vrcp.f32 %v4995_v21  ;;  %v10616_v23 = vadd.f32 %v11896_v60, %v11942_v45  ;;  %v4667_v29 = vmax.f32 %v4539_v39, 0.0 }
 0x393   :  { %v10599_v10 = vpop.eup %7377  ;;  %v5468_v22 = vmul.f32 %v7376_v5, %v11940_v41  ;;  %v4992_v37 = vpop.xlane.xlu0 %4991  ;;  %v4541_v21 = vsub.f32 %v4285_v11, %v4413_v50  ;;  %v11944_v50 = vld [vmem:[#allocation11_spill] sm:$0xff]  ;;  %v11945_v11 = vld [vmem:[#allocation8_spill] sm:$0xff] }
 0x394   :  { %v10608_v54 = vpop.eup %7379  ;;  %5597 = vst.msk [vmem:[%s11486_s6 + $0x48] sm:$0xff] %vm2487_vm1, %v5469_v9  ;;  %7395 = vrcp.f32 %v4992_v37  ;;  %5210 = vadd.xlane.f32.xlu1 %v5209_v57  ;;  %v4792_v37 = vadd.f32 1.0, %v4664_v7  ;;  %v4666_v9 = vmax.f32 %v4538_v56, 0.0  ;;  %5207 = vadd.xlane.f32.xlu0 %v5206_v33  ;;  %v10634_v55 = vadd.f32 %v11896_v60, %v11944_v50  ;;  %v11948_v56 = vld [vmem:[#allocation16_spill] sm:$0xff] }
 0x395   :  { %v7382_v5 = vpop.eup %7381  ;;  %5596 = vst.msk [vmem:[%s11486_s6 + $0x40] sm:$0xff] %vm2487_vm1, %v5468_v22  ;;  %7397 = vrcp.f32 %v4793_v26  ;;  %v5001_v39 = vpop.xlane.xlu1 %5000  ;;  %v10638_v17 = vadd.f32 %v11896_v60, %v11945_v11  ;;  %v11946_v22 = vld [vmem:[#allocation3_spill] sm:$0xff]  ;;  %v11947_v26 = vld [vmem:[#allocation20_spill] sm:$0xff]  ;;  %v5215_v33 = vsel %vm2487_vm1, %v10487_v27, 0.0  ;;  %v4415_v50 = vmul.f32 2.0, %v10350_v58 }
 0x396   :  { %v7384_v41 = vpop.eup %7383  ;;  %v5471_v45 = vmul.f32 %v7382_v5, %v11943_v34  ;;  %7399 = vrcp.f32 %v5001_v39  ;;  %v10645_v7 = vadd.f32 %v11896_v60, %v11947_v26  ;;  %v10649_v5 = vadd.f32 %v11896_v60, %v11948_v56  ;;  %v11949_v26 = vld [vmem:[#allocation75_spill] sm:$0xff] }
 0x397   :  { %v5470_v57 = vmul.f32 %v7384_v41, %v11946_v22  ;;  %v4998_v24 = vpop.xlane.xlu0 %4997  ;;  %v10641_v2 = vpop.eup %7385  ;;  %v4795_v34 = vadd.f32 1.0, %v4667_v29  ;;  %v4540_v39 = vsub.f32 %v10603_v20, %v4412_v31  ;;  %v5212_v11 = vsel %vm2487_vm1, %v10490_v8, 0.0 }
 0x398   :  { %5599 = vst.msk [vmem:[%s11486_s6 + $0x58] sm:$0xff] %vm2487_vm1, %v5471_v45  ;;  %7401 = vrcp.f32 %v4998_v24  ;;  %v7388_v41 = vpop.eup %7387  ;;  %5216 = vadd.xlane.f32.xlu1 %v5215_v33  ;;  %v4794_v24 = vadd.f32 1.0, %v4666_v9  ;;  %v4669_v22 = vmax.f32 %v4541_v21, 0.0  ;;  %5213 = vadd.xlane.f32.xlu0 %v5212_v11  ;;  %v10670_v58 = vadd.f32 %v11896_v60, %v10208_v44 }
 0x399   :  { %5598 = vst.msk [vmem:[%s11486_s6 + $0x50] sm:$0xff] %vm2487_vm1, %v5470_v57  ;;  %7403 = vrcp.f32 %v4792_v37  ;;  %v5473_v56 = vmul.f32 %v7388_v41, %v11949_v26  ;;  %v5007_v29 = vpop.xlane.xlu1 %5006  ;;  %v10674_v31 = vadd.f32 %v11896_v60, %v10201_v42  ;;  %v11950_v57 = vld [vmem:[#allocation76_spill] sm:$0xff]  ;;  %v10679_v21 = vadd.f32 %v11896_v60, %v10240_v12 }
 0x39a   :  { %v7390_v45 = vpop.eup %7389  ;;  %7405 = vrcp.f32 %v5007_v29  ;;  %v4414_v9 = vmul.f32 2.0, %v10356_v43  ;;  %v5221_v42 = vsel %vm2487_vm1, %v10496_v35, 0.0  ;;  %v4668_v41 = vmax.f32 %v4540_v39, 0.0 }
 0x39b   :  { %v10666_v20 = vpop.eup %7391  ;;  %v5472_v33 = vmul.f32 %v7390_v45, %v11950_v57  ;;  %v5004_v37 = vpop.xlane.xlu0 %5003  ;;  %5601 = vst.msk [vmem:[%s11486_s6 + $0x68] sm:$0xff] %vm2487_vm1, %v5473_v56  ;;  %v4543_v11 = vsub.f32 %v10616_v23, %v4415_v50  ;;  %v5218_v12 = vsel %vm2487_vm1, %v10511_v13, 0.0  ;;  %v4797_v45 = vadd.f32 1.0, %v4669_v22  ;;  %v11951_v56 = vld [vmem:[#allocation79_spill] sm:$0xff]  ;;  %v11952_v50 = vld [vmem:[#allocation81_spill] sm:$0xff] }
 0x39c   :  { %7407 = vrcp.f32 %v5004_v37  ;;  %v7394_v44 = vpop.eup %7393  ;;  %5222 = vadd.xlane.f32.xlu1 %v5221_v42  ;;  %v4417_v26 = vmul.f32 2.0, %v10375_v15  ;;  %5219 = vadd.xlane.f32.xlu0 %v5218_v12  ;;  %v10699_v23 = vadd.f32 %v11896_v60, %v10234_v19  ;;  %v10703_v39 = vadd.f32 %v11896_v60, %v10277_v1 }
 0x39d   :  { %7409 = vrcp.f32 %v4795_v34  ;;  %5600 = vst.msk [vmem:[%s11486_s6 + $0x60] sm:$0xff] %vm2487_vm1, %v5472_v33  ;;  %v5475_v29 = vmul.f32 %v7394_v44, %v11951_v56  ;;  %v5013_v34 = vpop.xlane.xlu1 %5012  ;;  %v10710_v15 = vadd.f32 %v11896_v60, %v10268_v36  ;;  %v4542_v22 = vsub.f32 %v10612_v40, %v4414_v9 }
 0x39e   :  { %v7396_v43 = vpop.eup %7395  ;;  %7411 = vrcp.f32 %v4794_v24  ;;  %v5227_v19 = vsel %vm2487_vm1, %v10534_v16, 0.0  ;;  %v4796_v37 = vadd.f32 1.0, %v4668_v41  ;;  %v4671_v42 = vmax.f32 %v4543_v11, 0.0 }
 0x39f   :  { %v5474_v57 = vmul.f32 %v7396_v43, %v11952_v50  ;;  %7413 = vrcp.f32 %v5013_v34  ;;  %v5010_v33 = vpop.xlane.xlu0 %5009  ;;  %v10706_v24 = vpop.eup %7397  ;;  %5603 = vst.msk [vmem:[%s11486_s6 + $0x78] sm:$0xff] %vm2487_vm1, %v5475_v29  ;;  %v4416_v44 = vmul.f32 2.0, %v10382_v4  ;;  %v5224_v36 = vsel %vm2487_vm1, %v10552_v62, 0.0  ;;  %v11953_v43 = vld [vmem:[#allocation7_spill] sm:$0xff]  ;;  %v11954_v29 = vld [vmem:[#allocation10_spill] sm:$0xff] }
 0x3a0   :  { %7415 = vrcp.f32 %v5010_v33  ;;  %v7400_v1 = vpop.eup %7399  ;;  %5228 = vadd.xlane.f32.xlu1 %v5227_v19  ;;  %v4545_v9 = vsub.f32 %v10638_v17, %v4417_v26  ;;  %v4419_v12 = vmul.f32 2.0, %v10397_v47  ;;  %5225 = vadd.xlane.f32.xlu0 %v5224_v36  ;;  %v10731_v4 = vadd.f32 %v11896_v60, %v10304_v59  ;;  %v11955_v36 = vld [vmem:[#allocation14_spill] sm:$0xff] }
 0x3a1   :  { %5602 = vst.msk [vmem:[%s11486_s6 + $0x70] sm:$0xff] %vm2487_vm1, %v5474_v57  ;;  %7417 = vrcp.f32 %v4797_v45  ;;  %v5477_v41 = vmul.f32 %v7400_v1, %v11953_v43  ;;  %v5019_v11 = vpop.xlane.xlu1 %5018  ;;  %v10735_v56 = vadd.f32 %v11896_v60, %v10300_v0  ;;  %v10742_v47 = vadd.f32 %v11896_v60, %v10339_v38  ;;  %v11956_v43 = vld [vmem:[#allocation15_spill] sm:$0xff] }
 0x3a2   :  { %v7402_v40 = vpop.eup %7401  ;;  %7419 = vrcp.f32 %v5019_v11  ;;  %v4670_v17 = vmax.f32 %v4542_v22, 0.0  ;;  %v5233_v0 = vsel %vm2487_vm1, %v10576_v52, 0.0  ;;  %v4799_v26 = vadd.f32 1.0, %v4671_v42 }
 0x3a3   :  { %v5476_v34 = vmul.f32 %v7402_v40, %v11954_v29  ;;  %v5016_v45 = vpop.xlane.xlu0 %5015  ;;  %v10738_v50 = vpop.eup %7403  ;;  %5605 = vst.msk [vmem:[%s11486_s6 + $0x88] sm:$0xff] %vm2487_vm1, %v5477_v41  ;;  %v4544_v57 = vsub.f32 %v10634_v55, %v4416_v44  ;;  %v5230_v38 = vsel %vm2487_vm1, %v10581_v30, 0.0  ;;  %v4673_v22 = vmax.f32 %v4545_v9, 0.0 }
 0x3a4   :  { %7421 = vrcp.f32 %v5016_v45  ;;  %v7406_v59 = vpop.eup %7405  ;;  %5234 = vadd.xlane.f32.xlu1 %v5233_v0  ;;  %v4547_v19 = vsub.f32 %v10649_v5, %v4419_v12  ;;  %v4418_v1 = vmul.f32 2.0, %v10405_v63  ;;  %5231 = vadd.xlane.f32.xlu0 %v5230_v38  ;;  %v10764_v44 = vadd.f32 %v11896_v60, %v10329_v3  ;;  %v11958_v5 = vld [vmem:[#allocation38_spill] sm:$0xff] }
 0x3a5   :  { %7423 = vrcp.f32 %v4796_v37  ;;  %5604 = vst.msk [vmem:[%s11486_s6 + $0x80] sm:$0xff] %vm2487_vm1, %v5476_v34  ;;  %v5479_v37 = vmul.f32 %v7406_v59, %v11955_v36  ;;  %v5025_v42 = vpop.xlane.xlu1 %5024  ;;  %v4421_v40 = vmul.f32 2.0, %v10412_v6  ;;  %v10772_v63 = vadd.f32 %v11896_v60, %v11958_v5  ;;  %v11963_v5 = vld [vmem:[#allocation104_spill] sm:$0xff] }
 0x3a6   :  { %v7408_v33 = vpop.eup %7407  ;;  %7425 = vrcp.f32 %v5025_v42  ;;  %v4798_v12 = vadd.f32 1.0, %v4670_v17  ;;  %v5239_v3 = vsel %vm2487_vm1, %v10599_v10, 0.0  ;;  %v4672_v29 = vmax.f32 %v4544_v57, 0.0  ;;  %v11960_v57 = vld [vmem:[#allocation2_spill] sm:$0xff]  ;;  %v11961_v42 = vld [vmem:[#allocation19_spill] sm:$0xff] }
 0x3a7   :  { %v10760_v55 = vpop.eup %7409  ;;  %v5478_v41 = vmul.f32 %v7408_v33, %v11956_v43  ;;  %v5022_v9 = vpop.xlane.xlu0 %5021  ;;  %5607 = vst.msk [vmem:[%s11486_s6 + $0x98] sm:$0xff] %vm2487_vm1, %v5479_v37  ;;  %v4420_v34 = vmul.f32 2.0, %v10420_v18  ;;  %v5236_v45 = vsel %vm2487_vm1, %v10608_v54, 0.0  ;;  %v4801_v0 = vadd.f32 1.0, %v4673_v22  ;;  %v11959_v33 = vld [vmem:[#allocation17_spill] sm:$0xff]  ;;  %v11962_v22 = vld [vmem:[#allocation103_spill] sm:$0xff] }
 0x3a8   :  { %v10768_v11 = vpop.eup %7411  ;;  %7427 = vrcp.f32 %v5022_v9  ;;  %5240 = vadd.xlane.f32.xlu1 %v5239_v3  ;;  %v4675_v59 = vmax.f32 %v4547_v19, 0.0  ;;  %v4546_v38 = vsub.f32 %v10645_v7, %v4418_v1  ;;  %5237 = vadd.xlane.f32.xlu0 %v5236_v45  ;;  %v10791_v18 = vadd.f32 %v11896_v60, %v11960_v57 }
 0x3a9   :  { %11957 = vst [vmem:[#allocation56_spill] sm:$0xff] %v10768_v11  ;;  %v7414_v6 = vpop.eup %7413  ;;  %7429 = vrcp.f32 %v4799_v26  ;;  %5606 = vst.msk [vmem:[%s11486_s6 + $0x90] sm:$0xff] %vm2487_vm1, %v5478_v41  ;;  %v5031_v26 = vpop.xlane.xlu1 %5030  ;;  %v4549_v37 = vsub.f32 %v10674_v31, %v4421_v40  ;;  %v4423_v19 = vmul.f32 2.0, %v11962_v22  ;;  %v4422_v7 = vmul.f32 2.0, %v11963_v5  ;;  %v11967_v5 = vld [vmem:[#allocation23_spill] sm:$0xff] }
 0x3aa   :  { %v7416_v17 = vpop.eup %7415  ;;  %v5481_v36 = vmul.f32 %v7414_v6, %v11959_v33  ;;  %7431 = vrcp.f32 %v5031_v26  ;;  %v5245_v1 = vsel %vm2487_vm1, %v10641_v2, 0.0  ;;  %v4800_v40 = vadd.f32 1.0, %v4672_v29 }
 0x3ab   :  { %v5480_v43 = vmul.f32 %v7416_v17, %v11961_v42  ;;  %v5028_v41 = vpop.xlane.xlu0 %5027  ;;  %v10795_v9 = vpop.eup %7417  ;;  %v4548_v3 = vsub.f32 %v10670_v58, %v4420_v34  ;;  %v5242_v6 = vsel %vm2487_vm1, %v10666_v20, 0.0  ;;  %v4803_v17 = vadd.f32 1.0, %v4675_v59  ;;  %v11965_v58 = vld [vmem:[#allocation102_spill] sm:$0xff] }
 0x3ac   :  { %5609 = vst.msk [vmem:[%s11486_s6 + $0xa8] sm:$0xff] %vm2487_vm1, %v5481_v36  ;;  %7433 = vrcp.f32 %v5028_v41  ;;  %v7420_v31 = vpop.eup %7419  ;;  %5246 = vadd.xlane.f32.xlu1 %v5245_v1  ;;  %v4674_v33 = vmax.f32 %v4546_v38, 0.0  ;;  %v11964_v36 = vld [vmem:[#allocation21_spill] sm:$0xff]  ;;  %5243 = vadd.xlane.f32.xlu0 %v5242_v6  ;;  %v10817_v34 = vadd.f32 %v11896_v60, %v11965_v58  ;;  %v4677_v57 = vmax.f32 %v4549_v37, 0.0  ;;  %v11966_v42 = vld [vmem:[#allocation22_spill] sm:$0xff]  ;;  %v11971_v58 = vld [vmem:[#allocation27_spill] sm:$0xff] }
 0x3ad   :  { %7435 = vrcp.f32 %v4798_v12  ;;  %5608 = vst.msk [vmem:[%s11486_s6 + $0xa0] sm:$0xff] %vm2487_vm1, %v5480_v43  ;;  %v5483_v26 = vmul.f32 %v7420_v31, %v11964_v36  ;;  %v5037_v12 = vpop.xlane.xlu1 %5036  ;;  %v4551_v22 = vsub.f32 %v10699_v23, %v4423_v19  ;;  %v5251_v59 = vsel %vm2487_vm1, %v10706_v24, 0.0  ;;  %v11969_v6 = vld [vmem:[#allocation26_spill] sm:$0xff] }
 0x3ae   :  { %v7422_v45 = vpop.eup %7421  ;;  %7437 = vrcp.f32 %v4801_v0  ;;  %v4550_v0 = vsub.f32 %v10679_v21, %v4422_v7  ;;  %v4676_v37 = vmax.f32 %v4548_v3, 0.0  ;;  %v4425_v1 = vmul.f32 2.0, %v11967_v5  ;;  %v11968_v7 = vld [vmem:[#allocation24_spill] sm:$0xff]  ;;  %v11970_v36 = vld [vmem:[#allocation42_spill] sm:$0xff] }
 0x3af   :  { %v10813_v29 = vpop.eup %7423  ;;  %v5482_v43 = vmul.f32 %v7422_v45, %v11966_v42  ;;  %7439 = vrcp.f32 %v5037_v12  ;;  %v5034_v41 = vpop.xlane.xlu0 %5033  ;;  %5611 = vst.msk [vmem:[%s11486_s6 + $0xb8] sm:$0xff] %vm2487_vm1, %v5483_v26  ;;  %v5248_v21 = vsel %vm2487_vm1, %v10738_v50, 0.0  ;;  %v4802_v19 = vadd.f32 1.0, %v4674_v33 }
 0x3b0   :  { %7441 = vrcp.f32 %v5034_v41  ;;  %v7426_v38 = vpop.eup %7425  ;;  %5252 = vadd.xlane.f32.xlu1 %v5251_v59  ;;  %v4424_v31 = vmul.f32 2.0, %v11968_v7  ;;  %5249 = vadd.xlane.f32.xlu0 %v5248_v21  ;;  %v10841_v26 = vadd.f32 %v11896_v60, %v11970_v36  ;;  %v4805_v12 = vadd.f32 1.0, %v4677_v57  ;;  %v11972_v57 = vld [vmem:[#allocation29_spill] sm:$0xff] }
 0x3b1   :  { %7443 = vrcp.f32 %v4800_v40  ;;  %5610 = vst.msk [vmem:[%s11486_s6 + $0xb0] sm:$0xff] %vm2487_vm1, %v5482_v43  ;;  %v5485_v45 = vmul.f32 %v7426_v38, %v11969_v6  ;;  %v5043_v40 = vpop.xlane.xlu1 %5042  ;;  %v4679_v41 = vmax.f32 %v4551_v22, 0.0  ;;  %v5257_v33 = vsel %vm2487_vm1, %v10760_v55, 0.0  ;;  %v11973_v7 = vld [vmem:[#allocation33_spill] sm:$0xff] }
 0x3b2   :  { %v7428_v23 = vpop.eup %7427  ;;  %7445 = vrcp.f32 %v4803_v17  ;;  %v4678_v17 = vmax.f32 %v4550_v0, 0.0  ;;  %v4804_v38 = vadd.f32 1.0, %v4676_v37  ;;  %v4553_v5 = vsub.f32 %v10710_v15, %v4425_v1  ;;  %v11974_v37 = vld [vmem:[#allocation32_spill] sm:$0xff] }
 0x3b3   :  { %v10837_v3 = vpop.eup %7429  ;;  %v5484_v42 = vmul.f32 %v7428_v23, %v11971_v58  ;;  %7447 = vrcp.f32 %v5043_v40  ;;  %v5040_v43 = vpop.xlane.xlu0 %5039  ;;  %5613 = vst.msk [vmem:[%s11486_s6 + $0xc8] sm:$0xff] %vm2487_vm1, %v5485_v45  ;;  %v4427_v21 = vmul.f32 2.0, %v11972_v57  ;;  %v5254_v22 = vsel %vm2487_vm1, %v10768_v11, 0.0  ;;  %v11975_v40 = vld [vmem:[#allocation44_spill] sm:$0xff]  ;;  %v11976_v58 = vld [vmem:[#allocation43_spill] sm:$0xff] }
 0x3b4   :  { %7449 = vrcp.f32 %v5040_v43  ;;  %v7432_v59 = vpop.eup %7431  ;;  %5258 = vadd.xlane.f32.xlu1 %v5257_v33  ;;  %v4552_v23 = vsub.f32 %v10703_v39, %v4424_v31  ;;  %v4426_v6 = vmul.f32 2.0, %v11973_v7  ;;  %5255 = vadd.xlane.f32.xlu0 %v5254_v22  ;;  %v4429_v36 = vmul.f32 2.0, %v11975_v40  ;;  %v11977_v43 = vld [vmem:[#allocation36_spill] sm:$0xff]  ;;  %v11979_v40 = vld [vmem:[#allocation41_spill] sm:$0xff] }
 0x3b5   :  { %5612 = vst.msk [vmem:[%s11486_s6 + $0xc0] sm:$0xff] %vm2487_vm1, %v5484_v42  ;;  %7451 = vrcp.f32 %v4802_v19  ;;  %v5487_v45 = vmul.f32 %v7432_v59, %v11974_v37  ;;  %v5049_v15 = vpop.xlane.xlu1 %5048  ;;  %v4428_v42 = vmul.f32 2.0, %v11976_v58  ;;  %v4807_v19 = vadd.f32 1.0, %v4679_v41 }
 0x3b6   :  { %v7434_v0 = vpop.eup %7433  ;;  %7453 = vrcp.f32 %v5049_v15  ;;  %v4806_v39 = vadd.f32 1.0, %v4678_v17  ;;  %v5263_v31 = vsel %vm2487_vm1, %v10795_v9, 0.0  ;;  %v4681_v22 = vmax.f32 %v4553_v5, 0.0 }
 0x3b7   :  { %v10861_v1 = vpop.eup %7435  ;;  %v5486_v33 = vmul.f32 %v7434_v0, %v11977_v43  ;;  %v5046_v57 = vpop.xlane.xlu0 %5045  ;;  %5615 = vst.msk [vmem:[%s11486_s6 + $0xd8] sm:$0xff] %vm2487_vm1, %v5487_v45  ;;  %v4555_v0 = vsub.f32 %v10735_v56, %v4427_v21  ;;  %v5260_v41 = vsel %vm2487_vm1, %v10813_v29, 0.0  ;;  %v4680_v7 = vmax.f32 %v4552_v23, 0.0  ;;  %v11978_v45 = vld [vmem:[#allocation40_spill] sm:$0xff] }
 0x3b8   :  { %v10866_v11 = vpop.eup %7437  ;;  %7455 = vrcp.f32 %v5046_v57  ;;  %5264 = vadd.xlane.f32.xlu1 %v5263_v31  ;;  %v4554_v37 = vsub.f32 %v10731_v4, %v4426_v6  ;;  %5261 = vadd.xlane.f32.xlu0 %v5260_v41  ;;  %v4557_v56 = vsub.f32 %v10764_v44, %v4429_v36  ;;  %v4556_v21 = vsub.f32 %v10742_v47, %v4428_v42  ;;  %v11980_v57 = vld [vmem:[#allocation82_spill] sm:$0xff] }
 0x3b9   :  { %v7440_v59 = vpop.eup %7439  ;;  %7457 = vrcp.f32 %v4805_v12  ;;  %5614 = vst.msk [vmem:[%s11486_s6 + $0xd0] sm:$0xff] %vm2487_vm1, %v5486_v33  ;;  %v5055_v12 = vpop.xlane.xlu1 %5054  ;;  %v4430_v4 = vmul.f32 2.0, %v10519_v53  ;;  %v5269_v44 = vsel %vm2487_vm1, %v10837_v3, 0.0  ;;  %v4809_v23 = vadd.f32 1.0, %v4681_v22 }
 0x3ba   :  { %v7442_v17 = vpop.eup %7441  ;;  %7459 = vrcp.f32 %v4804_v38  ;;  %v5489_v15 = vmul.f32 %v7440_v59, %v11978_v45  ;;  %v4431_v38 = vmul.f32 2.0, %v10509_v32  ;;  %v4683_v6 = vmax.f32 %v4555_v0, 0.0  ;;  %v11981_v0 = vld [vmem:[#allocation48_spill] sm:$0xff] }
 0x3bb   :  { %v10883_v5 = vpop.eup %7443  ;;  %v5488_v58 = vmul.f32 %v7442_v17, %v11979_v40  ;;  %7461 = vrcp.f32 %v5055_v12  ;;  %v5052_v43 = vpop.xlane.xlu0 %5051  ;;  %v5266_v32 = vsel %vm2487_vm1, %v10861_v1, 0.0  ;;  %v4808_v36 = vadd.f32 1.0, %v4680_v7 }
 0x3bc   :  { %v10888_v33 = vpop.eup %7445  ;;  %5617 = vst.msk [vmem:[%s11486_s6 + $0xe8] sm:$0xff] %vm2487_vm1, %v5489_v15  ;;  %7463 = vrcp.f32 %v5052_v43  ;;  %5270 = vadd.xlane.f32.xlu1 %v5269_v44  ;;  %v4682_v42 = vmax.f32 %v4554_v37, 0.0  ;;  %5267 = vadd.xlane.f32.xlu0 %v5266_v32  ;;  %v4684_v22 = vmax.f32 %v4556_v21, 0.0  ;;  %v4559_v15 = vsub.f32 %v10791_v18, %v4431_v38 }
 0x3bd   :  { %v7448_v47 = vpop.eup %7447  ;;  %7465 = vrcp.f32 %v4807_v19  ;;  %5616 = vst.msk [vmem:[%s11486_s6 + $0xe0] sm:$0xff] %vm2487_vm1, %v5488_v58  ;;  %v5061_v59 = vpop.xlane.xlu1 %5060  ;;  %v4685_v19 = vmax.f32 %v4557_v56, 0.0  ;;  %v4558_v12 = vsub.f32 %v10772_v63, %v4430_v4  ;;  %v4811_v37 = vadd.f32 1.0, %v4683_v6  ;;  %v11982_v58 = vld [vmem:[#allocation52_spill] sm:$0xff] }
 0x3be   :  { %v7450_v53 = vpop.eup %7449  ;;  %7467 = vrcp.f32 %v4806_v39  ;;  %v5491_v31 = vmul.f32 %v7448_v47, %v11980_v57  ;;  %v5275_v39 = vsel %vm2487_vm1, %v10866_v11, 0.0  ;;  %v4433_v56 = vmul.f32 2.0, %v10532_v61  ;;  %v11983_v47 = vld [vmem:[#allocation83_spill] sm:$0xff] }
 0x3bf   :  { %v5490_v41 = vmul.f32 %v7450_v53, %v11981_v0  ;;  %7469 = vrcp.f32 %v5061_v59  ;;  %v5058_v17 = vpop.xlane.xlu0 %5057  ;;  %v10906_v45 = vpop.eup %7451  ;;  %v5272_v63 = vsel %vm2487_vm1, %v10883_v5, 0.0  ;;  %v4810_v21 = vadd.f32 1.0, %v4682_v42 }
 0x3c0   :  { %5619 = vst.msk [vmem:[%s11486_s6 + $0xf8] sm:$0xff] %vm2487_vm1, %v5491_v31  ;;  %7471 = vrcp.f32 %v5058_v17  ;;  %v7454_v7 = vpop.eup %7453  ;;  %5276 = vadd.xlane.f32.xlu1 %v5275_v39  ;;  %v4432_v40 = vmul.f32 2.0, %v10542_v46  ;;  %5273 = vadd.xlane.f32.xlu0 %v5272_v63  ;;  %v4813_v61 = vadd.f32 1.0, %v4685_v19  ;;  %v4812_v44 = vadd.f32 1.0, %v4684_v22  ;;  %v11986_v39 = vld [vmem:[#allocation47_spill] sm:$0xff] }
 0x3c1   :  { %7473 = vrcp.f32 %v4809_v23  ;;  %5618 = vst.msk [vmem:[%s11486_s6 + $0xf0] sm:$0xff] %vm2487_vm1, %v5490_v41  ;;  %v5493_v43 = vmul.f32 %v7454_v7, %v11982_v58  ;;  %v5067_v38 = vpop.xlane.xlu1 %5066  ;;  %v4687_v53 = vmax.f32 %v4559_v15, 0.0  ;;  %v4686_v57 = vmax.f32 %v4558_v12, 0.0  ;;  %v11984_v41 = vld [vmem:[#allocation84_spill] sm:$0xff]  ;;  %v11985_v15 = vld [vmem:[#allocation18_spill] sm:$0xff] }
 0x3c2   :  { %v7456_v18 = vpop.eup %7455  ;;  %7475 = vrcp.f32 %v4808_v36  ;;  %v5281_v46 = vsel %vm2487_vm1, %v10888_v33, 0.0  ;;  %v4561_v42 = vsub.f32 %v10841_v26, %v4433_v56  ;;  %v4435_v31 = vmul.f32 2.0, %v10555_v28 }
 0x3c3   :  { %v10925_v4 = vpop.eup %7457  ;;  %v5492_v23 = vmul.f32 %v7456_v18, %v11983_v47  ;;  %7477 = vrcp.f32 %v5067_v38  ;;  %v5064_v6 = vpop.xlane.xlu0 %5063  ;;  %5621 = vst.msk [vmem:[%s11486_s6 + $0x108] sm:$0xff] %vm2487_vm1, %v5493_v43  ;;  %v5278_v59 = vsel %vm2487_vm1, %v10906_v45, 0.0  ;;  %v4560_v22 = vsub.f32 %v10817_v34, %v4432_v40 }
 0x3c4   :  { %v10928_v32 = vpop.eup %7459  ;;  %7479 = vrcp.f32 %v5064_v6  ;;  %5282 = vadd.xlane.f32.xlu1 %v5281_v46  ;;  %v4434_v0 = vmul.f32 2.0, %v10565_v48  ;;  %5279 = vadd.xlane.f32.xlu0 %v5278_v59  ;;  %v4306_v12 = vadd.f32 %v11896_v60, %v11985_v15  ;;  %v4307_v7 = vadd.f32 %v11896_v60, %v11986_v39  ;;  %v11988_v6 = vld [vmem:[#allocation88_spill] sm:$0xff]  ;;  %v11989_v46 = vld [vmem:[#allocation55_spill] sm:$0xff]  ;;  %v11990_v15 = vld [vmem:[#allocation58_spill] sm:$0xff] }
 0x3c5   :  { %v7462_v36 = vpop.eup %7461  ;;  %7481 = vrcp.f32 %v4811_v37  ;;  %5620 = vst.msk [vmem:[%s11486_s6 + $0x100] sm:$0xff] %vm2487_vm1, %v5492_v23  ;;  %v5073_v26 = vpop.xlane.xlu1 %5072  ;;  %v11987_v37 = vld [vmem:[#allocation85_spill] sm:$0xff]  ;;  %v4815_v34 = vadd.f32 1.0, %v4687_v53  ;;  %v4814_v48 = vadd.f32 1.0, %v4686_v57  ;;  %v4689_v60 = vmax.f32 %v4561_v42, 0.0 }
 0x3c6   :  { %v7464_v19 = vpop.eup %7463  ;;  %7483 = vrcp.f32 %v4810_v21  ;;  %v5495_v17 = vmul.f32 %v7462_v36, %v11984_v41  ;;  %v5287_v21 = vsel %vm2487_vm1, %v10925_v4, 0.0  ;;  %v4563_v58 = vsub.f32 %v4307_v7, %v4435_v31 }
 0x3c7   :  { %v10947_v28 = vpop.eup %7465  ;;  %v5494_v56 = vmul.f32 %v7464_v19, %v11987_v37  ;;  %7485 = vrcp.f32 %v5073_v26  ;;  %v5070_v63 = vpop.xlane.xlu0 %5069  ;;  %v5284_v43 = vsel %vm2487_vm1, %v10928_v32, 0.0  ;;  %v4688_v47 = vmax.f32 %v4560_v22, 0.0  ;;  %v11991_v37 = vld [vmem:[#allocation59_spill] sm:$0xff] }
 0x3c8   :  { %v10954_v18 = vpop.eup %7467  ;;  %5623 = vst.msk [vmem:[%s11486_s6 + $0x118] sm:$0xff] %vm2487_vm1, %v5495_v17  ;;  %7487 = vrcp.f32 %v5070_v63  ;;  %5288 = vadd.xlane.f32.xlu1 %v5287_v21  ;;  %v4562_v23 = vsub.f32 %v4306_v12, %v4434_v0  ;;  %5285 = vadd.xlane.f32.xlu0 %v5284_v43  ;;  %v4817_v19 = vadd.f32 1.0, %v4689_v60  ;;  %v4691_v22 = vmax.f32 %v4563_v58, 0.0 }
 0x3c9   :  { %v7470_v40 = vpop.eup %7469  ;;  %7489 = vrcp.f32 %v4813_v61  ;;  %5622 = vst.msk [vmem:[%s11486_s6 + $0x110] sm:$0xff] %vm2487_vm1, %v5494_v56  ;;  %v5079_v57 = vpop.xlane.xlu1 %5078  ;;  %v5290_v0 = vsel %vm2487_vm1, %v10954_v18, 0.0  ;;  %v4816_v17 = vadd.f32 1.0, %v4688_v47 }
 0x3ca   :  { %v7472_v38 = vpop.eup %7471  ;;  %7491 = vrcp.f32 %v4812_v44  ;;  %v5497_v53 = vmul.f32 %v7470_v40, %v11988_v6  ;;  %v5293_v44 = vsel %vm2487_vm1, %v10947_v28, 0.0  ;;  %v4690_v26 = vmax.f32 %v4562_v23, 0.0 }
 0x3cb   :  { %v10969_v61 = vpop.eup %7473  ;;  %v5496_v36 = vmul.f32 %v7472_v38, %v11989_v46  ;;  %7493 = vrcp.f32 %v5079_v57  ;;  %v5076_v42 = vpop.xlane.xlu0 %5075  ;;  %v4819_v40 = vadd.f32 1.0, %v4691_v22  ;;  %v11992_v38 = vld [vmem:[#allocation34_spill] sm:$0xff] }
 0x3cc   :  { %v10972_v31 = vpop.eup %7475  ;;  %5625 = vst.msk [vmem:[%s11486_s6 + $0x128] sm:$0xff] %vm2487_vm1, %v5497_v53  ;;  %7495 = vrcp.f32 %v5076_v42  ;;  %5294 = vadd.xlane.f32.xlu1 %v5293_v44  ;;  %5291 = vadd.xlane.f32.xlu0 %v5290_v0  ;;  %v4818_v43 = vadd.f32 1.0, %v4690_v26  ;;  %v11993_v53 = vld [vmem:[#allocation35_spill] sm:$0xff]  ;;  %v11994_v22 = vld [vmem:[#allocation6_spill] sm:$0xff] }
 0x3cd   :  { %v7478_v59 = vpop.eup %7477  ;;  %7497 = vrcp.f32 %v4815_v34  ;;  %5624 = vst.msk [vmem:[%s11486_s6 + $0x120] sm:$0xff] %vm2487_vm1, %v5496_v36  ;;  %v5085_v39 = vpop.xlane.xlu1 %5084  ;;  %v5296_v60 = vsel %vm2487_vm1, %v10972_v31, 0.0  ;;  %v11995_v26 = vld [vmem:[#allocation78_spill] sm:$0xff] }
 0x3ce   :  { %v7480_v41 = vpop.eup %7479  ;;  %7499 = vrcp.f32 %v4814_v48  ;;  %v5499_v12 = vmul.f32 %v7478_v59, %v11990_v15  ;;  %v5299_v48 = vsel %vm2487_vm1, %v10969_v61, 0.0 }
 0x3cf   :  { %v10987_v7 = vpop.eup %7481  ;;  %v5498_v56 = vmul.f32 %v7480_v41, %v11991_v37  ;;  %7501 = vrcp.f32 %v5085_v39  ;;  %v5082_v63 = vpop.xlane.xlu0 %5081 }
 0x3d0   :  { %v10990_v34 = vpop.eup %7483  ;;  %5627 = vst.msk [vmem:[%s11486_s6 + $0x138] sm:$0xff] %vm2487_vm1, %v5499_v12  ;;  %7503 = vrcp.f32 %v5082_v63  ;;  %5300 = vadd.xlane.f32.xlu1 %v5299_v48  ;;  %5297 = vadd.xlane.f32.xlu0 %v5296_v60  ;;  %v5305_v42 = vsel %vm2487_vm1, %v10987_v7, 0.0 }
 0x3d1   :  { %v7486_v21 = vpop.eup %7485  ;;  %7505 = vrcp.f32 %v4817_v19  ;;  %5626 = vst.msk [vmem:[%s11486_s6 + $0x130] sm:$0xff] %vm2487_vm1, %v5498_v56  ;;  %v5091_v23 = vpop.xlane.xlu1 %5090  ;;  %v5302_v59 = vsel %vm2487_vm1, %v10990_v34, 0.0 }
 0x3d2   :  { %v7488_v58 = vpop.eup %7487  ;;  %7507 = vrcp.f32 %v4816_v17  ;;  %v5501_v47 = vmul.f32 %v7486_v21, %v11992_v38  ;;  %v11996_v21 = vld [vmem:[#allocation80_spill] sm:$0xff] }
 0x3d3   :  { %v11005_v6 = vpop.eup %7489  ;;  %v5500_v57 = vmul.f32 %v7488_v58, %v11993_v53  ;;  %7509 = vrcp.f32 %v5091_v23  ;;  %v5088_v46 = vpop.xlane.xlu0 %5087 }
 0x3d4   :  { %v11008_v36 = vpop.eup %7491  ;;  %5629 = vst.msk [vmem:[%s11486_s6 + $0x148] sm:$0xff] %vm2487_vm1, %v5501_v47  ;;  %7511 = vrcp.f32 %v5088_v46  ;;  %5306 = vadd.xlane.f32.xlu1 %v5305_v42  ;;  %5303 = vadd.xlane.f32.xlu0 %v5302_v59  ;;  %v5311_v37 = vsel %vm2487_vm1, %v11005_v6, 0.0 }
 0x3d5   :  { %v7494_v44 = vpop.eup %7493  ;;  %7513 = vrcp.f32 %v4819_v40  ;;  %5628 = vst.msk [vmem:[%s11486_s6 + $0x140] sm:$0xff] %vm2487_vm1, %v5500_v57  ;;  %v5097_v41 = vpop.xlane.xlu1 %5096  ;;  %v5308_v63 = vsel %vm2487_vm1, %v11008_v36, 0.0 }
 0x3d6   :  { %v7496_v19 = vpop.eup %7495  ;;  %7515 = vrcp.f32 %v4818_v43  ;;  %v5503_v0 = vmul.f32 %v7494_v44, %v11994_v22  ;;  %v11997_v43 = vld [vmem:[#allocation13_spill] sm:$0xff]  ;;  %v11998_v44 = vld [vmem:[#allocation46_spill] sm:$0xff] }
 0x3d7   :  { %v11023_v17 = vpop.eup %7497  ;;  %v5502_v15 = vmul.f32 %v7496_v19, %v11995_v26  ;;  %7517 = vrcp.f32 %v5097_v41  ;;  %v5094_v12 = vpop.xlane.xlu0 %5093 }
 0x3d8   :  { %v11026_v39 = vpop.eup %7499  ;;  %5631 = vst.msk [vmem:[%s11486_s6 + $0x158] sm:$0xff] %vm2487_vm1, %v5503_v0  ;;  %7519 = vrcp.f32 %v5094_v12  ;;  %5312 = vadd.xlane.f32.xlu1 %v5311_v37  ;;  %5309 = vadd.xlane.f32.xlu0 %v5308_v63  ;;  %v5317_v53 = vsel %vm2487_vm1, %v11023_v17, 0.0  ;;  %v11999_v0 = vld [vmem:[#allocation77_spill] sm:$0xff] }
 0x3d9   :  { %v7502_v56 = vpop.eup %7501  ;;  %5630 = vst.msk [vmem:[%s11486_s6 + $0x150] sm:$0xff] %vm2487_vm1, %v5502_v15  ;;  %v5103_v60 = vpop.xlane.xlu1 %5102  ;;  %v5314_v46 = vsel %vm2487_vm1, %v11026_v39, 0.0 }
 0x3da   :  { %v7504_v48 = vpop.eup %7503  ;;  %v5505_v40 = vmul.f32 %v7502_v56, %v11996_v21  ;;  %7521 = vrcp.f32 %v5103_v60  ;;  %v12001_v60 = vld [vmem:[#allocation91_spill] sm:$0xff] }
 0x3db   :  { %v11041_v58 = vpop.eup %7505  ;;  %v5504_v38 = vmul.f32 %v7504_v48, %v11997_v43  ;;  %v5100_v47 = vpop.xlane.xlu0 %5099  ;;  %v12000_v48 = vld [vmem:[#allocation90_spill] sm:$0xff] }
 0x3dc   :  { %v11044_v23 = vpop.eup %7507  ;;  %5633 = vst.msk [vmem:[%s11486_s6 + $0x168] sm:$0xff] %vm2487_vm1, %v5505_v40  ;;  %7523 = vrcp.f32 %v5100_v47  ;;  %5318 = vadd.xlane.f32.xlu1 %v5317_v53  ;;  %5315 = vadd.xlane.f32.xlu0 %v5314_v46  ;;  %v5323_v12 = vsel %vm2487_vm1, %v11041_v58, 0.0 }
 0x3dd   :  { %v7510_v57 = vpop.eup %7509  ;;  %5632 = vst.msk [vmem:[%s11486_s6 + $0x160] sm:$0xff] %vm2487_vm1, %v5504_v38  ;;  %v5109_v19 = vpop.xlane.xlu1 %5108  ;;  %v5320_v56 = vsel %vm2487_vm1, %v11044_v23, 0.0 }
 0x3de   :  { %v7512_v42 = vpop.eup %7511  ;;  %v5507_v59 = vmul.f32 %v7510_v57, %v11998_v44  ;;  %7525 = vrcp.f32 %v5109_v19  ;;  %v12003_v19 = vld [vmem:[#allocation53_spill] sm:$0xff] }
 0x3df   :  { %v11059_v22 = vpop.eup %7513  ;;  %v5506_v41 = vmul.f32 %v7512_v42, %v11999_v0  ;;  %v5106_v26 = vpop.xlane.xlu0 %5105  ;;  %v12002_v42 = vld [vmem:[#allocation50_spill] sm:$0xff] }
 0x3e0   :  { %v11062_v15 = vpop.eup %7515  ;;  %5635 = vst.msk [vmem:[%s11486_s6 + $0x178] sm:$0xff] %vm2487_vm1, %v5507_v59  ;;  %7527 = vrcp.f32 %v5106_v26  ;;  %5324 = vadd.xlane.f32.xlu1 %v5323_v12  ;;  %5321 = vadd.xlane.f32.xlu0 %v5320_v56  ;;  %v5329_v47 = vsel %vm2487_vm1, %v11059_v22, 0.0 }
 0x3e1   :  { %v7518_v37 = vpop.eup %7517  ;;  %5634 = vst.msk [vmem:[%s11486_s6 + $0x170] sm:$0xff] %vm2487_vm1, %v5506_v41  ;;  %v5115_v40 = vpop.xlane.xlu1 %5114  ;;  %v5326_v57 = vsel %vm2487_vm1, %v11062_v15, 0.0 }
 0x3e2   :  { %v7520_v63 = vpop.eup %7519  ;;  %v5509_v21 = vmul.f32 %v7518_v37, %v12000_v48  ;;  %7529 = vrcp.f32 %v5115_v40  ;;  %v12004_v37 = vld [vmem:[#allocation25_spill] sm:$0xff]  ;;  %v12005_v48 = vld [vmem:[#allocation28_spill] sm:$0xff] }
 0x3e3   :  { %v5508_v43 = vmul.f32 %v7520_v63, %v12001_v60  ;;  %v5112_v38 = vpop.xlane.xlu0 %5111 }
 0x3e4   :  { %5637 = vst.msk [vmem:[%s11486_s6 + $0x188] sm:$0xff] %vm2487_vm1, %v5509_v21  ;;  %7531 = vrcp.f32 %v5112_v38  ;;  %v7522_v53 = vpop.eup %7521  ;;  %5330 = vadd.xlane.f32.xlu1 %v5329_v47  ;;  %5327 = vadd.xlane.f32.xlu0 %v5326_v57  ;;  %v12006_v38 = vld [vmem:[#allocation30_spill] sm:$0xff]  ;;  %v12007_v57 = vld [vmem:[#allocation37_spill] sm:$0xff] }
 0x3e5   :  { %5636 = vst.msk [vmem:[%s11486_s6 + $0x180] sm:$0xff] %vm2487_vm1, %v5508_v43  ;;  %v5511_v44 = vmul.f32 %v7522_v53, %v12002_v42  ;;  %v5121_v59 = vpop.xlane.xlu1 %5120 }
 0x3e6   :  { %v7524_v46 = vpop.eup %7523  ;;  %7533 = vrcp.f32 %v5121_v59 }
 0x3e7   :  { %v5510_v0 = vmul.f32 %v7524_v46, %v12003_v19  ;;  %v5118_v41 = vpop.xlane.xlu0 %5117  ;;  %5639 = vst.msk [vmem:[%s11486_s6 + $0x198] sm:$0xff] %vm2487_vm1, %v5511_v44  ;;  %v12008_v19 = vld [vmem:[#allocation39_spill] sm:$0xff] }
 0x3e8   :  { %7535 = vrcp.f32 %v5118_v41  ;;  %v7526_v26 = vpop.eup %7525 }
 0x3e9   :  { %5638 = vst.msk [vmem:[%s11486_s6 + $0x190] sm:$0xff] %vm2487_vm1, %v5510_v0  ;;  %v5513_v56 = vmul.f32 %v7526_v26, %v12004_v37  ;;  %v5127_v63 = vpop.xlane.xlu1 %5126  ;;  %v12009_v26 = vld [vmem:[#allocation49_spill] sm:$0xff] }
 0x3ea   :  { %v7528_v12 = vpop.eup %7527  ;;  %7537 = vrcp.f32 %v5127_v63 }
 0x3eb   :  { %v5512_v21 = vmul.f32 %v7528_v12, %v12005_v48  ;;  %v5124_v40 = vpop.xlane.xlu0 %5123  ;;  %5641 = vst.msk [vmem:[%s11486_s6 + $0x1a8] sm:$0xff] %vm2487_vm1, %v5513_v56  ;;  %v12010_v48 = vld [vmem:[#allocation45_spill] sm:$0xff] }
 0x3ec   :  { %7539 = vrcp.f32 %v5124_v40  ;;  %v7530_v60 = vpop.eup %7529 }
 0x3ed   :  { %5640 = vst.msk [vmem:[%s11486_s6 + $0x1a0] sm:$0xff] %vm2487_vm1, %v5512_v21  ;;  %v5515_v47 = vmul.f32 %v7530_v60, %v12006_v38  ;;  %v5133_v53 = vpop.xlane.xlu1 %5132  ;;  %v12011_v60 = vld [vmem:[#allocation92_spill] sm:$0xff] }
 0x3ee   :  { %v7532_v43 = vpop.eup %7531  ;;  %7541 = vrcp.f32 %v5133_v53 }
 0x3ef   :  { %v5514_v46 = vmul.f32 %v7532_v43, %v12007_v57  ;;  %v5130_v42 = vpop.xlane.xlu0 %5129  ;;  %5643 = vst.msk [vmem:[%s11486_s6 + $0x1b8] sm:$0xff] %vm2487_vm1, %v5515_v47  ;;  %v12012_v57 = vld [vmem:[#allocation93_spill] sm:$0xff] }
 0x3f0   :  { %7543 = vrcp.f32 %v5130_v42  ;;  %v7534_v44 = vpop.eup %7533 }
 0x3f1   :  { %5642 = vst.msk [vmem:[%s11486_s6 + $0x1b0] sm:$0xff] %vm2487_vm1, %v5514_v46  ;;  %v5517_v0 = vmul.f32 %v7534_v44, %v12008_v19  ;;  %v5139_v41 = vpop.xlane.xlu1 %5138  ;;  %v12013_v44 = vld [vmem:[#allocation94_spill] sm:$0xff] }
 0x3f2   :  { %v7536_v59 = vpop.eup %7535  ;;  %7545 = vrcp.f32 %v5139_v41 }
 0x3f3   :  { %v5516_v12 = vmul.f32 %v7536_v59, %v12009_v26  ;;  %v5136_v37 = vpop.xlane.xlu0 %5135  ;;  %5645 = vst.msk [vmem:[%s11486_s6 + $0x1c8] sm:$0xff] %vm2487_vm1, %v5517_v0  ;;  %v12014_v26 = vld [vmem:[#allocation95_spill] sm:$0xff] }
 0x3f4   :  { %7547 = vrcp.f32 %v5136_v37  ;;  %v7538_v56 = vpop.eup %7537 }
 0x3f5   :  { %5644 = vst.msk [vmem:[%s11486_s6 + $0x1c0] sm:$0xff] %vm2487_vm1, %v5516_v12  ;;  %v5519_v21 = vmul.f32 %v7538_v56, %v12010_v48  ;;  %v5145_v40 = vpop.xlane.xlu1 %5144  ;;  %v12015_v56 = vld [vmem:[#allocation96_spill] sm:$0xff] }
 0x3f6   :  { %v7540_v63 = vpop.eup %7539  ;;  %7549 = vrcp.f32 %v5145_v40 }
 0x3f7   :  { %v5518_v43 = vmul.f32 %v7540_v63, %v12011_v60  ;;  %v5142_v38 = vpop.xlane.xlu0 %5141  ;;  %5647 = vst.msk [vmem:[%s11486_s6 + $0x1d8] sm:$0xff] %vm2487_vm1, %v5519_v21  ;;  %v12016_v60 = vld [vmem:[#allocation97_spill] sm:$0xff] }
 0x3f8   :  { %7551 = vrcp.f32 %v5142_v38  ;;  %v7542_v47 = vpop.eup %7541 }
 0x3f9   :  { %5646 = vst.msk [vmem:[%s11486_s6 + $0x1d0] sm:$0xff] %vm2487_vm1, %v5518_v43  ;;  %v5521_v46 = vmul.f32 %v7542_v47, %v12012_v57  ;;  %v5151_v42 = vpop.xlane.xlu1 %5150  ;;  %v12017_v47 = vld [vmem:[#allocation98_spill] sm:$0xff] }
 0x3fa   :  { %v7544_v53 = vpop.eup %7543  ;;  %7553 = vrcp.f32 %v5151_v42 }
 0x3fb   :  { %v5520_v59 = vmul.f32 %v7544_v53, %v12013_v44  ;;  %v5148_v19 = vpop.xlane.xlu0 %5147  ;;  %5649 = vst.msk [vmem:[%s11486_s6 + $0x1e8] sm:$0xff] %vm2487_vm1, %v5521_v46  ;;  %v12018_v44 = vld [vmem:[#allocation62_spill] sm:$0xff] }
 0x3fc   :  { %7555 = vrcp.f32 %v5148_v19  ;;  %v7546_v0 = vpop.eup %7545 }
 0x3fd   :  { %5648 = vst.msk [vmem:[%s11486_s6 + $0x1e0] sm:$0xff] %vm2487_vm1, %v5520_v59  ;;  %v5523_v12 = vmul.f32 %v7546_v0, %v12014_v26  ;;  %v5157_v37 = vpop.xlane.xlu1 %5156  ;;  %v12019_v0 = vld [vmem:[#allocation73_spill] sm:$0xff] }
 0x3fe   :  { %v7548_v41 = vpop.eup %7547  ;;  %7557 = vrcp.f32 %v5157_v37 }
 0x3ff   :  { %v5522_v63 = vmul.f32 %v7548_v41, %v12015_v56  ;;  %v5154_v48 = vpop.xlane.xlu0 %5153  ;;  %5651 = vst.msk [vmem:[%s11486_s6 + $0x1f8] sm:$0xff] %vm2487_vm1, %v5523_v12  ;;  %v12020_v56 = vld [vmem:[#allocation99_spill] sm:$0xff] }
 0x400   :  { %7559 = vrcp.f32 %v5154_v48  ;;  %v7550_v21 = vpop.eup %7549 }
 0x401   :  { %5650 = vst.msk [vmem:[%s11486_s6 + $0x1f0] sm:$0xff] %vm2487_vm1, %v5522_v63  ;;  %v5525_v43 = vmul.f32 %v7550_v21, %v12016_v60  ;;  %v5163_v38 = vpop.xlane.xlu1 %5162  ;;  %v12021_v21 = vld [vmem:[#allocation66_spill] sm:$0xff] }
 0x402   :  { %v7552_v40 = vpop.eup %7551  ;;  %7561 = vrcp.f32 %v5163_v38 }
 0x403   :  { %v5524_v53 = vmul.f32 %v7552_v40, %v12017_v47  ;;  %v5160_v57 = vpop.xlane.xlu0 %5159  ;;  %5653 = vst.msk [vmem:[%s11486_s6 + $0x208] sm:$0xff] %vm2487_vm1, %v5525_v43  ;;  %v12022_v47 = vld [vmem:[#allocation69_spill] sm:$0xff] }
 0x404   :  { %7563 = vrcp.f32 %v5160_v57  ;;  %v7554_v46 = vpop.eup %7553 }
 0x405   :  { %5652 = vst.msk [vmem:[%s11486_s6 + $0x200] sm:$0xff] %vm2487_vm1, %v5524_v53  ;;  %v5527_v59 = vmul.f32 %v7554_v46, %v12018_v44  ;;  %v5169_v19 = vpop.xlane.xlu1 %5168  ;;  %v12023_v46 = vld [vmem:[#allocation4_spill] sm:$0xff] }
 0x406   :  { %v7556_v42 = vpop.eup %7555  ;;  %7565 = vrcp.f32 %v5169_v19 }
 0x407   :  { %v5526_v41 = vmul.f32 %v7556_v42, %v12019_v0  ;;  %v5166_v26 = vpop.xlane.xlu0 %5165  ;;  %5655 = vst.msk [vmem:[%s11486_s6 + $0x218] sm:$0xff] %vm2487_vm1, %v5527_v59  ;;  %v12024_v0 = vld [vmem:[#allocation100_spill] sm:$0xff] }
 0x408   :  { %7567 = vrcp.f32 %v5166_v26  ;;  %v7558_v12 = vpop.eup %7557 }
 0x409   :  { %5654 = vst.msk [vmem:[%s11486_s6 + $0x210] sm:$0xff] %vm2487_vm1, %v5526_v41  ;;  %v5529_v63 = vmul.f32 %v7558_v12, %v12020_v56  ;;  %v5175_v48 = vpop.xlane.xlu1 %5174  ;;  %v12025_v12 = vld [vmem:[#allocation101_spill] sm:$0xff] }
 0x40a   :  { %v7560_v37 = vpop.eup %7559  ;;  %7569 = vrcp.f32 %v5175_v48 }
 0x40b   :  { %v5528_v40 = vmul.f32 %v7560_v37, %v12021_v21  ;;  %v5172_v60 = vpop.xlane.xlu0 %5171  ;;  %5657 = vst.msk [vmem:[%s11486_s6 + $0x228] sm:$0xff] %vm2487_vm1, %v5529_v63  ;;  %v12026_v21 = vld [vmem:[#allocation5_spill] sm:$0xff] }
 0x40c   :  { %7571 = vrcp.f32 %v5172_v60  ;;  %v7562_v43 = vpop.eup %7561 }
 0x40d   :  { %5656 = vst.msk [vmem:[%s11486_s6 + $0x220] sm:$0xff] %vm2487_vm1, %v5528_v40  ;;  %v5531_v53 = vmul.f32 %v7562_v43, %v12022_v47  ;;  %v5181_v57 = vpop.xlane.xlu1 %5180  ;;  %v12027_v43 = vld [vmem:[#allocation9_spill] sm:$0xff] }
 0x40e   :  { %v7564_v38 = vpop.eup %7563  ;;  %7573 = vrcp.f32 %v5181_v57 }
 0x40f   :  { %v5530_v42 = vmul.f32 %v7564_v38, %v12023_v46  ;;  %v5178_v44 = vpop.xlane.xlu0 %5177  ;;  %5659 = vst.msk [vmem:[%s11486_s6 + $0x238] sm:$0xff] %vm2487_vm1, %v5531_v53  ;;  %v12028_v46 = vld [vmem:[#allocation12_spill] sm:$0xff] }
 0x410   :  { %7575 = vrcp.f32 %v5178_v44  ;;  %v7566_v59 = vpop.eup %7565 }
 0x411   :  { %5658 = vst.msk [vmem:[%s11486_s6 + $0x230] sm:$0xff] %vm2487_vm1, %v5530_v42  ;;  %v5533_v41 = vmul.f32 %v7566_v59, %v12024_v0  ;;  %v5187_v26 = vpop.xlane.xlu1 %5186 }
 0x412   :  { %v7568_v19 = vpop.eup %7567  ;;  %7577 = vrcp.f32 %v5187_v26 }
 0x413   :  { %v5532_v37 = vmul.f32 %v7568_v19, %v12025_v12  ;;  %v5184_v56 = vpop.xlane.xlu0 %5183  ;;  %5661 = vst.msk [vmem:[%s11486_s6 + $0x248] sm:$0xff] %vm2487_vm1, %v5533_v41 }
 0x414   :  { %7579 = vrcp.f32 %v5184_v56  ;;  %v7570_v63 = vpop.eup %7569 }
 0x415   :  { %5660 = vst.msk [vmem:[%s11486_s6 + $0x240] sm:$0xff] %vm2487_vm1, %v5532_v37  ;;  %v5535_v40 = vmul.f32 %v7570_v63, %v12026_v21  ;;  %v5193_v60 = vpop.xlane.xlu1 %5192  ;;  %v12029_v21 = vld [vmem:[#allocation105_spill] sm:$0xff] }
 0x416   :  { %v7572_v48 = vpop.eup %7571  ;;  %7581 = vrcp.f32 %v5193_v60 }
 0x417   :  { %v5534_v38 = vmul.f32 %v7572_v48, %v12027_v43  ;;  %v5190_v47 = vpop.xlane.xlu0 %5189  ;;  %5663 = vst.msk [vmem:[%s11486_s6 + $0x258] sm:$0xff] %vm2487_vm1, %v5535_v40 }
 0x418   :  { %7583 = vrcp.f32 %v5190_v47  ;;  %v7574_v53 = vpop.eup %7573 }
 0x419   :  { %5662 = vst.msk [vmem:[%s11486_s6 + $0x250] sm:$0xff] %vm2487_vm1, %v5534_v38  ;;  %v5537_v42 = vmul.f32 %v7574_v53, %v12028_v46  ;;  %v5199_v44 = vpop.xlane.xlu1 %5198  ;;  %v12030_v38 = vld [vmem:[#allocation106_spill] sm:$0xff]  ;;  %v12031_v53 = vld [vmem:[#allocation107_spill] sm:$0xff] }
 0x41a   :  { %v7576_v57 = vpop.eup %7575  ;;  %7585 = vrcp.f32 %v5199_v44 }
 0x41b   :  { %v5536_v59 = vmul.f32 %v7576_v57, %v10414_v25  ;;  %v5196_v19 = vpop.xlane.xlu0 %5195  ;;  %5665 = vst.msk [vmem:[%s11486_s6 + $0x268] sm:$0xff] %vm2487_vm1, %v5537_v42 }
 0x41c   :  { %7587 = vrcp.f32 %v5196_v19  ;;  %v7578_v0 = vpop.eup %7577 }
 0x41d   :  { %5664 = vst.msk [vmem:[%s11486_s6 + $0x260] sm:$0xff] %vm2487_vm1, %v5536_v59  ;;  %v5539_v26 = vmul.f32 %v7578_v0, %v10422_v14  ;;  %v5205_v12 = vpop.xlane.xlu1 %5204  ;;  %v12032_v59 = vld [vmem:[#allocation108_spill] sm:$0xff] }
 0x41e   :  { %v7580_v41 = vpop.eup %7579  ;;  %7589 = vrcp.f32 %v5205_v12 }
 0x41f   :  { %v5538_v25 = vmul.f32 %v7580_v41, %v10435_v49  ;;  %v5202_v37 = vpop.xlane.xlu0 %5201  ;;  %5667 = vst.msk [vmem:[%s11486_s6 + $0x278] sm:$0xff] %vm2487_vm1, %v5539_v26  ;;  %v12033_v41 = vld [vmem:[#allocation109_spill] sm:$0xff] }
 0x420   :  { %7591 = vrcp.f32 %v5202_v37  ;;  %v7582_v56 = vpop.eup %7581 }
 0x421   :  { %5666 = vst.msk [vmem:[%s11486_s6 + $0x270] sm:$0xff] %vm2487_vm1, %v5538_v25  ;;  %v5541_v14 = vmul.f32 %v7582_v56, %v10441_v51  ;;  %v5211_v48 = vpop.xlane.xlu1 %5210  ;;  %v12034_v56 = vld [vmem:[#allocation110_spill] sm:$0xff] }
 0x422   :  { %v7584_v63 = vpop.eup %7583  ;;  %7593 = vrcp.f32 %v5211_v48  ;;  %v12035_v48 = vld [vmem:[#allocation111_spill] sm:$0xff] }
 0x423   :  { %v5540_v49 = vmul.f32 %v7584_v63, %v12029_v21  ;;  %v5208_v40 = vpop.xlane.xlu0 %5207  ;;  %5669 = vst.msk [vmem:[%s11486_s6 + $0x288] sm:$0xff] %vm2487_vm1, %v5541_v14 }
 0x424   :  { %7595 = vrcp.f32 %v5208_v40  ;;  %v7586_v60 = vpop.eup %7585 }
 0x425   :  { %5668 = vst.msk [vmem:[%s11486_s6 + $0x280] sm:$0xff] %vm2487_vm1, %v5540_v49  ;;  %v5543_v51 = vmul.f32 %v7586_v60, %v12030_v38  ;;  %v5217_v47 = vpop.xlane.xlu1 %5216 }
 0x426   :  { %v7588_v43 = vpop.eup %7587  ;;  %7597 = vrcp.f32 %v5217_v47 }
 0x427   :  { %v5542_v57 = vmul.f32 %v7588_v43, %v12031_v53  ;;  %v5214_v46 = vpop.xlane.xlu0 %5213  ;;  %5671 = vst.msk [vmem:[%s11486_s6 + $0x298] sm:$0xff] %vm2487_vm1, %v5543_v51 }
 0x428   :  { %7599 = vrcp.f32 %v5214_v46  ;;  %v7590_v42 = vpop.eup %7589 }
 0x429   :  { %5670 = vst.msk [vmem:[%s11486_s6 + $0x290] sm:$0xff] %vm2487_vm1, %v5542_v57  ;;  %v5545_v19 = vmul.f32 %v7590_v42, %v12032_v59  ;;  %v5223_v0 = vpop.xlane.xlu1 %5222 }
 0x42a   :  { %v7592_v44 = vpop.eup %7591  ;;  %7601 = vrcp.f32 %v5223_v0 }
 0x42b   :  { %v5544_v26 = vmul.f32 %v7592_v44, %v12033_v41  ;;  %v5220_v12 = vpop.xlane.xlu0 %5219  ;;  %5673 = vst.msk [vmem:[%s11486_s6 + $0x2a8] sm:$0xff] %vm2487_vm1, %v5545_v19 }
 0x42c   :  { %7603 = vrcp.f32 %v5220_v12  ;;  %v7594_v25 = vpop.eup %7593 }
 0x42d   :  { %5672 = vst.msk [vmem:[%s11486_s6 + $0x2a0] sm:$0xff] %vm2487_vm1, %v5544_v26  ;;  %v5547_v63 = vmul.f32 %v7594_v25, %v12034_v56  ;;  %v5229_v14 = vpop.xlane.xlu1 %5228 }
 0x42e   :  { %v7596_v37 = vpop.eup %7595  ;;  %7605 = vrcp.f32 %v5229_v14 }
 0x42f   :  { %v5546_v21 = vmul.f32 %v7596_v37, %v12035_v48  ;;  %v5226_v49 = vpop.xlane.xlu0 %5225  ;;  %5675 = vst.msk [vmem:[%s11486_s6 + $0x2b8] sm:$0xff] %vm2487_vm1, %v5547_v63 }
 0x430   :  { %7607 = vrcp.f32 %v5226_v49  ;;  %v7598_v40 = vpop.eup %7597 }
 0x431   :  { %5674 = vst.msk [vmem:[%s11486_s6 + $0x2b0] sm:$0xff] %vm2487_vm1, %v5546_v21  ;;  %v5549_v43 = vmul.f32 %v7598_v40, %v10487_v27  ;;  %v5235_v38 = vpop.xlane.xlu1 %5234 }
 0x432   :  { %v7600_v60 = vpop.eup %7599  ;;  %7609 = vrcp.f32 %v5235_v38 }
 0x433   :  { %v5548_v51 = vmul.f32 %v7600_v60, %v10490_v8  ;;  %v5232_v47 = vpop.xlane.xlu0 %5231  ;;  %5677 = vst.msk [vmem:[%s11486_s6 + $0x2c8] sm:$0xff] %vm2487_vm1, %v5549_v43 }
 0x434   :  { %7611 = vrcp.f32 %v5232_v47  ;;  %v7602_v53 = vpop.eup %7601 }
 0x435   :  { %5676 = vst.msk [vmem:[%s11486_s6 + $0x2c0] sm:$0xff] %vm2487_vm1, %v5548_v51  ;;  %v5551_v27 = vmul.f32 %v7602_v53, %v10496_v35  ;;  %v5241_v46 = vpop.xlane.xlu1 %5240 }
 0x436   :  { %v7604_v57 = vpop.eup %7603  ;;  %7613 = vrcp.f32 %v5241_v46 }
 0x437   :  { %v5550_v8 = vmul.f32 %v7604_v57, %v10511_v13  ;;  %v5238_v42 = vpop.xlane.xlu0 %5237  ;;  %5679 = vst.msk [vmem:[%s11486_s6 + $0x2d8] sm:$0xff] %vm2487_vm1, %v5551_v27  ;;  %v12036_v27 = vld [vmem:[#allocation56_spill] sm:$0xff] }
 0x438   :  { %7615 = vrcp.f32 %v5238_v42  ;;  %v7606_v44 = vpop.eup %7605 }
 0x439   :  { %5678 = vst.msk [vmem:[%s11486_s6 + $0x2d0] sm:$0xff] %vm2487_vm1, %v5550_v8  ;;  %v5553_v35 = vmul.f32 %v7606_v44, %v10534_v16  ;;  %v5247_v19 = vpop.xlane.xlu1 %5246 }
 0x43a   :  { %v7608_v59 = vpop.eup %7607  ;;  %7617 = vrcp.f32 %v5247_v19 }
 0x43b   :  { %v5552_v13 = vmul.f32 %v7608_v59, %v10552_v62  ;;  %v5244_v0 = vpop.xlane.xlu0 %5243  ;;  %5681 = vst.msk [vmem:[%s11486_s6 + $0x2e8] sm:$0xff] %vm2487_vm1, %v5553_v35 }
 0x43c   :  { %7619 = vrcp.f32 %v5244_v0  ;;  %v7610_v41 = vpop.eup %7609 }
 0x43d   :  { %5680 = vst.msk [vmem:[%s11486_s6 + $0x2e0] sm:$0xff] %vm2487_vm1, %v5552_v13  ;;  %v5555_v16 = vmul.f32 %v7610_v41, %v10576_v52  ;;  %v5253_v12 = vpop.xlane.xlu1 %5252 }
 0x43e   :  { %v7612_v26 = vpop.eup %7611  ;;  %7621 = vrcp.f32 %v5253_v12 }
 0x43f   :  { %v5554_v62 = vmul.f32 %v7612_v26, %v10581_v30  ;;  %v5250_v25 = vpop.xlane.xlu0 %5249  ;;  %5683 = vst.msk [vmem:[%s11486_s6 + $0x2f8] sm:$0xff] %vm2487_vm1, %v5555_v16 }
 0x440   :  { %7623 = vrcp.f32 %v5250_v25  ;;  %v7614_v37 = vpop.eup %7613 }
 0x441   :  { %5682 = vst.msk [vmem:[%s11486_s6 + $0x2f0] sm:$0xff] %vm2487_vm1, %v5554_v62  ;;  %v5557_v52 = vmul.f32 %v7614_v37, %v10599_v10  ;;  %v5259_v63 = vpop.xlane.xlu1 %5258 }
 0x442   :  { %v7616_v56 = vpop.eup %7615  ;;  %7625 = vrcp.f32 %v5259_v63 }
 0x443   :  { %v5556_v30 = vmul.f32 %v7616_v56, %v10608_v54  ;;  %v5256_v14 = vpop.xlane.xlu0 %5255  ;;  %5685 = vst.msk [vmem:[%s11486_s6 + $0x308] sm:$0xff] %vm2487_vm1, %v5557_v52 }
 0x444   :  { %7627 = vrcp.f32 %v5256_v14  ;;  %v7618_v48 = vpop.eup %7617 }
 0x445   :  { %5684 = vst.msk [vmem:[%s11486_s6 + $0x300] sm:$0xff] %vm2487_vm1, %v5556_v30  ;;  %v5559_v10 = vmul.f32 %v7618_v48, %v10641_v2  ;;  %v5265_v49 = vpop.xlane.xlu1 %5264 }
 0x446   :  { %v7620_v21 = vpop.eup %7619  ;;  %7629 = vrcp.f32 %v5265_v49 }
 0x447   :  { %v5558_v54 = vmul.f32 %v7620_v21, %v10666_v20  ;;  %v5262_v40 = vpop.xlane.xlu0 %5261  ;;  %5687 = vst.msk [vmem:[%s11486_s6 + $0x318] sm:$0xff] %vm2487_vm1, %v5559_v10 }
 0x448   :  { %7631 = vrcp.f32 %v5262_v40  ;;  %v7622_v60 = vpop.eup %7621 }
 0x449   :  { %5686 = vst.msk [vmem:[%s11486_s6 + $0x310] sm:$0xff] %vm2487_vm1, %v5558_v54  ;;  %v5561_v2 = vmul.f32 %v7622_v60, %v10706_v24  ;;  %v5271_v38 = vpop.xlane.xlu1 %5270 }
 0x44a   :  { %v7624_v43 = vpop.eup %7623  ;;  %7633 = vrcp.f32 %v5271_v38 }
 0x44b   :  { %v5560_v20 = vmul.f32 %v7624_v43, %v10738_v50  ;;  %v5268_v51 = vpop.xlane.xlu0 %5267  ;;  %5689 = vst.msk [vmem:[%s11486_s6 + $0x328] sm:$0xff] %vm2487_vm1, %v5561_v2 }
 0x44c   :  { %7635 = vrcp.f32 %v5268_v51  ;;  %v7626_v47 = vpop.eup %7625 }
 0x44d   :  { %5688 = vst.msk [vmem:[%s11486_s6 + $0x320] sm:$0xff] %vm2487_vm1, %v5560_v20  ;;  %v5563_v24 = vmul.f32 %v7626_v47, %v10760_v55  ;;  %v5277_v57 = vpop.xlane.xlu1 %5276 }
 0x44e   :  { %v7628_v53 = vpop.eup %7627  ;;  %7637 = vrcp.f32 %v5277_v57 }
 0x44f   :  { %v5562_v50 = vmul.f32 %v7628_v53, %v12036_v27  ;;  %v5274_v46 = vpop.xlane.xlu0 %5273  ;;  %5691 = vst.msk [vmem:[%s11486_s6 + $0x338] sm:$0xff] %vm2487_vm1, %v5563_v24 }
 0x450   :  { %7639 = vrcp.f32 %v5274_v46  ;;  %v7630_v8 = vpop.eup %7629 }
 0x451   :  { %5690 = vst.msk [vmem:[%s11486_s6 + $0x330] sm:$0xff] %vm2487_vm1, %v5562_v50  ;;  %v5565_v55 = vmul.f32 %v7630_v8, %v10795_v9  ;;  %v5283_v44 = vpop.xlane.xlu1 %5282 }
 0x452   :  { %v7632_v42 = vpop.eup %7631  ;;  %7641 = vrcp.f32 %v5283_v44 }
 0x453   :  { %v5564_v59 = vmul.f32 %v7632_v42, %v10813_v29  ;;  %v5280_v35 = vpop.xlane.xlu0 %5279  ;;  %5693 = vst.msk [vmem:[%s11486_s6 + $0x348] sm:$0xff] %vm2487_vm1, %v5565_v55 }
 0x454   :  { %7643 = vrcp.f32 %v5280_v35  ;;  %v7634_v19 = vpop.eup %7633 }
 0x455   :  { %5692 = vst.msk [vmem:[%s11486_s6 + $0x340] sm:$0xff] %vm2487_vm1, %v5564_v59  ;;  %v5567_v9 = vmul.f32 %v7634_v19, %v10837_v3  ;;  %v5289_v0 = vpop.xlane.xlu1 %5288 }
 0x456   :  { %v7636_v13 = vpop.eup %7635  ;;  %7645 = vrcp.f32 %v5289_v0 }
 0x457   :  { %v5566_v29 = vmul.f32 %v7636_v13, %v10861_v1  ;;  %v5286_v41 = vpop.xlane.xlu0 %5285  ;;  %5695 = vst.msk [vmem:[%s11486_s6 + $0x358] sm:$0xff] %vm2487_vm1, %v5567_v9 }
 0x458   :  { %7647 = vrcp.f32 %v5286_v41  ;;  %v7638_v26 = vpop.eup %7637 }
 0x459   :  { %5694 = vst.msk [vmem:[%s11486_s6 + $0x350] sm:$0xff] %vm2487_vm1, %v5566_v29  ;;  %v5569_v3 = vmul.f32 %v7638_v26, %v10866_v11  ;;  %v5295_v12 = vpop.xlane.xlu1 %5294 }
 0x45a   :  { %v7640_v16 = vpop.eup %7639  ;;  %7649 = vrcp.f32 %v5295_v12 }
 0x45b   :  { %v5568_v1 = vmul.f32 %v7640_v16, %v10883_v5  ;;  %v5292_v62 = vpop.xlane.xlu0 %5291  ;;  %5697 = vst.msk [vmem:[%s11486_s6 + $0x368] sm:$0xff] %vm2487_vm1, %v5569_v3 }
 0x45c   :  { %7651 = vrcp.f32 %v5292_v62  ;;  %v7642_v25 = vpop.eup %7641 }
 0x45d   :  { %5696 = vst.msk [vmem:[%s11486_s6 + $0x360] sm:$0xff] %vm2487_vm1, %v5568_v1  ;;  %v5571_v11 = vmul.f32 %v7642_v25, %v10888_v33  ;;  %v5301_v56 = vpop.xlane.xlu1 %5300 }
 0x45e   :  { %v7644_v37 = vpop.eup %7643  ;;  %7653 = vrcp.f32 %v5301_v56 }
 0x45f   :  { %v5570_v5 = vmul.f32 %v7644_v37, %v10906_v45  ;;  %v5298_v52 = vpop.xlane.xlu0 %5297  ;;  %5699 = vst.msk [vmem:[%s11486_s6 + $0x378] sm:$0xff] %vm2487_vm1, %v5571_v11 }
 0x460   :  { %7655 = vrcp.f32 %v5298_v52  ;;  %v7646_v63 = vpop.eup %7645 }
 0x461   :  { %5698 = vst.msk [vmem:[%s11486_s6 + $0x370] sm:$0xff] %vm2487_vm1, %v5570_v5  ;;  %v5573_v33 = vmul.f32 %v7646_v63, %v10925_v4  ;;  %v5307_v14 = vpop.xlane.xlu1 %5306 }
 0x462   :  { %v7648_v30 = vpop.eup %7647  ;;  %7657 = vrcp.f32 %v5307_v14 }
 0x463   :  { %v5572_v45 = vmul.f32 %v7648_v30, %v10928_v32  ;;  %v5304_v48 = vpop.xlane.xlu0 %5303  ;;  %5701 = vst.msk [vmem:[%s11486_s6 + $0x388] sm:$0xff] %vm2487_vm1, %v5573_v33 }
 0x464   :  { %7659 = vrcp.f32 %v5304_v48  ;;  %v7650_v21 = vpop.eup %7649 }
 0x465   :  { %5700 = vst.msk [vmem:[%s11486_s6 + $0x380] sm:$0xff] %vm2487_vm1, %v5572_v45  ;;  %v5575_v4 = vmul.f32 %v7650_v21, %v10947_v28  ;;  %v5313_v49 = vpop.xlane.xlu1 %5312 }
 0x466   :  { %v7652_v10 = vpop.eup %7651  ;;  %7661 = vrcp.f32 %v5313_v49 }
 0x467   :  { %v5574_v32 = vmul.f32 %v7652_v10, %v10954_v18  ;;  %v5310_v54 = vpop.xlane.xlu0 %5309  ;;  %5703 = vst.msk [vmem:[%s11486_s6 + $0x398] sm:$0xff] %vm2487_vm1, %v5575_v4 }
 0x468   :  { %7663 = vrcp.f32 %v5310_v54  ;;  %v7654_v40 = vpop.eup %7653 }
 0x469   :  { %5702 = vst.msk [vmem:[%s11486_s6 + $0x390] sm:$0xff] %vm2487_vm1, %v5574_v32  ;;  %v5577_v28 = vmul.f32 %v7654_v40, %v10969_v61  ;;  %v5319_v43 = vpop.xlane.xlu1 %5318 }
 0x46a   :  { %v7656_v60 = vpop.eup %7655  ;;  %7665 = vrcp.f32 %v5319_v43 }
 0x46b   :  { %v5576_v18 = vmul.f32 %v7656_v60, %v10972_v31  ;;  %v5316_v2 = vpop.xlane.xlu0 %5315  ;;  %5705 = vst.msk [vmem:[%s11486_s6 + $0x3a8] sm:$0xff] %vm2487_vm1, %v5577_v28 }
 0x46c   :  { %7667 = vrcp.f32 %v5316_v2  ;;  %v7658_v38 = vpop.eup %7657 }
 0x46d   :  { %5704 = vst.msk [vmem:[%s11486_s6 + $0x3a0] sm:$0xff] %vm2487_vm1, %v5576_v18  ;;  %v5579_v61 = vmul.f32 %v7658_v38, %v10987_v7  ;;  %v5325_v51 = vpop.xlane.xlu1 %5324 }
 0x46e   :  { %v7660_v20 = vpop.eup %7659  ;;  %7669 = vrcp.f32 %v5325_v51 }
 0x46f   :  { %v5578_v31 = vmul.f32 %v7660_v20, %v10990_v34  ;;  %v5322_v47 = vpop.xlane.xlu0 %5321  ;;  %5707 = vst.msk [vmem:[%s11486_s6 + $0x3b8] sm:$0xff] %vm2487_vm1, %v5579_v61 }
 0x470   :  { %7671 = vrcp.f32 %v5322_v47  ;;  %v7662_v53 = vpop.eup %7661 }
 0x471   :  { %5706 = vst.msk [vmem:[%s11486_s6 + $0x3b0] sm:$0xff] %vm2487_vm1, %v5578_v31  ;;  %v5581_v7 = vmul.f32 %v7662_v53, %v11005_v6  ;;  %v5331_v57 = vpop.xlane.xlu1 %5330 }
 0x472   :  { %v7664_v24 = vpop.eup %7663  ;;  %7673 = vrcp.f32 %v5331_v57 }
 0x473   :  { %v5580_v34 = vmul.f32 %v7664_v24, %v11008_v36  ;;  %v5328_v27 = vpop.xlane.xlu0 %5327  ;;  %5709 = vst.msk [vmem:[%s11486_s6 + $0x3c8] sm:$0xff] %vm2487_vm1, %v5581_v7 }
 0x474   :  { %7675 = vrcp.f32 %v5328_v27  ;;  %v7666_v50 = vpop.eup %7665 }
 0x475   :  { %5708 = vst.msk [vmem:[%s11486_s6 + $0x3c0] sm:$0xff] %vm2487_vm1, %v5580_v34  ;;  %v5583_v6 = vmul.f32 %v7666_v50, %v11023_v17 }
 0x476   :  { %v7668_v46 = vpop.eup %7667 }
 0x477   :  { %v5582_v8 = vmul.f32 %v7668_v46, %v11026_v39  ;;  %5711 = vst.msk [vmem:[%s11486_s6 + $0x3d8] sm:$0xff] %vm2487_vm1, %v5583_v6 }
 0x478   :  { %v7670_v36 = vpop.eup %7669 }
 0x479   :  { %5710 = vst.msk [vmem:[%s11486_s6 + $0x3d0] sm:$0xff] %vm2487_vm1, %v5582_v8  ;;  %v5585_v55 = vmul.f32 %v7670_v36, %v11041_v58 }
 0x47a   :  { %v7672_v42 = vpop.eup %7671 }
 0x47b   :  { %v5584_v44 = vmul.f32 %v7672_v42, %v11044_v23  ;;  %5713 = vst.msk [vmem:[%s11486_s6 + $0x3e8] sm:$0xff] %vm2487_vm1, %v5585_v55 }
 0x47c   :  { %v7674_v17 = vpop.eup %7673 }
 0x47d   :  { %5712 = vst.msk [vmem:[%s11486_s6 + $0x3e0] sm:$0xff] %vm2487_vm1, %v5584_v44  ;;  %v5587_v59 = vmul.f32 %v7674_v17, %v11059_v22 }
 0x47e   :  { %v7676_v39 = vpop.eup %7675 }
 0x47f   :  { %v5586_v35 = vmul.f32 %v7676_v39, %v11062_v15  ;;  %5715 = vst.msk [vmem:[%s11486_s6 + $0x3f8] sm:$0xff] %vm2487_vm1, %v5587_v59 }
 0x481   :  { %5714 = vst.msk [vmem:[%s11486_s6 + $0x3f0] sm:$0xff] %vm2487_vm1, %v5586_v35 }

</bundles_post_ra>
